<compile_context>
chip_gen: v7x
topology: tpu7x:2x2x1
jax: 0.10.0
libtpu: 0.0.40
codegen_flags: <defaults>
</compile_context>

<pallas_src>
import functools

import jax
import jax.numpy as jnp
from jax.experimental import pallas as pl
from jax.experimental.pallas import tpu as pltpu


# ---------------------------------------------------------------------------
# Fused kernel: QKV projection -> per-head softmax attention -> merge -> proj
# ---------------------------------------------------------------------------

def _fused_attention_kernel(x_ref, wqkv_ref, wproj_ref, bproj_ref, o_ref, *,
                            B, N, num_heads, scale):
    C = x_ref.shape[-1]
    H = num_heads
    Dh = C // H

    x = x_ref[...]                                                     # (B*N, C)

    # QKV projection; weight is pre-transposed to (C, 3C) in the wrapper, so
    # this is a plain lane-dense x @ W on the MXU.
    qkv = jnp.dot(x, wqkv_ref[...], preferred_element_type=jnp.float32)  # (B*N, 3C)

    # Split heads; fold the softmax scale into q.
    q = (qkv[:, 0 * C:1 * C] * scale).reshape(B, N, H, Dh)
    k = qkv[:, 1 * C:2 * C].reshape(B, N, H, Dh)
    v = qkv[:, 2 * C:3 * C].reshape(B, N, H, Dh)

    # Per-batch attention (B is tiny & static -> unrolled Python loop keeps the
    # einsums at a single batch dim = head axis, which Mosaic lowers cleanly).
    merged = []
    for b in range(B):
        s = jnp.einsum("qhd,khd->hqk", q[b], k[b],
                       preferred_element_type=jnp.float32)             # (H, N, N)
        m = jnp.max(s, axis=-1, keepdims=True)
        p = jnp.exp(s - m)
        l = jnp.sum(p, axis=-1, keepdims=True)                         # (H, N, 1)
        p = p * pl.reciprocal(l, approx=True)                          # EUP vrcp
        # PV result produced directly in (q, h, d) order -> contiguous head
        # merge via reshape, no explicit transpose step.
        pv = jnp.einsum("hqk,khd->qhd", p, v[b],
                        preferred_element_type=jnp.float32)            # (N, H, Dh)
        merged.append(pv.reshape(N, C))
    o2d = jnp.concatenate(merged, axis=0) if B > 1 else merged[0]      # (B*N, C)

    # Output projection (weight pre-transposed to (C, C)) + bias; single
    # contiguous (B*N, C) writeback.
    out = jnp.dot(o2d, wproj_ref[...],
                  preferred_element_type=jnp.float32) + bproj_ref[...]
    o_ref[...] = out.astype(o_ref.dtype)


# ---------------------------------------------------------------------------
# Wrapper
# ---------------------------------------------------------------------------

def attention_forward(x, params, num_heads):
    """Equivalent of Attention.forward.  x: (B, N, C)."""
    B, N, C = x.shape
    Dh = C // num_heads
    scale = Dh ** (-0.5)

    # Wrapper-side layout plumbing (done once per call, folded by XLA):
    w_qkv_t = params["w_qkv"].T              # (C, 3C)
    w_proj_t = params["w_proj"].T            # (C, C)
    b_proj = params["b_proj"].reshape(1, C)  # (1, C) broadcast row
    x2d = x.reshape(B * N, C)                # fold batch into the matmul M dim

    kernel = functools.partial(
        _fused_attention_kernel, B=B, N=N, num_heads=num_heads, scale=scale)

    flops = (2 * B * N * C * (3 * C)                 # QKV projection
             + 2 * B * num_heads * N * N * Dh * 2    # QK^T and PV
             + 2 * B * N * C * C)                    # output projection
    transcendentals = B * num_heads * N * N          # exp()
    itemsize = jnp.dtype(x.dtype).itemsize
    bytes_accessed = itemsize * (x2d.size + w_qkv_t.size + w_proj_t.size
                                 + b_proj.size + B * N * C)

    out2d = pl.pallas_call(
        kernel,
        out_shape=jax.ShapeDtypeStruct((B * N, C), x.dtype),
        grid=(1,),
        in_specs=[
            pl.BlockSpec((B * N, C), lambda i: (0, 0)),
            pl.BlockSpec((C, 3 * C), lambda i: (0, 0)),
            pl.BlockSpec((C, C), lambda i: (0, 0)),
            pl.BlockSpec((1, C), lambda i: (0, 0)),
        ],
        out_specs=pl.BlockSpec((B * N, C), lambda i: (0, 0)),
        compiler_params=pltpu.CompilerParams(
            dimension_semantics=("arbitrary",)),
        cost_estimate=pl.CostEstimate(
            flops=flops,
            transcendentals=transcendentals,
            bytes_accessed=bytes_accessed),
    )(x2d, w_qkv_t, w_proj_t, b_proj)

    return out2d.reshape(B, N, C)


# ---------------------------------------------------------------------------
# Pure-JAX reference for validation
# ---------------------------------------------------------------------------

def attention_reference(x, params, num_heads):
    B, N, C = x.shape
    H = num_heads
    Dh = C // H
    scale = Dh ** (-0.5)
    qkv = x @ params["w_qkv"].T
    qkv = qkv.reshape(B, N, 3, H, Dh).transpose(2, 0, 3, 1, 4)
    q, k, v = qkv[0], qkv[1], qkv[2]
    attn = jnp.einsum("bhnd,bhmd->bhnm", q, k) * scale
    attn = jax.nn.softmax(attn, axis=-1)
    o = jnp.einsum("bhnm,bhmd->bhnd", attn, v)
    o = o.transpose(0, 2, 1, 3).reshape(B, N, C)
    return o @ params["w_proj"].T + params["b_proj"]


# ---------------------------------------------------------------------------
# Main
# ---------------------------------------------------------------------------

if __name__ == "__main__":
    B, N, C = 2, 16, 64
    num_heads = 8

    key = jax.random.PRNGKey(0)
    kx, k1, k2, k3 = jax.random.split(key, 4)

    x = jax.random.normal(kx, (B, N, C), dtype=jnp.float32)

    # Deterministic synthetic parameters (PyTorch nn.Linear weight layout: (out, in))
    params = {
        "w_qkv": 0.02 * jax.random.normal(k1, (3 * C, C), dtype=jnp.float32),
        "w_proj": 0.02 * jax.random.normal(k2, (C, C), dtype=jnp.float32),
        "b_proj": 0.02 * jax.random.normal(k3, (C,), dtype=jnp.float32),
    }

    fwd = jax.jit(functools.partial(attention_forward, num_heads=num_heads))
    out = jax.block_until_ready(fwd(x, params))

    ref = attention_reference(x, params, num_heads)
    assert out.shape == (B, N, C)
    # Tolerance loosened slightly to cover the EUP approx reciprocal.
    assert jnp.allclose(out, ref, atol=1e-3, rtol=1e-3), "mismatch vs reference"

    print("KERNEL_OK")
</pallas_src>

<mosaic_0001>
module attributes {stable_mosaic.version = 11 : i64} {
  func.func @_fused_attention_kernel(%arg0: i32, %arg1: memref<32x64xf32, #tpu.memory_space<vmem>>, %arg2: memref<64x192xf32, #tpu.memory_space<vmem>>, %arg3: memref<64x64xf32, #tpu.memory_space<vmem>>, %arg4: memref<1x64xf32, #tpu.memory_space<vmem>>, %arg5: memref<32x64xf32, #tpu.memory_space<vmem>>) attributes {dimension_semantics = [#tpu.dimension_semantics<arbitrary>], iteration_bounds = array<i64: 1>, scalar_prefetch = 0 : i64, scratch_operands = 0 : i64, tpu.core_type = #tpu.core_type<tc>, window_params = [{pipeline_mode = #tpu.pipeline_mode<synchronous>, transform_indices = @transform_0, window_bounds = array<i64: 32, 64>}, {pipeline_mode = #tpu.pipeline_mode<synchronous>, transform_indices = @transform_1, window_bounds = array<i64: 64, 192>}, {pipeline_mode = #tpu.pipeline_mode<synchronous>, transform_indices = @transform_2, window_bounds = array<i64: 64, 64>}, {pipeline_mode = #tpu.pipeline_mode<synchronous>, transform_indices = @transform_3, window_bounds = array<i64: 1, 64>}, {pipeline_mode = #tpu.pipeline_mode<synchronous>, transform_indices = @transform_4, window_bounds = array<i64: 32, 64>}]} {
    %c0 = arith.constant 0 : index
    %c0_0 = arith.constant 0 : index
    %0 = vector.load %arg1[%c0, %c0_0] : memref<32x64xf32, #tpu.memory_space<vmem>>, vector<32x64xf32>
    %c0_1 = arith.constant 0 : index
    %c0_2 = arith.constant 0 : index
    %1 = vector.load %arg2[%c0_1, %c0_2] : memref<64x192xf32, #tpu.memory_space<vmem>>, vector<64x192xf32>
    %cst = arith.constant dense<0.000000e+00> : vector<32x192xf32>
    %2 = tpu.matmul %0, %1, %cst {dimension_numbers = #tpu.dot_dimension_numbers<[1], [0], [0], [1], [0, 0, 1, 1], [], []>} : vector<32x64xf32>, vector<64x192xf32>, vector<32x192xf32> -> vector<32x192xf32>
    %3 = vector.extract_strided_slice %2 {offsets = [0, 0], sizes = [32, 64], strides = [1, 1]} : vector<32x192xf32> to vector<32x64xf32>
    %cst_3 = arith.constant 0.353553385 : f32
    %4 = vector.broadcast %cst_3 : f32 to vector<32x64xf32>
    %5 = arith.mulf %3, %4 : vector<32x64xf32>
    %6 = vector.shape_cast %5 : vector<32x64xf32> to vector<2x16x8x8xf32>
    %7 = vector.extract_strided_slice %2 {offsets = [0, 64], sizes = [32, 64], strides = [1, 1]} : vector<32x192xf32> to vector<32x64xf32>
    %8 = vector.shape_cast %7 : vector<32x64xf32> to vector<2x16x8x8xf32>
    %9 = vector.extract_strided_slice %2 {offsets = [0, 128], sizes = [32, 64], strides = [1, 1]} : vector<32x192xf32> to vector<32x64xf32>
    %10 = vector.shape_cast %9 : vector<32x64xf32> to vector<2x16x8x8xf32>
    %11 = vector.extract_strided_slice %6 {offsets = [0, 0, 0, 0], sizes = [1, 16, 8, 8], strides = [1, 1, 1, 1]} : vector<2x16x8x8xf32> to vector<1x16x8x8xf32>
    %12 = vector.shape_cast %11 : vector<1x16x8x8xf32> to vector<16x8x8xf32>
    %13 = vector.extract_strided_slice %8 {offsets = [0, 0, 0, 0], sizes = [1, 16, 8, 8], strides = [1, 1, 1, 1]} : vector<2x16x8x8xf32> to vector<1x16x8x8xf32>
    %14 = vector.shape_cast %13 : vector<1x16x8x8xf32> to vector<16x8x8xf32>
    "tpu.trace_start"() <{level = 10 : i32, message = "qhd,khd->hqk"}> : () -> ()
    %cst_4 = arith.constant dense<0.000000e+00> : vector<8x16x16xf32>
    %15 = tpu.matmul %12, %14, %cst_4 {dimension_numbers = #tpu.dot_dimension_numbers<[2], [2], [0], [0], [0, 1, 0, 0, 1, 0], [1], [1]>} : vector<16x8x8xf32>, vector<16x8x8xf32>, vector<8x16x16xf32> -> vector<8x16x16xf32>
    "tpu.trace_stop"() : () -> ()
    %cst_5 = arith.constant dense<0xFF800000> : vector<8x16xf32>
    %16 = vector.multi_reduction <maximumf>, %15, %cst_5 [2] : vector<8x16x16xf32> to vector<8x16xf32>
    %17 = vector.shape_cast %16 : vector<8x16xf32> to vector<8x16x1xf32>
    %18 = vector.broadcast %17 : vector<8x16x1xf32> to vector<8x16x16xf32>
    %19 = arith.subf %15, %18 : vector<8x16x16xf32>
    %20 = math.exp %19 : vector<8x16x16xf32>
    %cst_6 = arith.constant dense<0.000000e+00> : vector<8x16xf32>
    %21 = vector.multi_reduction <add>, %20, %cst_6 [2] : vector<8x16x16xf32> to vector<8x16xf32>
    %22 = vector.shape_cast %21 : vector<8x16xf32> to vector<8x16x1xf32>
    %23 = tpu.reciprocal %22 {approx = true} : vector<8x16x1xf32> -> vector<8x16x1xf32>
    %24 = vector.broadcast %23 : vector<8x16x1xf32> to vector<8x16x16xf32>
    %25 = arith.mulf %20, %24 : vector<8x16x16xf32>
    %26 = vector.extract_strided_slice %10 {offsets = [0, 0, 0, 0], sizes = [1, 16, 8, 8], strides = [1, 1, 1, 1]} : vector<2x16x8x8xf32> to vector<1x16x8x8xf32>
    %27 = vector.shape_cast %26 : vector<1x16x8x8xf32> to vector<16x8x8xf32>
    "tpu.trace_start"() <{level = 10 : i32, message = "hqk,khd->qhd"}> : () -> ()
    %cst_7 = arith.constant dense<0.000000e+00> : vector<8x8x16xf32>
    %28 = tpu.matmul %27, %25, %cst_7 {dimension_numbers = #tpu.dot_dimension_numbers<[0], [2], [2], [1], [0, 1, 0, 2, 1, 1], [1], [0]>} : vector<16x8x8xf32>, vector<8x16x16xf32>, vector<8x8x16xf32> -> vector<8x8x16xf32>
    %29 = tpu.transpose %28, [2, 0, 1] : vector<8x8x16xf32> -> vector<16x8x8xf32>
    "tpu.trace_stop"() : () -> ()
    %30 = vector.shape_cast %29 : vector<16x8x8xf32> to vector<16x64xf32>
    %31 = vector.extract_strided_slice %6 {offsets = [1, 0, 0, 0], sizes = [1, 16, 8, 8], strides = [1, 1, 1, 1]} : vector<2x16x8x8xf32> to vector<1x16x8x8xf32>
    %32 = vector.shape_cast %31 : vector<1x16x8x8xf32> to vector<16x8x8xf32>
    %33 = vector.extract_strided_slice %8 {offsets = [1, 0, 0, 0], sizes = [1, 16, 8, 8], strides = [1, 1, 1, 1]} : vector<2x16x8x8xf32> to vector<1x16x8x8xf32>
    %34 = vector.shape_cast %33 : vector<1x16x8x8xf32> to vector<16x8x8xf32>
    "tpu.trace_start"() <{level = 10 : i32, message = "qhd,khd->hqk"}> : () -> ()
    %cst_8 = arith.constant dense<0.000000e+00> : vector<8x16x16xf32>
    %35 = tpu.matmul %32, %34, %cst_8 {dimension_numbers = #tpu.dot_dimension_numbers<[2], [2], [0], [0], [0, 1, 0, 0, 1, 0], [1], [1]>} : vector<16x8x8xf32>, vector<16x8x8xf32>, vector<8x16x16xf32> -> vector<8x16x16xf32>
    "tpu.trace_stop"() : () -> ()
    %cst_9 = arith.constant dense<0xFF800000> : vector<8x16xf32>
    %36 = vector.multi_reduction <maximumf>, %35, %cst_9 [2] : vector<8x16x16xf32> to vector<8x16xf32>
    %37 = vector.shape_cast %36 : vector<8x16xf32> to vector<8x16x1xf32>
    %38 = vector.broadcast %37 : vector<8x16x1xf32> to vector<8x16x16xf32>
    %39 = arith.subf %35, %38 : vector<8x16x16xf32>
    %40 = math.exp %39 : vector<8x16x16xf32>
    %cst_10 = arith.constant dense<0.000000e+00> : vector<8x16xf32>
    %41 = vector.multi_reduction <add>, %40, %cst_10 [2] : vector<8x16x16xf32> to vector<8x16xf32>
    %42 = vector.shape_cast %41 : vector<8x16xf32> to vector<8x16x1xf32>
    %43 = tpu.reciprocal %42 {approx = true} : vector<8x16x1xf32> -> vector<8x16x1xf32>
    %44 = vector.broadcast %43 : vector<8x16x1xf32> to vector<8x16x16xf32>
    %45 = arith.mulf %40, %44 : vector<8x16x16xf32>
    %46 = vector.extract_strided_slice %10 {offsets = [1, 0, 0, 0], sizes = [1, 16, 8, 8], strides = [1, 1, 1, 1]} : vector<2x16x8x8xf32> to vector<1x16x8x8xf32>
    %47 = vector.shape_cast %46 : vector<1x16x8x8xf32> to vector<16x8x8xf32>
    "tpu.trace_start"() <{level = 10 : i32, message = "hqk,khd->qhd"}> : () -> ()
    %cst_11 = arith.constant dense<0.000000e+00> : vector<8x8x16xf32>
    %48 = tpu.matmul %47, %45, %cst_11 {dimension_numbers = #tpu.dot_dimension_numbers<[0], [2], [2], [1], [0, 1, 0, 2, 1, 1], [1], [0]>} : vector<16x8x8xf32>, vector<8x16x16xf32>, vector<8x8x16xf32> -> vector<8x8x16xf32>
    %49 = tpu.transpose %48, [2, 0, 1] : vector<8x8x16xf32> -> vector<16x8x8xf32>
    "tpu.trace_stop"() : () -> ()
    %50 = vector.shape_cast %49 : vector<16x8x8xf32> to vector<16x64xf32>
    %51 = tpu.concatenate %30, %50 in 0 : vector<16x64xf32>, vector<16x64xf32> -> vector<32x64xf32>
    %c0_12 = arith.constant 0 : index
    %c0_13 = arith.constant 0 : index
    %52 = vector.load %arg3[%c0_12, %c0_13] : memref<64x64xf32, #tpu.memory_space<vmem>>, vector<64x64xf32>
    %cst_14 = arith.constant dense<0.000000e+00> : vector<32x64xf32>
    %53 = tpu.matmul %51, %52, %cst_14 {dimension_numbers = #tpu.dot_dimension_numbers<[1], [0], [0], [1], [0, 0, 1, 1], [], []>} : vector<32x64xf32>, vector<64x64xf32>, vector<32x64xf32> -> vector<32x64xf32>
    %c0_15 = arith.constant 0 : index
    %c0_16 = arith.constant 0 : index
    %54 = vector.load %arg4[%c0_15, %c0_16] : memref<1x64xf32, #tpu.memory_space<vmem>>, vector<1x64xf32>
    %55 = vector.broadcast %54 : vector<1x64xf32> to vector<32x64xf32>
    %56 = arith.addf %53, %55 : vector<32x64xf32>
    %c0_17 = arith.constant 0 : index
    %c0_18 = arith.constant 0 : index
    %57 = vector.load %arg5[%c0_17, %c0_18] : memref<32x64xf32, #tpu.memory_space<vmem>>, vector<32x64xf32>
    tpu.vector_store %arg5[%c0_17, %c0_18], %56 {strides = array<i32>} : memref<32x64xf32, #tpu.memory_space<vmem>>, vector<32x64xf32>,
    return
  }
  func.func @transform_0(%arg0: i32) -> (i32, i32) {
    %c0_i32 = arith.constant 0 : i32
    %c0_i32_0 = arith.constant 0 : i32
    %c0_i32_1 = arith.constant 0 : i32
    return %c0_i32, %c0_i32_0 : i32, i32
  }
  func.func @transform_1(%arg0: i32) -> (i32, i32) {
    %c0_i32 = arith.constant 0 : i32
    %c0_i32_0 = arith.constant 0 : i32
    %c0_i32_1 = arith.constant 0 : i32
    return %c0_i32, %c0_i32_0 : i32, i32
  }
  func.func @transform_2(%arg0: i32) -> (i32, i32) {
    %c0_i32 = arith.constant 0 : i32
    %c0_i32_0 = arith.constant 0 : i32
    %c0_i32_1 = arith.constant 0 : i32
    return %c0_i32, %c0_i32_0 : i32, i32
  }
  func.func @transform_3(%arg0: i32) -> (i32, i32) {
    %c0_i32 = arith.constant 0 : i32
    %c0_i32_0 = arith.constant 0 : i32
    %c0_i32_1 = arith.constant 0 : i32
    return %c0_i32, %c0_i32_0 : i32, i32
  }
  func.func @transform_4(%arg0: i32) -> (i32, i32) {
    %c0_i32 = arith.constant 0 : i32
    %c0_i32_0 = arith.constant 0 : i32
    %c0_i32_1 = arith.constant 0 : i32
    return %c0_i32, %c0_i32_0 : i32, i32
  }
}

</mosaic_0001>

<bundles_post_ra>
// kernel: attention_forward.1
= control target key start
LH: loop header
LB: loop body
LE: loop exit
PB: predicated region body
PF: predicated region fallthrough
CT: control target
= control target key end

     0   :  { %9 = vsyncpa [#allocation3], 0  ;;  %s15290_s0 = inlined_call_operand.hbm [shape: f32[32,64], index: 0, kind: input, shape index: {}]   ;;  %s15291_s1 = inlined_call_operand.vmem [shape: f32[64,192], index: 1, kind: input, shape index: {}]   ;;  %s15292_s2 = inlined_call_operand.vmem [shape: f32[64,64], index: 2, kind: input, shape index: {}]   ;;  %s15293_s3 = inlined_call_operand.vmem [shape: f32[1,64], index: 3, kind: input, shape index: {}]   ;;  %s15294_s4 = inlined_call_operand.hbm [shape: f32[32,64], index: 4, kind: output, shape index: {}]  }
   0x1   :  { %10 = vsyncpa [#allocation4], 0  ;;  %s12932_s15 = smov [#allocation2]   ;;  %s12884_s19 = scalar_lea.hbm %s15290_s0, 512 }
   0x2   :  { %s16_s16 = sshll.u32 %s12932_s15, 4  ;;  %p12885_p0 = scmp.ne.s32.totalorder %s15290_s0, %s12884_s19  ;;  %s17_s16 = int_to_ptr.vmem [resolvable:$true] %s16_s16 }
   0x3   :  { %p12888_p1 = scmp.lt.u32.totalorder %s12884_s19, %s15290_s0 }
   0x5   :  { %p12890_p2 = pnand %p12888_p1, %p12885_p0 }
   0x7   :  { %12893 = shalt.err (!%p12890_p2)
}
   0x8   :  { %s12894_s24 = scalar_lea.vmem %s17_s16, 512  ;;  %p12899_p4 = scmp.lt.s32.totalorder %s17_s16, %s17_s16 }
   0x9   :  { %p12895_p3 = scmp.ne.s32.totalorder %s17_s16, %s12894_s24  ;;  %p12900_p5 = scmp.lt.s32.totalorder %s12894_s24, %s12894_s24 }
   0xb   :  { %p12901_p6 = por %p12900_p5, %p12899_p4 }
   0xd   :  { %p12902_p7 = pnand %p12901_p6, %p12895_p3 }
   0xf   :  { %12905 = shalt.err (!%p12902_p7)
}
  0x10   :  { %s12933_s25 = smov 128   ;;  %s12934_s26 = smov 8  }
  0x11   :  { %22 = dma.hbm_to_vmem [thread:$0]  %s15290_s0, 512, %s17_s16, [#allocation3], %s12933_s25, %s12933_s25, %s12934_s26  }
  0x12   :  { %12928 = dma.done.wait [#allocation3], 512  }
  0x13   :  { %12929 = vsyncadd [#allocation3], 4294966784  ;;  %v15295_v0 = vmov 0.0   ;;  %v37_v1 = vld [vmem:[%s15291_s1 + $0x8] sm:$0xff]  ;;  %v39_v2 = vld [vmem:[%s15291_s1 + $0x18] sm:$0xff]  ;;  %vm52_vm0 = vcmask 523264   ;;  %v251_v55 = vlaneseq }
  0x14   :  { %129 = vmatprep.mubr.f32.mxu0 %v15295_v0  ;;  %v36_v3 = vld [vmem:[%s15291_s1] sm:$0xff]  ;;  %v12637_v4 = vpack.c.bf16 %v39_v2, %v37_v1  ;;  %v38_v5 = vld [vmem:[%s15291_s1 + $0x10] sm:$0xff]  ;;  %v41_v6 = vld [vmem:[%s15291_s1 + $0x28] sm:$0xff]  ;;  %s12937_s0 = smov 120   ;;  %s12938_s10 = smov 96   ;;  %vm3570_vm1 = vcmask 64512  }
  0x15   :  { %v43_v7 = vld [vmem:[%s15291_s1 + $0x38] sm:$0xff]  ;;  %v12639_v8 = vpack.c.bf16 %v38_v5, %v36_v3  ;;  %v40_v10 = vld [vmem:[%s15291_s1 + $0x20] sm:$0xff]  ;;  %v42_v11 = vld [vmem:[%s15291_s1 + $0x30] sm:$0xff]  ;;  %s12939_s11 = smov 112   ;;  %s12940_s12 = smov 80   ;;  %v252_v61 = vshrl.u32 %v251_v55, 7 }
  0x16   :  { %v12641_v9 = vpack.c.bf16 %v43_v7, %v41_v6  ;;  %v45_v12 = vld [vmem:[%s15291_s1 + $0x48] sm:$0xff]  ;;  %12638 = vmatprep.subr.bf16.mxu0 %v12637_v4  ;;  %v47_v13 = vld [vmem:[%s15291_s1 + $0x58] sm:$0xff]  ;;  %v12643_v14 = vpack.c.bf16 %v42_v11, %v40_v10  ;;  %v44_v16 = vld [vmem:[%s15291_s1 + $0x40] sm:$0xff]  ;;  %s12941_s13 = smov 88   ;;  %s12942_s14 = smov 72   ;;  %vm4219_vm2 = vcmask 130048  }
  0x17   :  { %12640 = vmatpush1.bf16.msra.mxu0 %v12639_v8  ;;  %v12645_v15 = vpack.c.bf16 %v47_v13, %v45_v12  ;;  %v46_v17 = vld [vmem:[%s15291_s1 + $0x50] sm:$0xff]  ;;  %v49_v18 = vld [vmem:[%s15291_s1 + $0x68] sm:$0xff]  ;;  %v51_v19 = vld [vmem:[%s15291_s1 + $0x78] sm:$0xff]  ;;  %s12943_s15 = smov 64   ;;  %v12944_v53 = vmov 1983009808  }
  0x18   :  { %12642 = vmatprep.subr.bf16.mxu0 %v12641_v9  ;;  %v12647_v20 = vpack.c.bf16 %v46_v17, %v44_v16  ;;  %v12649_v21 = vpack.c.bf16 %v51_v19, %v49_v18  ;;  %v48_v22 = vld [vmem:[%s15291_s1 + $0x60] sm:$0xff]  ;;  %v50_v23 = vld [vmem:[%s15291_s1 + $0x70] sm:$0xff]  ;;  %v33_v26 = vld [vmem:[#allocation2 + $0x8] sm:$0xff]  ;;  %s12936_s1 = smov 104   ;;  %v249_v54 = vunpack.c.l.s4 %v12944_v53  ;;  %v12945_v58 = vmov 1934713408  }
  0x19   :  { %v12651_v24 = vpack.c.bf16 %v50_v23, %v48_v22  ;;  %v32_v25 = vld [vmem:[#allocation2] sm:$0xff]  ;;  %v34_v27 = vld [vmem:[#allocation2 + $0x10] sm:$0xff]  ;;  %v35_v28 = vld [vmem:[#allocation2 + $0x18] sm:$0xff]  ;;  %v313_v59 = vunpack.c.l.s4 %v12945_v58  ;;  %vm12947_vm3 = vmmov 0   ;;  %s12948_s16 = smov 16   ;;  %s12949_s17 = smov 24  }
  0x1a   :  { %v250_v60 = vunpack.c.0.s8 %v249_v54  ;;  %vm14238_vm4 = vmpackc.low %vm4219_vm2, %vm4219_vm2  ;;  %s12950_s28 = smov 32   ;;  %s12951_s7 = smov 40   ;;  %vm7064_vm5 = vcmask 195584   ;;  %vm7067_vm6 = vcmask 261120   ;;  %vm7070_vm7 = vcmask 326656  }
  0x1b   :  { %12644 = vmatpush1.bf16.msra.mxu0 %v12643_v14  ;;  %v314_v3 = vunpack.c.0.s8 %v313_v59  ;;  %vm7073_vm8 = vcmask 392192   ;;  %vm7076_vm9 = vcmask 457728  }
  0x1c   :  { %12646 = vmatprep.subr.bf16.mxu0 %v12645_v15  ;;  %v13196_v4 = vsub.s32 %v250_v60, %v252_v61 }
  0x1d   :  { %v13206_v13 = vsub.s32 %v314_v3, %v252_v61 }
  0x1f   :  { %12648 = vmatpush1.bf16.msra.mxu0 %v12647_v20 }
  0x20   :  { %12650 = vmatprep.subr.bf16.mxu0 %v12649_v21 }
  0x23   :  { %12652 = vmatpush1.bf16.msra.mxu0 %v12651_v24 }
  0x26   :  { %12162 = vmatmul.mubr.msk.f32.vlgmr.msra.gmra.mrb[0].mxu0 %vm52_vm0, %v32_v25 }
  0x27   :  { %135 = vmatprep.mubr.f32.mxu0 %v15295_v0 }
  0x2a   :  { %12163 = vmatmul.mubr.msk.f32.gmra.mrb[2].mxu0 %vm52_vm0, %v33_v26 }
  0x2b   :  { %141 = vmatprep.mubr.f32.mxu0 %v15295_v0 }
  0x2e   :  { %12164 = vmatmul.mubr.msk.f32.gmra.mrb[4].mxu0 %vm52_vm0, %v34_v27 }
  0x2f   :  { %147 = vmatprep.mubr.f32.mxu0 %v15295_v0 }
  0x32   :  { %12165 = vmatmul.mubr.msk.f32.gmra.mrb[6].mxu0 %vm52_vm0, %v35_v28 }
  0xf9   :  { %v131_v29 = vpop.f32.mrb[0].mxu0 }
  0xfa   :  { %810 = vrot.lane.b32.xlu1 %v131_v29, %s12936_s1  ;;  %794 = vrot.lane.b32.xlu0 %v131_v29, %s12937_s0  ;;  %v13053_v30 = vpop.f32.mrb[1].mxu0  ;;  %v13083_v37 = vmul.f32 0.35355338, %v131_v29 }
  0xfd   :  { %v137_v31 = vpop.f32.mrb[2].mxu0 }
  0xfe   :  { %818 = vrot.lane.b32.xlu1 %v131_v29, %s12938_s10  ;;  %802 = vrot.lane.b32.xlu0 %v131_v29, %s12939_s11  ;;  %v13057_v32 = vpop.f32.mrb[3].mxu0  ;;  %v13121_v38 = vmul.f32 0.35355338, %v137_v31 }
 0x100   :  { %15335 = vst [vmem:[#allocation12_spill] sm:$0xff] %v13121_v38 }
 0x101   :  { %v13059_v33 = vpop.f32.mrb[4].mxu0 }
 0x102   :  { %15331 = vst [vmem:[#allocation8_spill] sm:$0xff] %v13059_v33  ;;  %834 = vrot.lane.b32.xlu1 %v131_v29, %s12940_s12  ;;  %826 = vrot.lane.b32.xlu0 %v131_v29, %s12941_s13  ;;  %v13063_v34 = vpop.f32.mrb[5].mxu0 }
 0x103   :  { %15332 = vst [vmem:[#allocation9_spill] sm:$0xff] %v13063_v34 }
 0x105   :  { %v13065_v35 = vpop.f32.mrb[6].mxu0 }
 0x106   :  { %15333 = vst [vmem:[#allocation10_spill] sm:$0xff] %v13065_v35  ;;  %842 = vrot.lane.b32.xlu0 %v131_v29, %s12942_s14  ;;  %1494 = vrot.lane.b32.xlu1 %v13053_v30, %s12937_s0  ;;  %v13070_v36 = vpop.f32.mrb[7].mxu0 }
 0x107   :  { %15334 = vst [vmem:[#allocation11_spill] sm:$0xff] %v13070_v36 }
 0x10a   :  { %850 = vrot.lane.b32.xlu0 %v131_v29, %s12943_s15  ;;  %1518 = vrot.lane.b32.xlu1 %v13053_v30, %s12936_s1 }
 0x10e   :  { %1506 = vrot.lane.b32.xlu0 %v13053_v30, %s12939_s11  ;;  %1530 = vrot.lane.b32.xlu1 %v13053_v30, %s12938_s10 }
 0x112   :  { %1542 = vrot.lane.b32.xlu0 %v13053_v30, %s12941_s13  ;;  %1554 = vrot.lane.b32.xlu1 %v13053_v30, %s12940_s12 }
 0x116   :  { %1566 = vrot.lane.b32.xlu0 %v13053_v30, %s12942_s14  ;;  %174 = vrot.lane.b32.xlu1 %v13083_v37, %s12939_s11 }
 0x11a   :  { %162 = vrot.lane.b32.xlu0 %v13083_v37, %s12937_s0  ;;  %186 = vrot.lane.b32.xlu1 %v13083_v37, %s12936_s1 }
 0x11e   :  { %198 = vrot.lane.b32.xlu0 %v13083_v37, %s12938_s10  ;;  %210 = vrot.lane.b32.xlu1 %v13083_v37, %s12941_s13 }
 0x122   :  { %222 = vrot.lane.b32.xlu0 %v13083_v37, %s12940_s12  ;;  %234 = vrot.lane.b32.xlu1 %v13083_v37, %s12942_s14 }
 0x126   :  { %804 = vrot.lane.b32.xlu0 %v137_v31, %s12939_s11  ;;  %796 = vrot.lane.b32.xlu1 %v137_v31, %s12937_s0 }
 0x12a   :  { %820 = vrot.lane.b32.xlu0 %v137_v31, %s12938_s10  ;;  %812 = vrot.lane.b32.xlu1 %v137_v31, %s12936_s1 }
 0x12e   :  { %836 = vrot.lane.b32.xlu0 %v137_v31, %s12940_s12  ;;  %828 = vrot.lane.b32.xlu1 %v137_v31, %s12941_s13 }
 0x132   :  { %852 = vrot.lane.b32.xlu0 %v137_v31, %s12943_s15  ;;  %844 = vrot.lane.b32.xlu1 %v137_v31, %s12942_s14 }
 0x136   :  { %1508 = vrot.lane.b32.xlu1 %v13057_v32, %s12939_s11  ;;  %1496 = vrot.lane.b32.xlu0 %v13057_v32, %s12937_s0 }
 0x13a   :  { %1520 = vrot.lane.b32.xlu1 %v13057_v32, %s12936_s1  ;;  %1532 = vrot.lane.b32.xlu0 %v13057_v32, %s12938_s10 }
 0x13e   :  { %1544 = vrot.lane.b32.xlu1 %v13057_v32, %s12941_s13  ;;  %1556 = vrot.lane.b32.xlu0 %v13057_v32, %s12940_s12 }
 0x142   :  { %1568 = vrot.lane.b32.xlu1 %v13057_v32, %s12942_s14  ;;  %176 = vrot.lane.b32.xlu0 %v13121_v38, %s12939_s11 }
 0x146   :  { %164 = vrot.lane.b32.xlu1 %v13121_v38, %s12937_s0  ;;  %200 = vrot.lane.b32.xlu0 %v13121_v38, %s12938_s10 }
 0x14a   :  { %188 = vrot.lane.b32.xlu1 %v13121_v38, %s12936_s1  ;;  %224 = vrot.lane.b32.xlu0 %v13121_v38, %s12940_s12 }
 0x14e   :  { %212 = vrot.lane.b32.xlu1 %v13121_v38, %s12941_s13  ;;  %806 = vrot.lane.b32.xlu0 %v13059_v33, %s12939_s11 }
 0x152   :  { %236 = vrot.lane.b32.xlu1 %v13121_v38, %s12942_s14  ;;  %846 = vrot.lane.b32.xlu0 %v13059_v33, %s12942_s14 }
 0x156   :  { %798 = vrot.lane.b32.xlu1 %v13059_v33, %s12937_s0  ;;  %808 = vrot.lane.b32.xlu0 %v13065_v35, %s12939_s11 }
 0x15a   :  { %814 = vrot.lane.b32.xlu1 %v13059_v33, %s12936_s1  ;;  %824 = vrot.lane.b32.xlu0 %v13065_v35, %s12938_s10 }
 0x15e   :  { %822 = vrot.lane.b32.xlu1 %v13059_v33, %s12938_s10  ;;  %840 = vrot.lane.b32.xlu0 %v13065_v35, %s12940_s12 }
 0x162   :  { %830 = vrot.lane.b32.xlu1 %v13059_v33, %s12941_s13  ;;  %856 = vrot.lane.b32.xlu0 %v13065_v35, %s12943_s15 }
 0x166   :  { %838 = vrot.lane.b32.xlu1 %v13059_v33, %s12940_s12 }
 0x16a   :  { %854 = vrot.lane.b32.xlu1 %v13059_v33, %s12943_s15 }
 0x16c   :  { %v811_v39 = vpop.permute.xlu1 %810  ;;  %v795_v40 = vpop.permute.xlu0 %794 }
 0x16e   :  { %800 = vrot.lane.b32.xlu1 %v13065_v35, %s12937_s0 }
 0x170   :  { %v819_v41 = vpop.permute.xlu1 %818  ;;  %v803_v42 = vpop.permute.xlu0 %802 }
 0x171   :  { %866 = vrot.lane.b32.xlu0 %v803_v42, %s12943_s15 }
 0x172   :  { %816 = vrot.lane.b32.xlu1 %v13065_v35, %s12936_s1 }
 0x174   :  { %v835_v43 = vpop.permute.xlu1 %834  ;;  %v827_v44 = vpop.permute.xlu0 %826 }
 0x175   :  { %882 = vrot.lane.b32.xlu0 %v819_v41, %s12943_s15 }
 0x176   :  { %832 = vrot.lane.b32.xlu1 %v13065_v35, %s12941_s13 }
 0x178   :  { %v843_v45 = vpop.permute.xlu0 %842  ;;  %v13171_v46 = vpop.permute.xlu1 %1494 }
 0x179   :  { %898 = vrot.lane.b32.xlu0 %v835_v43, %s12943_s15 }
 0x17a   :  { %848 = vrot.lane.b32.xlu1 %v13065_v35, %s12942_s14 }
 0x17c   :  { %v13176_v47 = vpop.permute.xlu0 %850  ;;  %v13178_v48 = vpop.permute.xlu1 %1518 }
 0x17e   :  { %858 = vrot.lane.b32.xlu1 %v795_v40, %s12943_s15 }
 0x180   :  { %v13181_v49 = vpop.permute.xlu0 %1506  ;;  %v13183_v50 = vpop.permute.xlu1 %1530 }
 0x182   :  { %874 = vrot.lane.b32.xlu1 %v811_v39, %s12943_s15 }
 0x184   :  { %v13186_v51 = vpop.permute.xlu0 %1542  ;;  %v13188_v52 = vpop.permute.xlu1 %1554 }
 0x186   :  { %890 = vrot.lane.b32.xlu1 %v827_v44, %s12943_s15 }
 0x188   :  { %v13191_v56 = vpop.permute.xlu0 %1566  ;;  %v175_v57 = vpop.permute.xlu1 %174 }
 0x189   :  { %v246_v62 = vcombine.low %v13083_v37, %v175_v57  ;;  %v247_v63 = vcombine.high %v13083_v37, %v175_v57 }
 0x18a   :  { %906 = vrot.lane.b32.xlu1 %v843_v45, %s12943_s15 }
 0x18b   :  { %v254_v7 = vrot.slane %v246_v62, %v13196_v4  ;;  %v261_v8 = vrot.slane %v247_v63, %v13196_v4 }
 0x18c   :  { %v163_v1 = vpop.permute.xlu0 %162  ;;  %v187_v2 = vpop.permute.xlu1 %186 }
 0x18d   :  { %v262_v5 = vcombine.low %v163_v1, %v187_v2  ;;  %v263_v6 = vcombine.high %v163_v1, %v187_v2 }
 0x18f   :  { %v270_v9 = vrot.slane %v262_v5, %v13196_v4  ;;  %v277_v10 = vrot.slane %v263_v6, %v13196_v4 }
 0x190   :  { %v13202_v11 = vpop.permute.xlu0 %198  ;;  %v13204_v12 = vpop.permute.xlu1 %210 }
 0x191   :  { %15336 = vst [vmem:[#allocation13_spill] sm:$0xff] %v13202_v11  ;;  %15337 = vst [vmem:[#allocation14_spill] sm:$0xff] %v13204_v12  ;;  %v310_v14 = vcombine.low %v254_v7, %v270_v9  ;;  %v311_v15 = vcombine.high %v254_v7, %v270_v9  ;;  %v326_v16 = vcombine.low %v261_v8, %v277_v10 }
 0x192   :  { %v327_v17 = vcombine.high %v261_v8, %v277_v10 }
 0x193   :  { %v318_v18 = vrot.slane %v310_v14, %v13206_v13  ;;  %v325_v19 = vrot.slane %v311_v15, %v13206_v13  ;;  %v334_v20 = vrot.slane %v326_v16, %v13206_v13 }
 0x194   :  { %v341_v21 = vrot.slane %v327_v17, %v13206_v13  ;;  %v13212_v22 = vpop.permute.xlu0 %222  ;;  %v13214_v23 = vpop.permute.xlu1 %234 }
 0x195   :  { %15338 = vst [vmem:[#allocation15_spill] sm:$0xff] %v13212_v22  ;;  %15339 = vst [vmem:[#allocation16_spill] sm:$0xff] %v13214_v23  ;;  %v12166_v24 = vcombine.low %v318_v18, %v325_v19  ;;  %v12168_v25 = vcombine.high %v318_v18, %v325_v19 }
 0x196   :  { %v12170_v26 = vcombine.low %v334_v20, %v341_v21  ;;  %v12172_v27 = vcombine.high %v334_v20, %v341_v21 }
 0x197   :  { %v2130_v31 = vrot.slane %v12166_v24, %v13196_v4  ;;  %v2146_v37 = vrot.slane %v12168_v25, %v13196_v4 }
 0x198   :  { %v805_v28 = vpop.permute.xlu0 %804  ;;  %v797_v29 = vpop.permute.xlu1 %796  ;;  %v2162_v39 = vrot.slane %v12170_v26, %v13196_v4  ;;  %v2178_v40 = vrot.slane %v12172_v27, %v13196_v4 }
 0x199   :  { %868 = vrot.lane.b32.xlu0 %v805_v28, %s12943_s15  ;;  %860 = vrot.lane.b32.xlu1 %v797_v29, %s12943_s15  ;;  %v2186_v41 = vcombine.low %v2130_v31, %v2146_v37  ;;  %v2187_v42 = vcombine.high %v2130_v31, %v2146_v37 }
 0x19a   :  { %v2218_v43 = vcombine.low %v2162_v39, %v2178_v40  ;;  %v2219_v44 = vcombine.high %v2162_v39, %v2178_v40 }
 0x19b   :  { %v13223_v54 = vrot.slane %v2186_v41, %v13206_v13  ;;  %v13229_v57 = vrot.slane %v2187_v42, %v13206_v13 }
 0x19c   :  { %v821_v45 = vpop.permute.xlu0 %820  ;;  %v813_v53 = vpop.permute.xlu1 %812  ;;  %v13226_v55 = vrot.slane %v2218_v43, %v13206_v13  ;;  %v13232_v58 = vrot.slane %v2219_v44, %v13206_v13 }
 0x19d   :  { %15340 = vst [vmem:[#allocation17_spill] sm:$0xff] %v13223_v54  ;;  %15342 = vst [vmem:[#allocation19_spill] sm:$0xff] %v13229_v57  ;;  %884 = vrot.lane.b32.xlu0 %v821_v45, %s12943_s15  ;;  %876 = vrot.lane.b32.xlu1 %v813_v53, %s12943_s15 }
 0x19e   :  { %15341 = vst [vmem:[#allocation18_spill] sm:$0xff] %v13226_v55  ;;  %15343 = vst [vmem:[#allocation20_spill] sm:$0xff] %v13232_v58  ;;  %v2250_v59 = vcombine.low %v13223_v54, %v13226_v55 }
 0x1a0   :  { %12425 = vmatprep.mubr.msk.f32.mxu1 %vm3570_vm1, %v2250_v59  ;;  %v837_v63 = vpop.permute.xlu0 %836  ;;  %v829_v1 = vpop.permute.xlu1 %828 }
 0x1a1   :  { %900 = vrot.lane.b32.xlu0 %v837_v63, %s12943_s15  ;;  %892 = vrot.lane.b32.xlu1 %v829_v1, %s12943_s15 }
 0x1a4   :  { %v13247_v2 = vpop.permute.xlu0 %852  ;;  %v845_v3 = vpop.permute.xlu1 %844 }
 0x1a5   :  { %908 = vrot.lane.b32.xlu1 %v845_v3, %s12943_s15 }
 0x1a8   :  { %v13250_v5 = vpop.permute.xlu1 %1508  ;;  %v13252_v6 = vpop.permute.xlu0 %1496 }
 0x1ac   :  { %v13254_v7 = vpop.permute.xlu1 %1520  ;;  %v13256_v8 = vpop.permute.xlu0 %1532 }
 0x1b0   :  { %v13258_v9 = vpop.permute.xlu1 %1544  ;;  %v13260_v10 = vpop.permute.xlu0 %1556 }
 0x1b4   :  { %v13262_v14 = vpop.permute.xlu1 %1568  ;;  %v13264_v15 = vpop.permute.xlu0 %176 }
 0x1b5   :  { %15344 = vst [vmem:[#allocation21_spill] sm:$0xff] %v13264_v15 }
 0x1b8   :  { %v13266_v16 = vpop.permute.xlu1 %164  ;;  %v13268_v17 = vpop.permute.xlu0 %200 }
 0x1b9   :  { %15345 = vst [vmem:[#allocation22_spill] sm:$0xff] %v13268_v17 }
 0x1bc   :  { %v13270_v18 = vpop.permute.xlu1 %188  ;;  %v13272_v19 = vpop.permute.xlu0 %224 }
 0x1bd   :  { %15346 = vst [vmem:[#allocation23_spill] sm:$0xff] %v13272_v19 }
 0x1c0   :  { %v13274_v20 = vpop.permute.xlu1 %212  ;;  %v807_v21 = vpop.permute.xlu0 %806 }
 0x1c1   :  { %15347 = vst [vmem:[#allocation24_spill] sm:$0xff] %v13274_v20  ;;  %870 = vrot.lane.b32.xlu1 %v807_v21, %s12943_s15 }
 0x1c4   :  { %v13277_v24 = vpop.permute.xlu1 %236  ;;  %v847_v27 = vpop.permute.xlu0 %846 }
 0x1c5   :  { %15348 = vst [vmem:[#allocation25_spill] sm:$0xff] %v13277_v24 }
 0x1c8   :  { %v799_v25 = vpop.permute.xlu1 %798  ;;  %v809_v29 = vpop.permute.xlu0 %808 }
 0x1c9   :  { %862 = vrot.lane.b32.xlu0 %v799_v25, %s12943_s15 }
 0x1cc   :  { %v815_v26 = vpop.permute.xlu1 %814  ;;  %v825_v39 = vpop.permute.xlu0 %824 }
 0x1cd   :  { %878 = vrot.lane.b32.xlu1 %v815_v26, %s12943_s15 }
 0x1d0   :  { %v823_v28 = vpop.permute.xlu1 %822  ;;  %v841_v41 = vpop.permute.xlu0 %840 }
 0x1d1   :  { %886 = vrot.lane.b32.xlu0 %v823_v28, %s12943_s15 }
 0x1d4   :  { %v831_v31 = vpop.permute.xlu1 %830  ;;  %v13292_v44 = vpop.permute.xlu0 %856 }
 0x1d5   :  { %894 = vrot.lane.b32.xlu1 %v831_v31, %s12943_s15  ;;  %15349 = vst [vmem:[#allocation26_spill] sm:$0xff] %v13292_v44 }
 0x1d8   :  { %v839_v37 = vpop.permute.xlu1 %838 }
 0x1d9   :  { %902 = vrot.lane.b32.xlu0 %v839_v37, %s12943_s15  ;;  %910 = vrot.lane.b32.xlu1 %v847_v27, %s12943_s15 }
 0x1dc   :  { %v13285_v40 = vpop.permute.xlu1 %854 }
 0x1dd   :  { %872 = vrot.lane.b32.xlu0 %v809_v29, %s12943_s15 }
 0x1e0   :  { %v801_v42 = vpop.permute.xlu1 %800 }
 0x1e1   :  { %864 = vrot.lane.b32.xlu1 %v801_v42, %s12943_s15  ;;  %888 = vrot.lane.b32.xlu0 %v825_v39, %s12943_s15 }
 0x1e3   :  { %v867_v53 = vpop.permute.xlu0 %866 }
 0x1e4   :  { %v817_v43 = vpop.permute.xlu1 %816  ;;  %v946_v27 = vcombine.low %v13176_v47, %v867_v53 }
 0x1e5   :  { %880 = vrot.lane.b32.xlu1 %v817_v43, %s12943_s15  ;;  %904 = vrot.lane.b32.xlu0 %v841_v41, %s12943_s15 }
 0x1e6   :  { %v954_v37 = vrot.slane %v946_v27, %v13196_v4 }
 0x1e7   :  { %v883_v1 = vpop.permute.xlu0 %882 }
 0x1e8   :  { %v13294_v45 = vpop.permute.xlu1 %832 }
 0x1eb   :  { %v899_v25 = vpop.permute.xlu0 %898 }
 0x1ec   :  { %v13296_v59 = vpop.permute.xlu1 %848  ;;  %v978_v28 = vcombine.low %v883_v1, %v899_v25  ;;  %v979_v60 = vcombine.high %v883_v1, %v899_v25 }
 0x1ee   :  { %v986_v41 = vrot.slane %v978_v28, %v13196_v4 }
 0x1f0   :  { %v859_v63 = vpop.permute.xlu1 %858 }
 0x1f4   :  { %v875_v3 = vpop.permute.xlu1 %874 }
 0x1f5   :  { %v962_v21 = vcombine.low %v859_v63, %v875_v3  ;;  %v963_v36 = vcombine.high %v859_v63, %v875_v3 }
 0x1f7   :  { %v970_v29 = vrot.slane %v962_v21, %v13196_v4  ;;  %v947_v21 = vcombine.high %v13176_v47, %v867_v53 }
 0x1f8   :  { %v891_v26 = vpop.permute.xlu1 %890 }
 0x1f9   :  { %v1010_v43 = vcombine.low %v954_v37, %v970_v29  ;;  %v1011_v33 = vcombine.high %v954_v37, %v970_v29  ;;  %v961_v63 = vrot.slane %v947_v21, %v13196_v4 }
 0x1fb   :  { %v1018_v34 = vrot.slane %v1010_v43, %v13206_v13  ;;  %v1025_v1 = vrot.slane %v1011_v33, %v13206_v13 }
 0x1fc   :  { %v907_v31 = vpop.permute.xlu1 %906 }
 0x1fd   :  { %v994_v39 = vcombine.low %v891_v26, %v907_v31  ;;  %v995_v0 = vcombine.high %v891_v26, %v907_v31  ;;  %v977_v26 = vrot.slane %v963_v36, %v13196_v4 }
 0x1ff   :  { %v1002_v42 = vrot.slane %v994_v39, %v13196_v4  ;;  %v1009_v27 = vrot.slane %v995_v0, %v13196_v4  ;;  %v993_v39 = vrot.slane %v979_v60, %v13196_v4  ;;  %v1027_v37 = vcombine.high %v961_v63, %v977_v26 }
 0x201   :  { %v1042_v62 = vcombine.low %v986_v41, %v1002_v42  ;;  %v1043_v61 = vcombine.high %v986_v41, %v1002_v42  ;;  %v1058_v3 = vcombine.low %v993_v39, %v1009_v27  ;;  %v1059_v47 = vcombine.high %v993_v39, %v1009_v27 }
 0x202   :  { %v1041_v43 = vrot.slane %v1027_v37, %v13206_v13 }
 0x203   :  { %v1050_v35 = vrot.slane %v1042_v62, %v13206_v13  ;;  %v1057_v28 = vrot.slane %v1043_v61, %v13206_v13  ;;  %v1026_v62 = vcombine.low %v961_v63, %v977_v26  ;;  %v1066_v31 = vrot.slane %v1058_v3, %v13206_v13 }
 0x204   :  { %v1073_v41 = vrot.slane %v1059_v47, %v13206_v13 }
 0x205   :  { %v1074_v58 = vcombine.low %v1018_v34, %v1050_v35  ;;  %v1076_v25 = vcombine.low %v1025_v1, %v1057_v28  ;;  %v1075_v0 = vcombine.high %v1018_v34, %v1050_v35  ;;  %v1077_v61 = vcombine.high %v1025_v1, %v1057_v28 }
 0x206   :  { %v1034_v36 = vrot.slane %v1026_v62, %v13206_v13  ;;  %v1081_v27 = vcombine.high %v1041_v43, %v1073_v41  ;;  %v1080_v39 = vcombine.low %v1041_v43, %v1073_v41 }
 0x207   :  { %2394 = vxpose.xlu0.b32.start.end [1/1] (short) (narrow) %v1074_v58, 8 }
 0x208   :  { %v1079_v60 = vcombine.high %v1034_v36, %v1066_v31  ;;  %v1078_v42 = vcombine.low %v1034_v36, %v1066_v31 }
 0x20b   :  { %v869_v29 = vpop.permute.xlu0 %868  ;;  %2458 = vxpose.xlu0.b32.start.end [1/1] (short) (narrow) %v1076_v25, 8  ;;  %v861_v53 = vpop.permute.xlu1 %860 }
 0x20c   :  { %v1082_v28 = vcombine.low %v13247_v2, %v869_v29  ;;  %v1083_v36 = vcombine.high %v13247_v2, %v869_v29 }
 0x20e   :  { %2426 = vxpose.xlu1.b32.start.end [1/1] (short) (narrow) %v1075_v0, 8  ;;  %v1090_v3 = vrot.slane %v1082_v28, %v13196_v4 }
 0x20f   :  { %v885_v58 = vpop.permute.xlu0 %884  ;;  %2490 = vxpose.xlu0.b32.start.end [1/1] (short) (narrow) %v1077_v61, 8  ;;  %v877_v33 = vpop.permute.xlu1 %876 }
 0x210   :  { %v1098_v21 = vcombine.low %v861_v53, %v877_v33  ;;  %v1099_v47 = vcombine.high %v861_v53, %v877_v33 }
 0x212   :  { %2554 = vxpose.xlu1.b32.start.end [1/1] (short) (narrow) %v1079_v60, 8  ;;  %v1106_v26 = vrot.slane %v1098_v21, %v13196_v4  ;;  %v1113_v43 = vrot.slane %v1099_v47, %v13196_v4 }
 0x213   :  { %2522 = vxpose.xlu0.b32.start.end [1/1] (short) (narrow) %v1078_v42, 8  ;;  %v901_v34 = vpop.permute.xlu0 %900  ;;  %v893_v35 = vpop.permute.xlu1 %892 }
 0x214   :  { %v1114_v1 = vcombine.low %v885_v58, %v901_v34  ;;  %v1146_v0 = vcombine.low %v1090_v3, %v1106_v26  ;;  %v1115_v31 = vcombine.high %v885_v58, %v901_v34  ;;  %v1147_v21 = vcombine.high %v1090_v3, %v1106_v26 }
 0x215   :  { %v1097_v58 = vrot.slane %v1083_v36, %v13196_v4 }
 0x216   :  { %2618 = vxpose.xlu1.b32.start.end [1/1] (short) (narrow) %v1081_v27, 8  ;;  %v1122_v61 = vrot.slane %v1114_v1, %v13196_v4  ;;  %v1129_v27 = vrot.slane %v1115_v31, %v13196_v4 }
 0x217   :  { %2586 = vxpose.xlu0.b32.start.end [1/1] (short) (narrow) %v1080_v39, 8  ;;  %v909_v63 = vpop.permute.xlu1 %908  ;;  %v1162_v29 = vcombine.low %v1097_v58, %v1113_v43  ;;  %v1161_v39 = vrot.slane %v1147_v21, %v13206_v13 }
 0x218   :  { %v1130_v25 = vcombine.low %v893_v35, %v909_v63  ;;  %v1131_v62 = vcombine.high %v893_v35, %v909_v63  ;;  %v1154_v35 = vrot.slane %v1146_v0, %v13206_v13 }
 0x21a   :  { %v1138_v37 = vrot.slane %v1130_v25, %v13196_v4  ;;  %v1145_v60 = vrot.slane %v1131_v62, %v13196_v4  ;;  %v1163_v25 = vcombine.high %v1097_v58, %v1113_v43  ;;  %v1170_v62 = vrot.slane %v1162_v29, %v13206_v13 }
 0x21c   :  { %v1178_v41 = vcombine.low %v1122_v61, %v1138_v37  ;;  %v1179_v42 = vcombine.high %v1122_v61, %v1138_v37  ;;  %v1194_v33 = vcombine.low %v1129_v27, %v1145_v60  ;;  %v1195_v1 = vcombine.high %v1129_v27, %v1145_v60 }
 0x21d   :  { %v1177_v61 = vrot.slane %v1163_v25, %v13206_v13 }
 0x21e   :  { %v1186_v53 = vrot.slane %v1178_v41, %v13206_v13  ;;  %v1193_v2 = vrot.slane %v1179_v42, %v13206_v13  ;;  %v1202_v3 = vrot.slane %v1194_v33, %v13206_v13  ;;  %v1209_v31 = vrot.slane %v1195_v1, %v13206_v13 }
 0x220   :  { %v1211_v34 = vcombine.high %v1154_v35, %v1186_v53  ;;  %v1210_v28 = vcombine.low %v1154_v35, %v1186_v53  ;;  %v1213_v26 = vcombine.high %v1161_v39, %v1193_v2  ;;  %v1212_v63 = vcombine.low %v1161_v39, %v1193_v2 }
 0x221   :  { %v1215_v47 = vcombine.high %v1170_v62, %v1202_v3  ;;  %v1214_v0 = vcombine.low %v1170_v62, %v1202_v3  ;;  %v1217_v37 = vcombine.high %v1177_v61, %v1209_v31  ;;  %v1216_v36 = vcombine.low %v1177_v61, %v1209_v31 }
 0x222   :  { %2682 = vxpose.xlu1.b32.start.end [1/1] (short) (narrow) %v1211_v34, 8  ;;  %2650 = vxpose.xlu0.b32.start.end [1/1] (short) (narrow) %v1210_v28, 8 }
 0x226   :  { %2746 = vxpose.xlu1.b32.start.end [1/1] (short) (narrow) %v1213_v26, 8  ;;  %2714 = vxpose.xlu0.b32.start.end [1/1] (short) (narrow) %v1212_v63, 8 }
 0x22a   :  { %2810 = vxpose.xlu1.b32.start.end [1/1] (short) (narrow) %v1215_v47, 8  ;;  %2778 = vxpose.xlu0.b32.start.end [1/1] (short) (narrow) %v1214_v0, 8 }
 0x22e   :  { %2874 = vxpose.xlu1.b32.start.end [1/1] (short) (narrow) %v1217_v37, 8  ;;  %2842 = vxpose.xlu0.b32.start.end [1/1] (short) (narrow) %v1216_v36, 8 }
 0x233   :  { %v13340_v42 = vpop.permute.xlu1 %870 }
 0x23b   :  { %v13336_v60 = vpop.permute.xlu0 %862 }
 0x23f   :  { %v13344_v21 = vpop.permute.xlu1 %878 }
 0x243   :  { %v13338_v41 = vpop.permute.xlu0 %886 }
 0x247   :  { %v13348_v35 = vpop.permute.xlu1 %894 }
 0x24b   :  { %v13342_v43 = vpop.permute.xlu0 %902  ;;  %v13352_v58 = vpop.permute.xlu1 %910 }
 0x24c   :  { %896 = vrot.lane.b32.xlu1 %v13294_v45, %s12943_s15 }
 0x24f   :  { %v13346_v27 = vpop.permute.xlu0 %872 }
 0x250   :  { %15350 = vst [vmem:[#allocation27_spill] sm:$0xff] %v13346_v27 }
 0x253   :  { %v13350_v53 = vpop.permute.xlu0 %888  ;;  %v13356_v45 = vpop.permute.xlu1 %864 }
 0x254   :  { %15351 = vst [vmem:[#allocation28_spill] sm:$0xff] %v13350_v53  ;;  %15353 = vst [vmem:[#allocation30_spill] sm:$0xff] %v13356_v45 }
 0x257   :  { %v13354_v33 = vpop.permute.xlu0 %904  ;;  %v13358_v28 = vpop.permute.xlu1 %880 }
 0x258   :  { %15352 = vst [vmem:[#allocation29_spill] sm:$0xff] %v13354_v33 }
 0x287   :  { %v2410_v34 = vpop.trf.xlu0 }
 0x28b   :  { %v2474_v2 = vpop.trf.xlu0 }
 0x28c   :  { %v2906_v1 = vcombine.low %v2410_v34, %v2474_v2 }
 0x28e   :  { %v2442_v29 = vpop.trf.xlu1  ;;  %v13361_v25 = vrot.slane %v2906_v1, %v13196_v4 }
 0x28f   :  { %v2506_v39 = vpop.trf.xlu0 }
 0x290   :  { %v2922_v26 = vcombine.low %v2442_v29, %v2506_v39  ;;  %v2923_v38 = vcombine.high %v2442_v29, %v2506_v39 }
 0x292   :  { %v2570_v63 = vpop.trf.xlu1  ;;  %v13364_v62 = vrot.slane %v2922_v26, %v13196_v4 }
 0x293   :  { %v2538_v3 = vpop.trf.xlu0 }
 0x294   :  { %v2970_v36 = vcombine.low %v13361_v25, %v13364_v62 }
 0x296   :  { %v2634_v47 = vpop.trf.xlu1  ;;  %v2978_v54 = vrot.slane %v2970_v36, %v13206_v13 }
 0x297   :  { %v2602_v0 = vpop.trf.xlu0  ;;  %v2954_v31 = vcombine.low %v2570_v63, %v2634_v47  ;;  %v2955_v27 = vcombine.high %v2570_v63, %v2634_v47 }
 0x298   :  { %v2938_v61 = vcombine.low %v2538_v3, %v2602_v0  ;;  %v2939_v44 = vcombine.high %v2538_v3, %v2602_v0  ;;  %v2937_v3 = vrot.slane %v2923_v38, %v13196_v4 }
 0x299   :  { %v2962_v37 = vrot.slane %v2954_v31, %v13196_v4 }
 0x29a   :  { %v2946_v57 = vrot.slane %v2938_v61, %v13196_v4  ;;  %v2907_v61 = vcombine.high %v2410_v34, %v2474_v2 }
 0x29c   :  { %v3002_v55 = vcombine.low %v2946_v57, %v2962_v37  ;;  %v2921_v63 = vrot.slane %v2907_v61, %v13196_v4 }
 0x29e   :  { %v3010_v1 = vrot.slane %v3002_v55, %v13206_v13 }
 0x2a0   :  { %v3035_v20 = vcombine.high %v2978_v54, %v3010_v1  ;;  %v3034_v24 = vcombine.low %v2978_v54, %v3010_v1  ;;  %v2953_v54 = vrot.slane %v2939_v44, %v13196_v4  ;;  %v3003_v44 = vcombine.high %v2946_v57, %v2962_v37 }
 0x2a2   :  { %3210 = vxpose.xlu1.b32.start [1/2] (short) (narrow) %v3035_v20, 8  ;;  %3178 = vxpose.xlu0.b32.start [1/2] (short) (narrow) %v3034_v24, 8  ;;  %v2666_v26 = vpop.trf.xlu0  ;;  %v2698_v17 = vpop.trf.xlu1  ;;  %v2969_v20 = vrot.slane %v2955_v27, %v13196_v4  ;;  %v3017_v57 = vrot.slane %v3003_v44, %v13206_v13  ;;  %v2987_v44 = vcombine.high %v2921_v63, %v2937_v3 }
 0x2a4   :  { %v3018_v47 = vcombine.low %v2953_v54, %v2969_v20 }
 0x2a6   :  { %v2730_v19 = vpop.trf.xlu0  ;;  %v2762_v53 = vpop.trf.xlu1 }
 0x2a7   :  { %v3042_v33 = vcombine.low %v2666_v26, %v2730_v19  ;;  %v3058_v31 = vcombine.low %v2698_v17, %v2762_v53  ;;  %v3043_v34 = vcombine.high %v2666_v26, %v2730_v19  ;;  %v3059_v2 = vcombine.high %v2698_v17, %v2762_v53 }
 0x2a9   :  { %v3050_v36 = vrot.slane %v3042_v33, %v13196_v4  ;;  %v3066_v55 = vrot.slane %v3058_v31, %v13196_v4  ;;  %v2986_v31 = vcombine.low %v2921_v63, %v2937_v3  ;;  %v3057_v38 = vrot.slane %v3043_v34, %v13196_v4 }
 0x2aa   :  { %v2794_v12 = vpop.trf.xlu0  ;;  %v2826_v23 = vpop.trf.xlu1  ;;  %v3073_v17 = vrot.slane %v3059_v2, %v13196_v4  ;;  %v1626_v63 = vcombine.low %v13186_v51, %v13191_v56 }
 0x2ab   :  { %v3106_v29 = vcombine.low %v3050_v36, %v3066_v55  ;;  %v2994_v26 = vrot.slane %v2986_v31, %v13206_v13  ;;  %v1610_v31 = vcombine.low %v13183_v50, %v13188_v52 }
 0x2ad   :  { %v3114_v19 = vrot.slane %v3106_v29, %v13206_v13 }
 0x2ae   :  { %v2858_v24 = vpop.trf.xlu0  ;;  %v2890_v1 = vpop.trf.xlu1 }
 0x2af   :  { %v3074_v15 = vcombine.low %v2794_v12, %v2858_v24  ;;  %v3075_v11 = vcombine.high %v2794_v12, %v2858_v24  ;;  %v3090_v22 = vcombine.low %v2826_v23, %v2890_v1  ;;  %v3091_v45 = vcombine.high %v2826_v23, %v2890_v1 }
 0x2b0   :  { %v2971_v23 = vcombine.high %v13361_v25, %v13364_v62  ;;  %v3107_v25 = vcombine.high %v3050_v36, %v3066_v55  ;;  %v3122_v62 = vcombine.low %v3057_v38, %v3073_v17  ;;  %v3019_v24 = vcombine.high %v2953_v54, %v2969_v20 }
 0x2b1   :  { %v3082_v33 = vrot.slane %v3074_v15, %v13196_v4  ;;  %v3098_v39 = vrot.slane %v3090_v22, %v13196_v4  ;;  %v3089_v27 = vrot.slane %v3075_v11, %v13196_v4  ;;  %v3105_v0 = vrot.slane %v3091_v45, %v13196_v4 }
 0x2b2   :  { %v3026_v22 = vrot.slane %v3018_v47, %v13206_v13  ;;  %v2985_v61 = vrot.slane %v2971_v23, %v13206_v13  ;;  %v3123_v54 = vcombine.high %v3057_v38, %v3073_v17  ;;  %v13400_v20 = vrot.slane %v2987_v44, %v13206_v13 }
 0x2b3   :  { %v3138_v12 = vcombine.low %v3082_v33, %v3098_v39  ;;  %v3139_v11 = vcombine.high %v3082_v33, %v3098_v39  ;;  %v3154_v53 = vcombine.low %v3089_v27, %v3105_v0  ;;  %v3130_v33 = vrot.slane %v3122_v62, %v13206_v13 }
 0x2b4   :  { %v3038_v1 = vcombine.low %v2994_v26, %v3026_v22  ;;  %v3036_v34 = vcombine.low %v2985_v61, %v3017_v57  ;;  %v3121_v39 = vrot.slane %v3107_v25, %v13206_v13  ;;  %v3155_v36 = vcombine.high %v3089_v27, %v3105_v0 }
 0x2b5   :  { %v3146_v15 = vrot.slane %v3138_v12, %v13206_v13  ;;  %v3162_v2 = vrot.slane %v3154_v53, %v13206_v13  ;;  %v3153_v29 = vrot.slane %v3139_v11, %v13206_v13  ;;  %v13397_v12 = vrot.slane %v3019_v24, %v13206_v13 }
 0x2b6   :  { %v3037_v23 = vcombine.high %v2985_v61, %v3017_v57  ;;  %v13407_v27 = vrot.slane %v3155_v36, %v13206_v13  ;;  %v1578_v0 = vcombine.low %v13053_v30, %v13181_v49  ;;  %v13414_v38 = vrot.slane %v3123_v54, %v13206_v13 }
 0x2b7   :  { %v3171_v45 = vcombine.high %v3114_v19, %v3146_v15  ;;  %v3170_v37 = vcombine.low %v3114_v19, %v3146_v15  ;;  %v3174_v55 = vcombine.low %v3130_v33, %v3162_v2  ;;  %v3172_v47 = vcombine.low %v3121_v39, %v3153_v29 }
 0x2b8   :  { %v3040_v3 = vcombine.low %v13400_v20, %v13397_v12  ;;  %v1594_v17 = vcombine.low %v13171_v46, %v13178_v48  ;;  %v1634_v19 = vrot.slane %v1626_v63, %v13196_v4  ;;  %v3176_v15 = vcombine.low %v13414_v38, %v13407_v27 }
 0x2b9   :  { %3211 = vxpose.xlu1.b32.end [2/2] (short) (narrow) %v3171_v45, 8  ;;  %3179 = vxpose.xlu0.b32.end [2/2] (short) (narrow) %v3170_v37, 8  ;;  %v3173_v57 = vcombine.high %v3121_v39, %v3153_v29  ;;  %v1586_v11 = vrot.slane %v1578_v0, %v13196_v4  ;;  %v1618_v53 = vrot.slane %v1610_v31, %v13196_v4 }
 0x2ba   :  { %v1602_v45 = vrot.slane %v1594_v17, %v13196_v4  ;;  %v3039_v25 = vcombine.high %v2994_v26, %v3026_v22  ;;  %v1627_v61 = vcombine.high %v13186_v51, %v13191_v56  ;;  %v1579_v29 = vcombine.high %v13053_v30, %v13181_v49 }
 0x2bb   :  { %v1674_v37 = vcombine.low %v1618_v53, %v1634_v19  ;;  %v1675_v24 = vcombine.high %v1618_v53, %v1634_v19  ;;  %v1611_v39 = vcombine.high %v13183_v50, %v13188_v52  ;;  %v1595_v26 = vcombine.high %v13171_v46, %v13178_v48 }
 0x2bc   :  { %v1642_v62 = vcombine.low %v1586_v11, %v1602_v45  ;;  %v1643_v44 = vcombine.high %v1586_v11, %v1602_v45  ;;  %v1641_v51 = vrot.slane %v1627_v61, %v13196_v4  ;;  %v1593_v30 = vrot.slane %v1579_v29, %v13196_v4 }
 0x2bd   :  { %3306 = vxpose.xlu1.b32.start [1/2] (short) (narrow) %v3038_v1, 8  ;;  %3242 = vxpose.xlu0.b32.start [1/2] (short) (narrow) %v3036_v34, 8  ;;  %v3175_v1 = vcombine.high %v3130_v33, %v3162_v2  ;;  %v13427_v34 = vrot.slane %v1674_v37, %v13206_v13  ;;  %v1689_v2 = vrot.slane %v1675_v24, %v13206_v13 }
 0x2be   :  { %v13434_v22 = vrot.slane %v1642_v62, %v13206_v13  ;;  %v1625_v49 = vrot.slane %v1611_v39, %v13196_v4  ;;  %v1657_v50 = vrot.slane %v1643_v44, %v13206_v13  ;;  %v1609_v52 = vrot.slane %v1595_v26, %v13196_v4 }
 0x2bf   :  { %v1762_v46 = vcombine.low %v13258_v9, %v13262_v14  ;;  %v1714_v63 = vcombine.low %v13057_v32, %v13250_v5  ;;  %v1731_v44 = vcombine.high %v13252_v6, %v13254_v7  ;;  %v1747_v39 = vcombine.high %v13256_v8, %v13260_v10 }
 0x2c0   :  { %v1706_v56 = vcombine.low %v13434_v22, %v13427_v34  ;;  %v1690_v33 = vcombine.low %v1625_v49, %v1641_v51  ;;  %v1708_v48 = vcombine.low %v1657_v50, %v1689_v2  ;;  %v1658_v36 = vcombine.low %v1593_v30, %v1609_v52 }
 0x2c1   :  { %3307 = vxpose.xlu1.b32.end [2/2] (short) (narrow) %v3174_v55, 8  ;;  %3243 = vxpose.xlu0.b32.end [2/2] (short) (narrow) %v3172_v47, 8  ;;  %v1730_v55 = vcombine.low %v13252_v6, %v13254_v7  ;;  %v1746_v47 = vcombine.low %v13256_v8, %v13260_v10  ;;  %v1691_v54 = vcombine.high %v1625_v49, %v1641_v51 }
 0x2c2   :  { %v13456_v0 = vrot.slane %v1690_v33, %v13206_v13  ;;  %v1659_v31 = vcombine.high %v1593_v30, %v1609_v52  ;;  %v1715_v26 = vcombine.high %v13057_v32, %v13250_v5  ;;  %v1250_v8 = vcombine.low %v13338_v41, %v13342_v43 }
 0x2c3   :  { %v1738_v17 = vrot.slane %v1730_v55, %v13196_v4  ;;  %v1754_v19 = vrot.slane %v1746_v47, %v13196_v4  ;;  %v13467_v45 = vrot.slane %v1691_v54, %v13206_v13  ;;  %v1266_v32 = vcombine.low %v13348_v35, %v13352_v58 }
 0x2c4   :  { %v1729_v6 = vrot.slane %v1715_v26, %v13196_v4  ;;  %v3177_v5 = vcombine.high %v13414_v38, %v13407_v27  ;;  %v1218_v52 = vcombine.low %v13285_v40, %v13340_v42  ;;  %v1258_v33 = vrot.slane %v1250_v8, %v13196_v4 }
 0x2c5   :  { %3370 = vxpose.xlu1.b32.start [1/2] (short) (narrow) %v3040_v3, 8  ;;  %3274 = vxpose.xlu0.b32.start [1/2] (short) (narrow) %v3037_v23, 8  ;;  %v1770_v3 = vrot.slane %v1762_v46, %v13196_v4  ;;  %v1709_v23 = vcombine.high %v1657_v50, %v1689_v2  ;;  %v1274_v27 = vrot.slane %v1266_v32, %v13196_v4 }
 0x2c6   :  { %v1226_v54 = vrot.slane %v1218_v52, %v13196_v4 }
 0x2c7   :  { %v1810_v11 = vcombine.low %v1754_v19, %v1770_v3 }
 0x2c9   :  { %3371 = vxpose.xlu1.b32.end [2/2] (short) (narrow) %v3176_v15, 8  ;;  %3275 = vxpose.xlu0.b32.end [2/2] (short) (narrow) %v3173_v57, 8  ;;  %v13461_v15 = vrot.slane %v1658_v36, %v13206_v13  ;;  %v1722_v57 = vrot.slane %v1714_v63, %v13196_v4  ;;  %v13475_v61 = vrot.slane %v1810_v11, %v13206_v13 }
 0x2ca   :  { %v1251_v63 = vcombine.high %v13338_v41, %v13342_v43  ;;  %v1315_v41 = vcombine.high %v1258_v33, %v1274_v27 }
 0x2cb   :  { %v1710_v53 = vcombine.low %v13461_v15, %v13456_v0  ;;  %v1778_v37 = vcombine.low %v1722_v57, %v1738_v17  ;;  %v1779_v2 = vcombine.high %v1722_v57, %v1738_v17  ;;  %v1235_v17 = vcombine.high %v13336_v60, %v13344_v21 }
 0x2cc   :  { %v1219_v57 = vcombine.high %v13285_v40, %v13340_v42  ;;  %v1329_v40 = vrot.slane %v1315_v41, %v13206_v13 }
 0x2cd   :  { %3338 = vxpose.xlu0.b32.start [1/2] (short) (narrow) %v3039_v25, 8  ;;  %v13470_v25 = vrot.slane %v1659_v31, %v13206_v13  ;;  %v13478_v24 = vrot.slane %v1778_v37, %v13206_v13  ;;  %v1793_v30 = vrot.slane %v1779_v2, %v13206_v13 }
 0x2cf   :  { %v1712_v62 = vcombine.low %v13470_v25, %v13467_v45  ;;  %v1842_v29 = vcombine.low %v13478_v24, %v13475_v61  ;;  %v1713_v8 = vcombine.high %v13470_v25, %v13467_v45  ;;  %v1843_v32 = vcombine.high %v13478_v24, %v13475_v61  ;;  %v897_v25 = vpop.permute.xlu1 %896 }
 0x2d1   :  { %3339 = vxpose.xlu0.b32.end [2/2] (short) (narrow) %v3175_v1, 8  ;;  %v1763_v1 = vcombine.high %v13258_v9, %v13262_v14  ;;  %v3041_v9 = vcombine.high %v13400_v20, %v13397_v12  ;;  %v1745_v14 = vrot.slane %v1731_v44, %v13196_v4  ;;  %v1234_v20 = vcombine.low %v13336_v60, %v13344_v21 }
 0x2d2   :  { %v1233_v60 = vrot.slane %v1219_v57, %v13196_v4  ;;  %v15362_v57 = vld [vmem:[#allocation26_spill] sm:$0xff] }
 0x2d3   :  { %v1777_v51 = vrot.slane %v1763_v1, %v13196_v4  ;;  %v1794_v12 = vcombine.low %v1729_v6, %v1745_v14  ;;  %v1795_v46 = vcombine.high %v1729_v6, %v1745_v14  ;;  %v1242_v36 = vrot.slane %v1234_v20, %v13196_v4 }
 0x2d4   :  { %v1707_v6 = vcombine.high %v13434_v22, %v13427_v34 }
 0x2d5   :  { %4396 = vxpose.xlu0.b32.start.end [1/1] (short) (narrow) %v1706_v56, 8  ;;  %v1811_v56 = vcombine.high %v1754_v19, %v1770_v3  ;;  %v1267_v3 = vcombine.high %v13348_v35, %v13352_v58  ;;  %v1809_v31 = vrot.slane %v1795_v46, %v13206_v13  ;;  %v1282_v19 = vcombine.low %v1226_v54, %v1242_v36  ;;  %v15356_v46 = vld [vmem:[#allocation13_spill] sm:$0xff] }
 0x2d6   :  { %v1249_v35 = vrot.slane %v1235_v17, %v13196_v4  ;;  %v1283_v58 = vcombine.high %v1226_v54, %v1242_v36 }
 0x2d7   :  { %v13505_v10 = vrot.slane %v1811_v56, %v13206_v13  ;;  %v1281_v37 = vrot.slane %v1267_v3, %v13196_v4 }
 0x2d8   :  { %v1298_v42 = vcombine.low %v1233_v60, %v1249_v35 }
 0x2d9   :  { %4460 = vxpose.xlu0.b32.start.end [1/1] (short) (narrow) %v1708_v48, 8  ;;  %v1844_v38 = vcombine.low %v1793_v30, %v13505_v10  ;;  %v1802_v48 = vrot.slane %v1794_v12, %v13206_v13 }
 0x2da   :  { %v1306_v56 = vrot.slane %v1298_v42, %v13206_v13 }
 0x2dd   :  { %4492 = vxpose.xlu0.b32.start.end [1/1] (short) (narrow) %v1709_v23, 8  ;;  %v1314_v23 = vcombine.low %v1258_v33, %v1274_v27  ;;  %v15354_v33 = vld [vmem:[#allocation30_spill] sm:$0xff] }
 0x2de   :  { %v1370_v27 = vcombine.low %v15354_v33, %v13358_v28 }
 0x2df   :  { %v1322_v43 = vrot.slane %v1314_v23, %v13206_v13  ;;  %v15359_v23 = vld [vmem:[#allocation16_spill] sm:$0xff] }
 0x2e1   :  { %4524 = vxpose.xlu0.b32.start.end [1/1] (short) (narrow) %v1710_v53, 8  ;;  %v1265_v53 = vrot.slane %v1251_v63, %v13196_v4  ;;  %v399_v63 = vcombine.high %v13266_v16, %v13270_v18 }
 0x2e3   :  { %v1330_v21 = vcombine.low %v1265_v53, %v1281_v37  ;;  %v1331_v44 = vcombine.high %v1265_v53, %v1281_v37 }
 0x2e5   :  { %4588 = vxpose.xlu0.b32.start.end [1/1] (short) (narrow) %v1712_v62, 8  ;;  %v1290_v62 = vrot.slane %v1282_v19, %v13206_v13  ;;  %v1338_v26 = vrot.slane %v1330_v21, %v13206_v13  ;;  %v1345_v14 = vrot.slane %v1331_v44, %v13206_v13  ;;  %v15361_v19 = vld [vmem:[#allocation27_spill] sm:$0xff]  ;;  %v413_v21 = vrot.slane %v399_v63, %v13196_v4 }
 0x2e7   :  { %912 = vrot.lane.b32.xlu1 %v13296_v59, %s12943_s15  ;;  %v1761_v59 = vrot.slane %v1747_v39, %v13196_v4  ;;  %v1347_v1 = vcombine.high %v1290_v62, %v1322_v43  ;;  %v1346_v34 = vcombine.low %v1290_v62, %v1322_v43  ;;  %v1378_v43 = vrot.slane %v1370_v27, %v13196_v4 }
 0x2e9   :  { %4652 = vxpose.xlu0.b32.start.end [1/1] (short) (narrow) %v1842_v29, 8  ;;  %v1826_v7 = vcombine.low %v1761_v59, %v1777_v51  ;;  %v1827_v49 = vcombine.high %v1761_v59, %v1777_v51  ;;  %v1297_v29 = vrot.slane %v1283_v58, %v13206_v13  ;;  %v1299_v51 = vcombine.high %v1233_v60, %v1249_v35  ;;  %v15363_v35 = vld [vmem:[#allocation29_spill] sm:$0xff] }
 0x2eb   :  { %v1834_v50 = vrot.slane %v1826_v7, %v13206_v13  ;;  %v1841_v47 = vrot.slane %v1827_v49, %v13206_v13  ;;  %v1348_v39 = vcombine.low %v1297_v29, %v1329_v40  ;;  %v1313_v59 = vrot.slane %v1299_v51, %v13206_v13 }
 0x2ec   :  { %v1711_v7 = vcombine.high %v13461_v15, %v13456_v0  ;;  %v1349_v22 = vcombine.high %v1297_v29, %v1329_v40  ;;  %v1351_v0 = vcombine.high %v1306_v56, %v1338_v26 }
 0x2ed   :  { %3402 = vxpose.xlu0.b32.start [1/2] (short) (narrow) %v3041_v9, 8  ;;  %v1846_v55 = vcombine.low %v1802_v48, %v1834_v50  ;;  %v1848_v11 = vcombine.low %v1809_v31, %v1841_v47  ;;  %v1350_v9 = vcombine.low %v1306_v56, %v1338_v26  ;;  %v1352_v2 = vcombine.low %v1313_v59, %v1345_v14 }
 0x2ee   :  { %v1847_v12 = vcombine.high %v1802_v48, %v1834_v50  ;;  %v1849_v20 = vcombine.high %v1809_v31, %v1841_v47  ;;  %v1353_v15 = vcombine.high %v1313_v59, %v1345_v14  ;;  %v398_v50 = vcombine.low %v13266_v16, %v13270_v18  ;;  %v15358_v47 = vld [vmem:[#allocation12_spill] sm:$0xff]  ;;  %v15360_v31 = vld [vmem:[#allocation14_spill] sm:$0xff] }
 0x2ef   :  { %v294_v17 = vcombine.low %v15360_v31, %v15359_v23  ;;  %v295_v41 = vcombine.high %v15360_v31, %v15359_v23  ;;  %v15364_v16 = vld [vmem:[#allocation28_spill] sm:$0xff] }
 0x2f0   :  { %v406_v37 = vrot.slane %v398_v50, %v13196_v4  ;;  %v1386_v18 = vcombine.low %v15364_v16, %v15363_v35  ;;  %v1387_v59 = vcombine.high %v15364_v16, %v15363_v35 }
 0x2f1   :  { %3403 = vxpose.xlu0.b32.end [2/2] (short) (narrow) %v3177_v5, 8  ;;  %v1845_v5 = vcombine.high %v1793_v30, %v13505_v10  ;;  %v302_v42 = vrot.slane %v294_v17, %v13196_v4 }
 0x2f2   :  { %v1401_v27 = vrot.slane %v1387_v59, %v13196_v4 }
 0x2f5   :  { %4716 = vxpose.xlu0.b32.start.end [1/1] (short) (narrow) %v1844_v38, 8  ;;  %v15355_v38 = vld [vmem:[#allocation15_spill] sm:$0xff] }
 0x2f6   :  { %v278_v48 = vcombine.low %v15356_v46, %v15355_v38  ;;  %v279_v36 = vcombine.high %v15356_v46, %v15355_v38 }
 0x2f8   :  { %v286_v58 = vrot.slane %v278_v48, %v13196_v4  ;;  %v13592_v62 = vrot.slane %v279_v36, %v13196_v4 }
 0x2f9   :  { %4780 = vxpose.xlu0.b32.start.end [1/1] (short) (narrow) %v1846_v55, 8  ;;  %v15357_v55 = vld [vmem:[#allocation21_spill] sm:$0xff] }
 0x2fa   :  { %v382_v54 = vcombine.low %v15358_v47, %v15357_v55  ;;  %v383_v53 = vcombine.high %v15358_v47, %v15357_v55 }
 0x2fc   :  { %v390_v60 = vrot.slane %v382_v54, %v13196_v4  ;;  %v397_v26 = vrot.slane %v383_v53, %v13196_v4 }
 0x2fd   :  { %4844 = vxpose.xlu0.b32.start.end [1/1] (short) (narrow) %v1848_v11, 8  ;;  %v1354_v11 = vcombine.low %v15362_v57, %v15361_v19 }
 0x2fe   :  { %v446_v51 = vcombine.low %v390_v60, %v406_v37  ;;  %v447_v56 = vcombine.high %v390_v60, %v406_v37  ;;  %v15365_v37 = vld [vmem:[#allocation23_spill] sm:$0xff] }
 0x2ff   :  { %v1362_v29 = vrot.slane %v1354_v11, %v13196_v4 }
 0x301   :  { %7383 = vxpose.xlu0.b32.start.end [1/1] (short) (narrow) %v1347_v1, 8  ;;  %v1418_v14 = vcombine.low %v1362_v29, %v1378_v43 }
 0x303   :  { %v1426_v38 = vrot.slane %v1418_v14, %v13206_v13 }
 0x305   :  { %7415 = vxpose.xlu0.b32.start.end [1/1] (short) (narrow) %v1348_v39, 8 }
 0x309   :  { %7479 = vxpose.xlu0.b32.start.end [1/1] (short) (narrow) %v1350_v9, 8  ;;  %v1371_v9 = vcombine.high %v15354_v33, %v13358_v28  ;;  %v1419_v33 = vcombine.high %v1362_v29, %v1378_v43 }
 0x30b   :  { %v1385_v50 = vrot.slane %v1371_v9, %v13196_v4  ;;  %v1433_v16 = vrot.slane %v1419_v33, %v13206_v13 }
 0x30d   :  { %7543 = vxpose.xlu0.b32.start.end [1/1] (short) (narrow) %v1352_v2, 8  ;;  %v1394_v2 = vrot.slane %v1386_v18, %v13196_v4 }
 0x310   :  { %4428 = vxpose.xlu1.b32.start.end [1/1] (short) (narrow) %v1707_v6, 8 }
 0x314   :  { %4556 = vxpose.xlu1.b32.start.end [1/1] (short) (narrow) %v1711_v7, 8  ;;  %v13608_v7 = vrot.slane %v295_v41, %v13196_v4  ;;  %v15366_v41 = vld [vmem:[#allocation22_spill] sm:$0xff] }
 0x315   :  { %v414_v43 = vcombine.low %v15366_v41, %v15365_v37 }
 0x316   :  { %v358_v48 = vcombine.low %v13592_v62, %v13608_v7  ;;  %v359_v11 = vcombine.high %v13592_v62, %v13608_v7 }
 0x318   :  { %4620 = vxpose.xlu1.b32.start.end [1/1] (short) (narrow) %v1713_v8, 8  ;;  %v462_v8 = vcombine.low %v397_v26, %v413_v21 }
 0x31a   :  { %v470_v36 = vrot.slane %v462_v8, %v13206_v13 }
 0x31c   :  { %4684 = vxpose.xlu1.b32.start.end [1/1] (short) (narrow) %v1843_v32, 8  ;;  %v463_v32 = vcombine.high %v397_v26, %v413_v21  ;;  %v15367_v21 = vld [vmem:[#allocation25_spill] sm:$0xff] }
 0x31e   :  { %v477_v55 = vrot.slane %v463_v32, %v13206_v13 }
 0x320   :  { %4748 = vxpose.xlu1.b32.start.end [1/1] (short) (narrow) %v1845_v5, 8  ;;  %v1355_v5 = vcombine.high %v15362_v57, %v15361_v19  ;;  %v12180_v60 = vcombine.high %v470_v36, %v477_v55 }
 0x322   :  { %v1369_v47 = vrot.slane %v1355_v5, %v13196_v4 }
 0x324   :  { %4812 = vxpose.xlu1.b32.start.end [1/1] (short) (narrow) %v1847_v12, 8  ;;  %v1434_v35 = vcombine.low %v1369_v47, %v1385_v50  ;;  %v1435_v9 = vcombine.high %v1369_v47, %v1385_v50 }
 0x326   :  { %v1449_v33 = vrot.slane %v1435_v9, %v13206_v13 }
 0x328   :  { %4876 = vxpose.xlu1.b32.start.end [1/1] (short) (narrow) %v1849_v20, 8  ;;  %v342_v20 = vcombine.low %v286_v58, %v302_v42 }
 0x32a   :  { %v13630_v19 = vrot.slane %v342_v20, %v13206_v13  ;;  %v13667_v20 = vrot.slane %v12180_v60, %v13196_v4 }
 0x32c   :  { %7351 = vxpose.xlu1.b32.start.end [1/1] (short) (narrow) %v1346_v34, 8 }
 0x330   :  { %7447 = vxpose.xlu1.b32.start.end [1/1] (short) (narrow) %v1349_v22, 8 }
 0x334   :  { %7511 = vxpose.xlu1.b32.start.end [1/1] (short) (narrow) %v1351_v0, 8  ;;  %v343_v0 = vcombine.high %v286_v58, %v302_v42  ;;  %v12178_v58 = vcombine.low %v470_v36, %v477_v55 }
 0x335   :  { %v13550_v45 = vpop.trf.xlu0  ;;  %v13554_v24 = vpop.trf.xlu1 }
 0x336   :  { %v13633_v57 = vrot.slane %v343_v0, %v13206_v13  ;;  %v13664_v5 = vrot.slane %v12178_v58, %v13196_v4 }
 0x338   :  { %7575 = vxpose.xlu1.b32.start.end [1/1] (short) (narrow) %v1353_v15, 8  ;;  %v454_v15 = vrot.slane %v446_v51, %v13206_v13  ;;  %v415_v51 = vcombine.high %v15366_v41, %v15365_v37  ;;  %v12169_v37 = vcombine.high %v13630_v19, %v13633_v57 }
 0x33d   :  { %v13552_v61 = vpop.trf.xlu0  ;;  %v13558_v30 = vpop.trf.xlu1 }
 0x33e   :  { %v3434_v59 = vcombine.low %v13550_v45, %v13552_v61 }
 0x345   :  { %v13556_v10 = vpop.trf.xlu0  ;;  %v13564_v52 = vpop.trf.xlu1 }
 0x346   :  { %v3467_v9 = vcombine.high %v13558_v30, %v13564_v52 }
 0x34d   :  { %v13560_v49 = vpop.trf.xlu0 }
 0x355   :  { %v13576_v3 = vpop.trf.xlu0 }
 0x359   :  { %v13596_v1 = vpop.trf.xlu0  ;;  %v913_v40 = vpop.permute.xlu1 %912 }
 0x35a   :  { %v1402_v44 = vcombine.low %v897_v25, %v913_v40  ;;  %v1403_v39 = vcombine.high %v897_v25, %v913_v40  ;;  %v461_v25 = vrot.slane %v447_v56, %v13206_v13  ;;  %v15368_v40 = vld [vmem:[#allocation24_spill] sm:$0xff] }
 0x35b   :  { %v430_v42 = vcombine.low %v15368_v40, %v15367_v21  ;;  %v431_v56 = vcombine.high %v15368_v40, %v15367_v21 }
 0x35c   :  { %v1410_v6 = vrot.slane %v1402_v44, %v13196_v4  ;;  %v1417_v28 = vrot.slane %v1403_v39, %v13196_v4  ;;  %v12174_v53 = vcombine.low %v454_v15, %v461_v25  ;;  %v12176_v18 = vcombine.high %v454_v15, %v461_v25 }
 0x35d   :  { %v13612_v12 = vpop.trf.xlu0  ;;  %v438_v7 = vrot.slane %v430_v42, %v13196_v4  ;;  %v13674_v15 = vrot.slane %v359_v11, %v13206_v13  ;;  %v422_v25 = vrot.slane %v414_v43, %v13196_v4  ;;  %v445_v50 = vrot.slane %v431_v56, %v13196_v4 }
 0x35e   :  { %v1450_v34 = vcombine.low %v1394_v2, %v1410_v6  ;;  %v1451_v22 = vcombine.high %v1394_v2, %v1410_v6  ;;  %v1466_v63 = vcombine.low %v1401_v27, %v1417_v28  ;;  %v1467_v44 = vcombine.high %v1401_v27, %v1417_v28 }
 0x35f   :  { %v13650_v14 = vrot.slane %v12174_v53, %v13196_v4  ;;  %v3450_v2 = vcombine.low %v13554_v24, %v13556_v10  ;;  %v1442_v6 = vrot.slane %v1434_v35, %v13206_v13  ;;  %v13661_v32 = vrot.slane %v12176_v18, %v13196_v4 }
 0x360   :  { %v1458_v46 = vrot.slane %v1450_v34, %v13206_v13  ;;  %v1465_v17 = vrot.slane %v1451_v22, %v13206_v13  ;;  %v1474_v26 = vrot.slane %v1466_v63, %v13206_v13  ;;  %v13670_v28 = vrot.slane %v358_v48, %v13206_v13 }
 0x361   :  { %v13626_v54 = vpop.trf.xlu0  ;;  %v1481_v0 = vrot.slane %v1467_v44, %v13206_v13  ;;  %v3442_v27 = vrot.slane %v3434_v59, %v13196_v4  ;;  %v429_v48 = vrot.slane %v415_v51, %v13196_v4  ;;  %v478_v36 = vcombine.low %v422_v25, %v438_v7 }
 0x362   :  { %v1483_v23 = vcombine.high %v1426_v38, %v1458_v46  ;;  %v1482_v31 = vcombine.low %v1426_v38, %v1458_v46  ;;  %v1485_v39 = vcombine.high %v1433_v16, %v1465_v17  ;;  %v1484_v62 = vcombine.low %v1433_v16, %v1465_v17 }
 0x363   :  { %v1487_v34 = vcombine.high %v1442_v6, %v1474_v26  ;;  %v1486_v22 = vcombine.low %v1442_v6, %v1474_v26  ;;  %v3458_v38 = vrot.slane %v3450_v2, %v13196_v4  ;;  %v3466_v46 = vcombine.low %v13558_v30, %v13564_v52 }
 0x364   :  { %7639 = vxpose.xlu1.b32.start.end [1/1] (short) (narrow) %v1483_v23, 8  ;;  %7607 = vxpose.xlu0.b32.start.end [1/1] (short) (narrow) %v1482_v31, 8  ;;  %v2322_v47 = vcombine.low %v13650_v14, %v13661_v32  ;;  %v2354_v63 = vcombine.low %v13664_v5, %v13667_v20  ;;  %v479_v23 = vcombine.high %v422_v25, %v438_v7 }
 0x365   :  { %v13642_v29 = vpop.trf.xlu0  ;;  %v1489_v17 = vcombine.high %v1449_v33, %v1481_v0  ;;  %v1488_v11 = vcombine.low %v1449_v33, %v1481_v0  ;;  %v12167_v53 = vcombine.low %v13630_v19, %v13633_v57  ;;  %v494_v41 = vcombine.low %v429_v48, %v445_v50 }
 0x366   :  { %v495_v43 = vcombine.high %v429_v48, %v445_v50  ;;  %v3474_v35 = vrot.slane %v3466_v46, %v13196_v4  ;;  %v3498_v18 = vcombine.low %v3442_v27, %v3458_v38  ;;  %v12171_v58 = vcombine.low %v13670_v28, %v13674_v15 }
 0x367   :  { %v486_v60 = vrot.slane %v478_v36, %v13206_v13  ;;  %v2330_v21 = vrot.slane %v2322_v47, %v13206_v13  ;;  %v2362_v40 = vrot.slane %v2354_v63, %v13206_v13  ;;  %v493_v19 = vrot.slane %v479_v23, %v13206_v13  ;;  %v15369_v36 = vld [vmem:[#allocation17_spill] sm:$0xff] }
 0x368   :  { %7703 = vxpose.xlu1.b32.start.end [1/1] (short) (narrow) %v1485_v39, 8  ;;  %7671 = vxpose.xlu0.b32.start.end [1/1] (short) (narrow) %v1484_v62, 8  ;;  %v502_v39 = vrot.slane %v494_v41, %v13206_v13  ;;  %v509_v62 = vrot.slane %v495_v43, %v13206_v13  ;;  %v3435_v26 = vcombine.high %v13550_v45, %v13552_v61 }
 0x369   :  { %v13658_v8 = vpop.trf.xlu0  ;;  %v3451_v51 = vcombine.high %v13554_v24, %v13556_v10  ;;  %v3499_v56 = vcombine.high %v3442_v27, %v3458_v38  ;;  %v3506_v59 = vrot.slane %v3498_v18, %v13206_v13  ;;  %v12173_v2 = vcombine.high %v13670_v28, %v13674_v15 }
 0x36a   :  { %v2323_v6 = vcombine.high %v13650_v14, %v13661_v32  ;;  %v2355_v45 = vcombine.high %v13664_v5, %v13667_v20  ;;  %v2386_v61 = vcombine.low %v2330_v21, %v2362_v40  ;;  %v12175_v7 = vcombine.low %v486_v60, %v493_v19 }
 0x36b   :  { %v12177_v52 = vcombine.high %v486_v60, %v493_v19  ;;  %v13721_v0 = vrot.slane %v3435_v26, %v13196_v4  ;;  %v3465_v28 = vrot.slane %v3451_v51, %v13196_v4  ;;  %v3481_v14 = vrot.slane %v3467_v9, %v13196_v4 }
 0x36c   :  { %7767 = vxpose.xlu1.b32.start.end [1/1] (short) (narrow) %v1487_v34, 8  ;;  %7735 = vxpose.xlu0.b32.start.end [1/1] (short) (narrow) %v1486_v22, 8  ;;  %v12179_v34 = vcombine.low %v502_v39, %v509_v62  ;;  %v12181_v22 = vcombine.high %v502_v39, %v509_v62  ;;  %v3513_v5 = vrot.slane %v3499_v56, %v13206_v13 }
 0x36d   :  { %v3418_v55 = vpop.trf.xlu0  ;;  %v2137_v20 = vrot.slane %v12167_v53, %v13196_v4  ;;  %v2153_v15 = vrot.slane %v12169_v37, %v13196_v4  ;;  %v2169_v25 = vrot.slane %v12171_v58, %v13196_v4  ;;  %v2185_v50 = vrot.slane %v12173_v2, %v13196_v4 }
 0x36e   :  { %v3482_v31 = vcombine.low %v13560_v49, %v3418_v55  ;;  %v3483_v57 = vcombine.high %v13560_v49, %v3418_v55  ;;  %v2337_v38 = vrot.slane %v2323_v6, %v13206_v13  ;;  %v2273_v46 = vrot.slane %v12175_v7, %v13196_v4  ;;  %v15370_v55 = vld [vmem:[#allocation18_spill] sm:$0xff] }
 0x36f   :  { %v2387_v48 = vcombine.high %v2330_v21, %v2362_v40  ;;  %v15371_v47 = vcombine.high %v15369_v36, %v15370_v55  ;;  %v2369_v63 = vrot.slane %v2355_v45, %v13206_v13  ;;  %v2289_v23 = vrot.slane %v12177_v52, %v13196_v4 }
 0x370   :  { %v3490_v16 = vrot.slane %v3482_v31, %v13196_v4  ;;  %7831 = vxpose.xlu1.b32.start.end [1/1] (short) (narrow) %v1489_v17, 8  ;;  %7799 = vxpose.xlu0.b32.start.end [1/1] (short) (narrow) %v1488_v11, 8  ;;  %v3497_v24 = vrot.slane %v3483_v57, %v13196_v4  ;;  %v2305_v31 = vrot.slane %v12179_v34, %v13196_v4 }
 0x371   :  { %v2321_v17 = vrot.slane %v12181_v22, %v13196_v4  ;;  %v3514_v11 = vcombine.low %v13721_v0, %v3465_v28  ;;  %v2202_v53 = vcombine.low %v2137_v20, %v2153_v15  ;;  %v2234_v37 = vcombine.low %v2169_v25, %v2185_v50 }
 0x372   :  { %v3531_v42 = vcombine.high %v3474_v35, %v3490_v16  ;;  %v3530_v44 = vcombine.low %v3474_v35, %v3490_v16  ;;  %v3546_v33 = vcombine.low %v3481_v14, %v3497_v24  ;;  %v15372_v35 = vld [vmem:[#allocation19_spill] sm:$0xff]  ;;  %v15373_v16 = vld [vmem:[#allocation20_spill] sm:$0xff]  ;;  %v2338_v58 = vcombine.low %v2273_v46, %v2289_v23 }
 0x373   :  { %v15374_v18 = vcombine.low %v15372_v35, %v15373_v16  ;;  %v2370_v60 = vcombine.low %v2305_v31, %v2321_v17  ;;  %v2388_v21 = vcombine.low %v2337_v38, %v2369_v63  ;;  %v3522_v40 = vrot.slane %v3514_v11, %v13206_v13 }
 0x374   :  { %v3538_v49 = vrot.slane %v3530_v44, %v13206_v13  ;;  %v3545_v30 = vrot.slane %v3531_v42, %v13206_v13  ;;  %v3554_v43 = vrot.slane %v3546_v33, %v13206_v13  ;;  %v2210_v19 = vrot.slane %v2202_v53, %v13206_v13 }
 0x375   :  { %v2242_v57 = vrot.slane %v2234_v37, %v13206_v13  ;;  %v3547_v42 = vcombine.high %v3481_v14, %v3497_v24  ;;  %v15375_v39 = vcombine.high %v15372_v35, %v15373_v16  ;;  %v3515_v62 = vcombine.high %v13721_v0, %v3465_v28 }
 0x376   :  { %v3562_v10 = vcombine.low %v3506_v59, %v3538_v49  ;;  %v3563_v32 = vcombine.high %v3506_v59, %v3538_v49  ;;  %v3564_v27 = vcombine.low %v3513_v5, %v3545_v30  ;;  %v3565_v41 = vcombine.high %v3513_v5, %v3545_v30 }
 0x377   :  { %v3566_v44 = vcombine.low %v3522_v40, %v3554_v43  ;;  %v2389_v26 = vcombine.high %v2337_v38, %v2369_v63  ;;  %v2346_v51 = vrot.slane %v2338_v58, %v13206_v13  ;;  %v2378_v56 = vrot.slane %v2370_v60, %v13206_v13 }
 0x378   :  { %12423 = vmatprep.subr.mxu1 %v3562_v10  ;;  %v2254_v9 = vcombine.low %v2210_v19, %v2242_v57  ;;  %v2203_v59 = vcombine.high %v2137_v20, %v2153_v15  ;;  %v2235_v49 = vcombine.high %v2169_v25, %v2185_v50  ;;  %v3567_v2 = vcombine.high %v3522_v40, %v3554_v43  ;;  %v13773_v15 = vpop.trf.xlu0 }
 0x379   :  { %12424 = vmatpush3.msra.mxu1 %v3562_v10  ;;  %v3561_v6 = vrot.slane %v3547_v42, %v13206_v13  ;;  %v2339_v45 = vcombine.high %v2273_v46, %v2289_v23  ;;  %v2390_v7 = vcombine.low %v2346_v51, %v2378_v56  ;;  %v3529_v24 = vrot.slane %v3515_v62, %v13206_v13 }
 0x37a   :  { %12426 = vmatmul.mubr.msk.f32.vlgmr.msra.gmra.mrb[0].mxu1 %vm3570_vm1, %v2386_v61  ;;  %12428 = vmatprep.subr.mxu1 %v3563_v32  ;;  %v2371_v61 = vcombine.high %v2305_v31, %v2321_v17  ;;  %v2255_v10 = vcombine.high %v2210_v19, %v2242_v57  ;;  %v2217_v30 = vrot.slane %v2203_v59, %v13206_v13 }
 0x37b   :  { %12429 = vmatpush3.msra.mxu1 %v3563_v32  ;;  %12430 = vmatprep.mubr.msk.f32.mxu1 %vm3570_vm1, %v15371_v47  ;;  %v2249_v52 = vrot.slane %v2235_v49, %v13206_v13  ;;  %v3568_v34 = vcombine.low %v3529_v24, %v3561_v6  ;;  %v2391_v22 = vcombine.high %v2346_v51, %v2378_v56 }
 0x37c   :  { %12433 = vmatprep.subr.mxu1 %v3564_v27  ;;  %v2353_v0 = vrot.slane %v2339_v45, %v13206_v13  ;;  %v2385_v28 = vrot.slane %v2371_v61, %v13206_v13  ;;  %v3569_v32 = vcombine.high %v3529_v24, %v3561_v6  ;;  %v4908_v38 = vcombine.low %v13576_v3, %v13596_v1  ;;  %v4796_v46 = vpop.trf.xlu0 }
 0x37d   :  { %v2256_v14 = vcombine.low %v2217_v30, %v2249_v52  ;;  %v2257_v25 = vcombine.high %v2217_v30, %v2249_v52  ;;  %v5044_v40 = vcombine.low %v13658_v8, %v13773_v15  ;;  %v4909_v51 = vcombine.high %v13576_v3, %v13596_v1 }
 0x37e   :  { %12431 = vmatmul.mubr.msk.f32.vlgmr.msra.gmra.mrb[2].mxu1 %vm3570_vm1, %v2387_v48  ;;  %v2392_v20 = vcombine.low %v2353_v0, %v2385_v28  ;;  %v4940_v48 = vcombine.low %v13626_v54, %v13642_v29  ;;  %v4916_v47 = vrot.slane %v4908_v38, %v13196_v4  ;;  %v4941_v49 = vcombine.high %v13626_v54, %v13642_v29 }
 0x37f   :  { %12434 = vmatpush3.msra.mxu1 %v3564_v27  ;;  %12435 = vmatprep.mubr.msk.f32.mxu1 %vm3570_vm1, %v15374_v18  ;;  %v2393_v27 = vcombine.high %v2353_v0, %v2385_v28 }
 0x380   :  { %12438 = vmatprep.subr.mxu1 %v3565_v41  ;;  %v4948_v23 = vrot.slane %v4940_v48, %v13196_v4  ;;  %v4860_v11 = vpop.trf.xlu0  ;;  %v13819_v52 = vrot.slane %v4941_v49, %v13196_v4 }
 0x381   :  { %v5076_v19 = vcombine.low %v4796_v46, %v4860_v11  ;;  %v5077_v3 = vcombine.high %v4796_v46, %v4860_v11 }
 0x382   :  { %12436 = vmatmul.mubr.msk.f32.vlgmr.msra.gmra.mrb[4].mxu1 %vm3570_vm1, %v2388_v21 }
 0x383   :  { %12439 = vmatpush3.msra.mxu1 %v3565_v41  ;;  %12440 = vmatprep.mubr.msk.f32.mxu1 %vm3570_vm1, %v15375_v39  ;;  %v5052_v39 = vrot.slane %v5044_v40, %v13196_v4  ;;  %v5084_v62 = vrot.slane %v5076_v19, %v13196_v4 }
 0x384   :  { %12443 = vmatprep.subr.mxu1 %v3566_v44  ;;  %v13792_v35 = vpop.trf.xlu0 }
 0x386   :  { %12441 = vmatmul.mubr.msk.f32.vlgmr.msra.gmra.mrb[6].mxu1 %vm3570_vm1, %v2389_v26 }
 0x387   :  { %12444 = vmatpush3.msra.mxu1 %v3566_v44  ;;  %12445 = vmatprep.mubr.msk.f32.mxu1 %vm3570_vm1, %v2254_v9 }
 0x388   :  { %12448 = vmatprep.subr.mxu1 %v3567_v2  ;;  %v13797_v57 = vpop.trf.xlu0 }
 0x38a   :  { %12446 = vmatmul.mubr.msk.f32.vlgmr.msra.gmra.mrb[8].mxu1 %vm3570_vm1, %v2390_v7 }
 0x38b   :  { %12449 = vmatpush3.msra.mxu1 %v3567_v2  ;;  %12450 = vmatprep.mubr.msk.f32.mxu1 %vm3570_vm1, %v2255_v10  ;;  %v13814_v10 = vrot.slane %v4909_v51, %v13196_v4 }
 0x38c   :  { %12453 = vmatprep.subr.mxu1 %v3568_v34  ;;  %v13805_v59 = vpop.trf.xlu0 }
 0x38e   :  { %12451 = vmatmul.mubr.msk.f32.vlgmr.msra.gmra.mrb[10].mxu1 %vm3570_vm1, %v2391_v22 }
 0x38f   :  { %12454 = vmatpush3.msra.mxu1 %v3568_v34  ;;  %12455 = vmatprep.mubr.msk.f32.mxu1 %vm3570_vm1, %v2256_v14 }
 0x390   :  { %12458 = vmatprep.subr.mxu1 %v3569_v32  ;;  %v13771_v5 = vpop.trf.xlu1 }
 0x391   :  { %v4924_v50 = vcombine.low %v13771_v5, %v13612_v12  ;;  %v4925_v7 = vcombine.high %v13771_v5, %v13612_v12  ;;  %v5045_v5 = vcombine.high %v13658_v8, %v13773_v15 }
 0x392   :  { %12456 = vmatmul.mubr.msk.f32.vlgmr.msra.gmra.mrb[12].mxu1 %vm3570_vm1, %v2392_v20 }
 0x393   :  { %12459 = vmatpush3.msra.mxu1 %v3569_v32  ;;  %12460 = vmatprep.mubr.msk.f32.mxu1 %vm3570_vm1, %v2257_v25  ;;  %v4932_v36 = vrot.slane %v4924_v50, %v13196_v4  ;;  %v7559_v32 = vpop.trf.xlu0  ;;  %v13832_v20 = vrot.slane %v4925_v7, %v13196_v4  ;;  %v5059_v11 = vrot.slane %v5045_v5, %v13196_v4 }
 0x394   :  { %v4572_v33 = vpop.trf.xlu1 }
 0x395   :  { %v4972_v31 = vcombine.low %v4916_v47, %v4932_v36  ;;  %v4973_v24 = vcombine.high %v4916_v47, %v4932_v36  ;;  %v7896_v36 = vcombine.high %v13805_v59, %v7559_v32 }
 0x396   :  { %12461 = vmatmul.mubr.msk.f32.vlgmr.msra.gmra.mrb[14].mxu1 %vm3570_vm1, %v2393_v27  ;;  %v13837_v27 = vrot.slane %v5077_v3, %v13196_v4 }
 0x397   :  { %v4980_v41 = vrot.slane %v4972_v31, %v13206_v13  ;;  %v4987_v50 = vrot.slane %v4973_v24, %v13206_v13  ;;  %v4988_v31 = vcombine.low %v13814_v10, %v13832_v20 }
 0x398   :  { %v4636_v55 = vpop.trf.xlu1 }
 0x399   :  { %v4956_v63 = vcombine.low %v4572_v33, %v4636_v55  ;;  %v4957_v2 = vcombine.high %v4572_v33, %v4636_v55 }
 0x39b   :  { %v4964_v17 = vrot.slane %v4956_v63, %v13196_v4  ;;  %v13822_v54 = vrot.slane %v4957_v2, %v13196_v4 }
 0x39c   :  { %v13788_v53 = vpop.trf.xlu1 }
 0x39d   :  { %v5004_v37 = vcombine.low %v4948_v23, %v4964_v17  ;;  %v5005_v6 = vcombine.high %v4948_v23, %v4964_v17  ;;  %v5020_v46 = vcombine.low %v13819_v52, %v13822_v54 }
 0x39f   :  { %v5012_v43 = vrot.slane %v5004_v37, %v13206_v13  ;;  %v5019_v29 = vrot.slane %v5005_v6, %v13206_v13  ;;  %v5028_v37 = vrot.slane %v5020_v46, %v13206_v13 }
 0x3a0   :  { %v4764_v16 = vpop.trf.xlu1 }
 0x3a1   :  { %v5037_v18 = vcombine.high %v4980_v41, %v5012_v43  ;;  %v5036_v58 = vcombine.low %v4980_v41, %v5012_v43  ;;  %v5060_v60 = vcombine.low %v13788_v53, %v4764_v16  ;;  %v5061_v25 = vcombine.high %v13788_v53, %v4764_v16 }
 0x3a2   :  { %v5038_v8 = vcombine.low %v4987_v50, %v5019_v29  ;;  %v5039_v47 = vcombine.high %v4987_v50, %v5019_v29  ;;  %v7895_v43 = vcombine.low %v13805_v59, %v7559_v32  ;;  %v7910_v16 = vrot.slane %v7896_v36, %v13196_v4 }
 0x3a3   :  { %5212 = vxpose.xlu0.b32.start [1/2] (short) (narrow) %v5037_v18, 8  ;;  %5180 = vxpose.xlu1.b32.start [1/2] (short) (narrow) %v5036_v58, 8  ;;  %v5068_v42 = vrot.slane %v5060_v60, %v13196_v4  ;;  %v5075_v17 = vrot.slane %v5061_v25, %v13196_v4 }
 0x3a4   :  { %v4828_v21 = vpop.trf.xlu1  ;;  %v13868_v49 = vrot.slane %v7895_v43, %v13196_v4 }
 0x3a5   :  { %v5108_v56 = vcombine.low %v5052_v39, %v5068_v42  ;;  %v5109_v33 = vcombine.high %v5052_v39, %v5068_v42  ;;  %v5124_v19 = vcombine.low %v5059_v11, %v5075_v17  ;;  %v4996_v42 = vrot.slane %v4988_v31, %v13206_v13 }
 0x3a7   :  { %v5116_v1 = vrot.slane %v5108_v56, %v13206_v13  ;;  %v5123_v53 = vrot.slane %v5109_v33, %v13206_v13  ;;  %v4989_v56 = vcombine.high %v13814_v10, %v13832_v20  ;;  %v5040_v59 = vcombine.low %v4996_v42, %v5028_v37 }
 0x3a8   :  { %v4892_v44 = vpop.trf.xlu1 }
 0x3a9   :  { %v5092_v26 = vcombine.low %v4828_v21, %v4892_v44  ;;  %v5093_v22 = vcombine.high %v4828_v21, %v4892_v44 }
 0x3ab   :  { %v5100_v9 = vrot.slane %v5092_v26, %v13196_v4  ;;  %v5107_v55 = vrot.slane %v5093_v22, %v13196_v4 }
 0x3ac   :  { %v13809_v45 = vpop.trf.xlu1 }
 0x3ad   :  { %v5140_v61 = vcombine.low %v5084_v62, %v5100_v9  ;;  %v7864_v12 = vcombine.high %v13809_v45, %v13797_v57  ;;  %v5141_v0 = vcombine.high %v5084_v62, %v5100_v9  ;;  %v5156_v58 = vcombine.low %v13837_v27, %v5107_v55 }
 0x3ae   :  { %v7863_v44 = vcombine.low %v13809_v45, %v13797_v57  ;;  %v5021_v9 = vcombine.high %v13819_v52, %v13822_v54  ;;  %v5041_v57 = vcombine.high %v4996_v42, %v5028_v37  ;;  %v5157_v52 = vcombine.high %v13837_v27, %v5107_v55 }
 0x3af   :  { %v5148_v30 = vrot.slane %v5140_v61, %v13206_v13  ;;  %v7878_v15 = vrot.slane %v7864_v12, %v13196_v4  ;;  %v5155_v63 = vrot.slane %v5141_v0, %v13206_v13  ;;  %v5164_v2 = vrot.slane %v5156_v58, %v13206_v13 }
 0x3b0   :  { %v13827_v34 = vpop.trf.xlu1  ;;  %v13873_v61 = vrot.slane %v7863_v44, %v13196_v4  ;;  %v5035_v12 = vrot.slane %v5021_v9, %v13206_v13  ;;  %v5171_v50 = vrot.slane %v5157_v52, %v13206_v13 }
 0x3b1   :  { %v5173_v28 = vcombine.high %v5116_v1, %v5148_v30  ;;  %v5172_v14 = vcombine.low %v5116_v1, %v5148_v30  ;;  %v7880_v38 = vcombine.high %v13792_v35, %v13827_v34  ;;  %v5174_v60 = vcombine.low %v5123_v53, %v5155_v63 }
 0x3b2   :  { %v5175_v21 = vcombine.high %v5123_v53, %v5155_v63  ;;  %v7879_v62 = vcombine.low %v13792_v35, %v13827_v34  ;;  %v5132_v35 = vrot.slane %v5124_v19, %v13206_v13  ;;  %v5003_v34 = vrot.slane %v4989_v56, %v13206_v13 }
 0x3b3   :  { %5213 = vxpose.xlu0.b32.end [2/2] (short) (narrow) %v5173_v28, 8  ;;  %5181 = vxpose.xlu1.b32.end [2/2] (short) (narrow) %v5172_v14, 8  ;;  %v7894_v23 = vrot.slane %v7880_v38, %v13196_v4  ;;  %v5125_v14 = vcombine.high %v5059_v11, %v5075_v17 }
 0x3b4   :  { %v7527_v48 = vpop.trf.xlu1  ;;  %v13882_v10 = vrot.slane %v7879_v62, %v13196_v4  ;;  %v5176_v54 = vcombine.low %v5132_v35, %v5164_v2  ;;  %v5177_v29 = vcombine.high %v5132_v35, %v5164_v2  ;;  %v5042_v20 = vcombine.low %v5003_v34, %v5035_v12 }
 0x3b5   :  { %v7944_v41 = vcombine.high %v7878_v15, %v7894_v23  ;;  %v7943_v39 = vcombine.low %v7878_v15, %v7894_v23  ;;  %v5043_v25 = vcombine.high %v5003_v34, %v5035_v12  ;;  %v5139_v33 = vrot.slane %v5125_v14, %v13206_v13 }
 0x3b6   :  { %v7927_v32 = vcombine.low %v13873_v61, %v13882_v10 }
 0x3b7   :  { %5244 = vxpose.xlu0.b32.start [1/2] (short) (narrow) %v5038_v8, 8  ;;  %5276 = vxpose.xlu1.b32.start [1/2] (short) (narrow) %v5039_v47, 8  ;;  %v13876_v7 = vrot.slane %v7943_v39, %v13206_v13  ;;  %v13879_v24 = vrot.slane %v7944_v41, %v13206_v13  ;;  %v5178_v46 = vcombine.low %v5139_v33, %v5171_v50 }
 0x3b8   :  { %v7591_v18 = vpop.trf.xlu1  ;;  %v7935_v27 = vrot.slane %v7927_v32, %v13206_v13  ;;  %v5179_v8 = vcombine.high %v5139_v33, %v5171_v50 }
 0x3b9   :  { %v7912_v40 = vcombine.high %v7527_v48, %v7591_v18  ;;  %v7911_v26 = vcombine.low %v7527_v48, %v7591_v18 }
 0x3bb   :  { %5245 = vxpose.xlu0.b32.end [2/2] (short) (narrow) %v5174_v60, 8  ;;  %5277 = vxpose.xlu1.b32.end [2/2] (short) (narrow) %v5175_v21, 8  ;;  %v7926_v51 = vrot.slane %v7912_v40, %v13196_v4  ;;  %v13885_v3 = vrot.slane %v7911_v26, %v13196_v4 }
 0x3bd   :  { %v7975_v6 = vcombine.low %v7910_v16, %v7926_v51  ;;  %v7976_v45 = vcombine.high %v7910_v16, %v7926_v51  ;;  %v7959_v5 = vcombine.low %v13868_v49, %v13885_v3 }
 0x3bf   :  { %5308 = vxpose.xlu0.b32.start [1/2] (short) (narrow) %v5040_v59, 8  ;;  %5340 = vxpose.xlu1.b32.start [1/2] (short) (narrow) %v5041_v57, 8  ;;  %v13888_v1 = vrot.slane %v7975_v6, %v13206_v13  ;;  %v13891_v30 = vrot.slane %v7976_v45, %v13206_v13  ;;  %v7967_v38 = vrot.slane %v7959_v5, %v13206_v13 }
 0x3c0   :  { %v7928_v59 = vcombine.high %v13873_v61, %v13882_v10  ;;  %v7960_v57 = vcombine.high %v13868_v49, %v13885_v3 }
 0x3c1   :  { %v7996_v22 = vcombine.high %v13876_v7, %v13888_v1  ;;  %v7997_v0 = vcombine.low %v13879_v24, %v13891_v30  ;;  %v7992_v15 = vcombine.high %v7935_v27, %v7967_v38  ;;  %v7991_v48 = vcombine.low %v7935_v27, %v7967_v38 }
 0x3c2   :  { %v7942_v49 = vrot.slane %v7928_v59, %v13206_v13  ;;  %v7974_v10 = vrot.slane %v7960_v57, %v13206_v13  ;;  %v7995_v50 = vcombine.low %v13876_v7, %v13888_v1 }
 0x3c3   :  { %5309 = vxpose.xlu0.b32.end [2/2] (short) (narrow) %v5176_v54, 8  ;;  %5341 = vxpose.xlu1.b32.end [2/2] (short) (narrow) %v5177_v29, 8 }
 0x3c4   :  { %v7993_v33 = vcombine.low %v7942_v49, %v7974_v10 }
 0x3c7   :  { %5372 = vxpose.xlu0.b32.start [1/2] (short) (narrow) %v5042_v20, 8  ;;  %5404 = vxpose.xlu1.b32.start [1/2] (short) (narrow) %v5043_v25, 8 }
 0x3cb   :  { %5373 = vxpose.xlu0.b32.end [2/2] (short) (narrow) %v5178_v46, 8  ;;  %5405 = vxpose.xlu1.b32.end [2/2] (short) (narrow) %v5179_v8, 8 }
 0x3cf   :  { %8167 = vxpose.xlu1.b32.start [1/2] (short) (narrow) %v7992_v15, 8  ;;  %8135 = vxpose.xlu0.b32.start [1/2] (short) (narrow) %v7991_v48, 8  ;;  %v7994_v15 = vcombine.high %v7942_v49, %v7974_v10 }
 0x3e4   :  { %v7623_v36 = vpop.trf.xlu0  ;;  %v7655_v55 = vpop.trf.xlu1 }
 0x3e8   :  { %v7687_v47 = vpop.trf.xlu0  ;;  %v7719_v63 = vpop.trf.xlu1 }
 0x3e9   :  { %v7999_v23 = vcombine.low %v7623_v36, %v7687_v47  ;;  %v8000_v31 = vcombine.high %v7623_v36, %v7687_v47  ;;  %v8015_v17 = vcombine.low %v7655_v55, %v7719_v63  ;;  %v8016_v11 = vcombine.high %v7655_v55, %v7719_v63  ;;  %v15376_v36 = vld [vmem:[#allocation8_spill] sm:$0xff]  ;;  %v15377_v47 = vld [vmem:[#allocation10_spill] sm:$0xff] }
 0x3ea   :  { %v13951_v55 = vmul.f32 0.35355338, %v15376_v36  ;;  %v13958_v63 = vmul.f32 0.35355338, %v15377_v47 }
 0x3eb   :  { %v8014_v53 = vrot.slane %v8000_v31, %v13196_v4  ;;  %v8030_v37 = vrot.slane %v8016_v11, %v13196_v4  ;;  %v8007_v41 = vrot.slane %v7999_v23, %v13196_v4  ;;  %v8023_v43 = vrot.slane %v8015_v17, %v13196_v4 }
 0x3ec   :  { %v7751_v16 = vpop.trf.xlu0  ;;  %v7783_v18 = vpop.trf.xlu1 }
 0x3ed   :  { %v8080_v58 = vcombine.high %v8014_v53, %v8030_v37  ;;  %v8063_v60 = vcombine.low %v8007_v41, %v8023_v43  ;;  %v8079_v62 = vcombine.low %v8014_v53, %v8030_v37  ;;  %v8064_v3 = vcombine.high %v8007_v41, %v8023_v43 }
 0x3ef   :  { %v8071_v35 = vrot.slane %v8063_v60, %v13206_v13  ;;  %v13924_v52 = vrot.slane %v8079_v62, %v13206_v13  ;;  %v13927_v54 = vrot.slane %v8080_v58, %v13206_v13  ;;  %v8078_v27 = vrot.slane %v8064_v3, %v13206_v13 }
 0x3f0   :  { %v7815_v21 = vpop.trf.xlu0  ;;  %v7847_v40 = vpop.trf.xlu1 }
 0x3f1   :  { %v8031_v19 = vcombine.low %v7751_v16, %v7815_v21  ;;  %v8032_v42 = vcombine.high %v7751_v16, %v7815_v21  ;;  %v8047_v44 = vcombine.low %v7783_v18, %v7847_v40  ;;  %v8048_v39 = vcombine.high %v7783_v18, %v7847_v40 }
 0x3f3   :  { %v8039_v26 = vrot.slane %v8031_v19, %v13196_v4  ;;  %v8046_v51 = vrot.slane %v8032_v42, %v13196_v4  ;;  %v8055_v56 = vrot.slane %v8047_v44, %v13196_v4  ;;  %v8062_v9 = vrot.slane %v8048_v39, %v13196_v4 }
 0x3f5   :  { %v8095_v2 = vcombine.low %v8039_v26, %v8055_v56  ;;  %v8111_v6 = vcombine.low %v8046_v51, %v8062_v9  ;;  %v8112_v45 = vcombine.high %v8046_v51, %v8062_v9  ;;  %v8096_v34 = vcombine.high %v8039_v26, %v8055_v56 }
 0x3f7   :  { %v8103_v29 = vrot.slane %v8095_v2, %v13206_v13  ;;  %v13931_v12 = vrot.slane %v8111_v6, %v13206_v13  ;;  %v13934_v61 = vrot.slane %v8112_v45, %v13206_v13  ;;  %v8110_v38 = vrot.slane %v8096_v34, %v13206_v13 }
 0x3f9   :  { %v8128_v14 = vcombine.high %v8071_v35, %v8103_v29  ;;  %v8127_v32 = vcombine.low %v8071_v35, %v8103_v29  ;;  %v8132_v5 = vcombine.high %v13924_v52, %v13931_v12  ;;  %v8133_v20 = vcombine.low %v13927_v54, %v13934_v61 }
 0x3fa   :  { %v8131_v46 = vcombine.low %v13924_v52, %v13931_v12  ;;  %v8129_v8 = vcombine.low %v8078_v27, %v8110_v38  ;;  %v8130_v48 = vcombine.high %v8078_v27, %v8110_v38 }
 0x3fb   :  { %8168 = vxpose.xlu1.b32.end [2/2] (short) (narrow) %v8128_v14, 8  ;;  %8136 = vxpose.xlu0.b32.end [2/2] (short) (narrow) %v8127_v32, 8 }
 0x3ff   :  { %8263 = vxpose.xlu1.b32.start [1/2] (short) (narrow) %v7995_v50, 8  ;;  %8199 = vxpose.xlu0.b32.start [1/2] (short) (narrow) %v7993_v33, 8 }
 0x403   :  { %8264 = vxpose.xlu1.b32.end [2/2] (short) (narrow) %v8131_v46, 8  ;;  %8200 = vxpose.xlu0.b32.end [2/2] (short) (narrow) %v8129_v8, 8 }
 0x407   :  { %8231 = vxpose.xlu0.b32.start [1/2] (short) (narrow) %v7994_v15, 8 }
 0x40b   :  { %8232 = vxpose.xlu0.b32.end [2/2] (short) (narrow) %v8130_v48, 8 }
 0x421   :  { %178 = vrot.lane.b32.xlu1 %v13951_v55, %s12939_s11 }
 0x425   :  { %190 = vrot.lane.b32.xlu1 %v13951_v55, %s12936_s1 }
 0x429   :  { %168 = vrot.lane.b32.xlu1 %v13958_v63, %s12937_s0 }
 0x42d   :  { %192 = vrot.lane.b32.xlu1 %v13958_v63, %s12936_s1 }
 0x42f   :  { %v14034_v3 = vpop.trf.xlu1  ;;  %v14050_v50 = vpop.trf.xlu0 }
 0x431   :  { %214 = vrot.lane.b32.xlu1 %v13951_v55, %s12941_s13 }
 0x435   :  { %238 = vrot.lane.b32.xlu1 %v13951_v55, %s12942_s14 }
 0x437   :  { %v14042_v34 = vpop.trf.xlu1  ;;  %v14054_v27 = vpop.trf.xlu0 }
 0x43f   :  { %v14044_v14 = vpop.trf.xlu1  ;;  %v14058_v1 = vpop.trf.xlu0 }
 0x447   :  { %v14048_v32 = vpop.trf.xlu1  ;;  %v14062_v52 = vpop.trf.xlu0 }
 0x44d   :  { %v13968_v23 = vpop.f32.mrb[0].mxu1 }
 0x44e   :  { %v13970_v31 = vpop.f32.mrb[1].mxu1  ;;  %v4223_v18 = vsel %vm4219_vm2, %v13968_v23, -inf }
 0x44f   :  { %v4220_v17 = vsel %vm4219_vm2, %v13970_v31, -inf }
 0x450   :  { %4221 = vmax.xlane.f32.xlu0 %v4220_v17 }
 0x451   :  { %v13974_v11 = vpop.f32.mrb[2].mxu1 }
 0x452   :  { %v13976_v53 = vpop.f32.mrb[3].mxu1  ;;  %v4229_v37 = vsel %vm4219_vm2, %v13974_v11, -inf }
 0x453   :  { %v4226_v16 = vsel %vm4219_vm2, %v13976_v53, -inf }
 0x454   :  { %4230 = vmax.xlane.f32.xlu0 %v4229_v37 }
 0x455   :  { %v13980_v41 = vpop.f32.mrb[4].mxu1 }
 0x456   :  { %v13982_v43 = vpop.f32.mrb[5].mxu1  ;;  %v4235_v21 = vsel %vm4219_vm2, %v13980_v41, -inf }
 0x457   :  { %v4232_v40 = vsel %vm4219_vm2, %v13982_v43, -inf }
 0x458   :  { %4227 = vmax.xlane.f32.xlu0 %v4226_v16 }
 0x459   :  { %v13988_v58 = vpop.f32.mrb[6].mxu1  ;;  %4224 = vmax.xlane.f32.xlu1 %v4223_v18 }
 0x45a   :  { %v13990_v60 = vpop.f32.mrb[7].mxu1  ;;  %v4241_v39 = vsel %vm4219_vm2, %v13988_v58, -inf }
 0x45b   :  { %v4238_v44 = vsel %vm4219_vm2, %v13990_v60, -inf }
 0x45c   :  { %4236 = vmax.xlane.f32.xlu0 %v4235_v21 }
 0x45d   :  { %v13996_v19 = vpop.f32.mrb[8].mxu1  ;;  %4233 = vmax.xlane.f32.xlu1 %v4232_v40 }
 0x45e   :  { %v13998_v42 = vpop.f32.mrb[9].mxu1  ;;  %v4247_v51 = vsel %vm4219_vm2, %v13996_v19, -inf }
 0x45f   :  { %v4244_v56 = vsel %vm4219_vm2, %v13998_v42, -inf }
 0x460   :  { %4239 = vmax.xlane.f32.xlu0 %v4238_v44 }
 0x461   :  { %v14004_v62 = vpop.f32.mrb[10].mxu1  ;;  %4242 = vmax.xlane.f32.xlu1 %v4241_v39 }
 0x462   :  { %v14006_v26 = vpop.f32.mrb[11].mxu1  ;;  %v4253_v57 = vsel %vm4219_vm2, %v14004_v62, -inf }
 0x463   :  { %v4250_v49 = vsel %vm4219_vm2, %v14006_v26, -inf }
 0x464   :  { %4248 = vmax.xlane.f32.xlu0 %v4247_v51 }
 0x465   :  { %v14012_v9 = vpop.f32.mrb[12].mxu1  ;;  %4245 = vmax.xlane.f32.xlu1 %v4244_v56 }
 0x466   :  { %v14014_v59 = vpop.f32.mrb[13].mxu1  ;;  %v4259_v45 = vsel %vm4219_vm2, %v14012_v9, -inf }
 0x467   :  { %v4256_v35 = vsel %vm4219_vm2, %v14014_v59, -inf }
 0x468   :  { %4254 = vmax.xlane.f32.xlu0 %v4253_v57 }
 0x469   :  { %v14018_v2 = vpop.f32.mrb[14].mxu1 }
 0x46a   :  { %v14020_v6 = vpop.f32.mrb[15].mxu1  ;;  %v4265_v29 = vsel %vm4219_vm2, %v14018_v2, -inf }
 0x46b   :  { %v4262_v10 = vsel %vm4219_vm2, %v14020_v6, -inf }
 0x46c   :  { %4260 = vmax.xlane.f32.xlu0 %v4259_v45 }
 0x470   :  { %4257 = vmax.xlane.f32.xlu0 %v4256_v35 }
 0x474   :  { %4266 = vmax.xlane.f32.xlu0 %v4265_v29 }
 0x476   :  { %216 = vrot.lane.b32.xlu1 %v13958_v63, %s12941_s13 }
 0x477   :  { %v14052_v33 = vpop.trf.xlu1 }
 0x478   :  { %15378 = vst [vmem:[#allocation30_spill] sm:$0xff] %v14052_v33 }
 0x47f   :  { %v14056_v7 = vpop.trf.xlu1 }
 0x480   :  { %15379 = vst [vmem:[#allocation15_spill] sm:$0xff] %v14056_v7 }
 0x49a   :  { %4251 = vmax.xlane.f32.xlu1 %v4250_v49 }
 0x49e   :  { %4263 = vmax.xlane.f32.xlu1 %v4262_v10 }
 0x4a1   :  { %8295 = vxpose.xlu0.b32.start [1/2] (short) (narrow) %v7996_v22, 8  ;;  %v14060_v22 = vpop.permute.xlu1 %178 }
 0x4a5   :  { %8296 = vxpose.xlu0.b32.end [2/2] (short) (narrow) %v8132_v5, 8  ;;  %v14064_v12 = vpop.permute.xlu1 %190  ;;  %v14066_v5 = vpop.trf.xlu0 }
 0x4a6   :  { %15380 = vst [vmem:[#allocation13_spill] sm:$0xff] %v14066_v5 }
 0x4a9   :  { %v14070_v38 = vpop.permute.xlu1 %168  ;;  %v14072_v46 = vpop.trf.xlu0 }
 0x4aa   :  { %15381 = vst [vmem:[#allocation21_spill] sm:$0xff] %v14072_v46 }
 0x4ad   :  { %v14076_v8 = vpop.permute.xlu1 %192  ;;  %v14080_v15 = vpop.trf.xlu0 }
 0x4ae   :  { %15382 = vst [vmem:[#allocation12_spill] sm:$0xff] %v14080_v15 }
 0x4af   :  { %240 = vrot.lane.b32.xlu1 %v13958_v63, %s12942_s14 }
 0x4b1   :  { %v14084_v48 = vpop.permute.xlu1 %214 }
 0x4b5   :  { %v14088_v17 = vpop.permute.xlu1 %238 }
 0x4ce   :  { %166 = vrot.lane.b32.xlu0 %v13951_v55, %s12937_s0 }
 0x4d2   :  { %180 = vrot.lane.b32.xlu0 %v13958_v63, %s12939_s11 }
 0x4d6   :  { %202 = vrot.lane.b32.xlu0 %v13951_v55, %s12938_s10 }
 0x4da   :  { %226 = vrot.lane.b32.xlu0 %v13951_v55, %s12940_s12 }
 0x4dd   :  { %v4222_v36 = vpop.xlane.xlu0 %4221 }
 0x4de   :  { %204 = vrot.lane.b32.xlu0 %v13958_v63, %s12938_s10  ;;  %v4268_v21 = vsub.f32 %v13970_v31, %v4222_v36 }
 0x4e0   :  { %v4284_v57 = vmul.f32 1.442695, %v4268_v21 }
 0x4e1   :  { %v4231_v47 = vpop.xlane.xlu0 %4230 }
 0x4e2   :  { %v4271_v37 = vsub.f32 %v13974_v11, %v4231_v47 }
 0x4e4   :  { %v4290_v44 = vmul.f32 1.442695, %v4271_v37 }
 0x4e5   :  { %v4228_v16 = vpop.xlane.xlu0 %4227 }
 0x4e6   :  { %v4225_v18 = vpop.xlane.xlu1 %4224  ;;  %v4270_v45 = vsub.f32 %v13976_v53, %v4228_v16 }
 0x4e7   :  { %v4269_v40 = vsub.f32 %v13968_v23, %v4225_v18 }
 0x4e8   :  { %v4288_v31 = vmul.f32 1.442695, %v4270_v45 }
 0x4e9   :  { %v4286_v39 = vmul.f32 1.442695, %v4269_v40  ;;  %v4237_v51 = vpop.xlane.xlu0 %4236 }
 0x4ea   :  { %v4234_v56 = vpop.xlane.xlu1 %4233 }
 0x4eb   :  { %12756 = vpow2.f32 %v4286_v39  ;;  %v4272_v35 = vsub.f32 %v13982_v43, %v4234_v56 }
 0x4ec   :  { %12758 = vpow2.f32 %v4290_v44 }
 0x4ed   :  { %v4292_v29 = vmul.f32 1.442695, %v4272_v35  ;;  %v4240_v49 = vpop.xlane.xlu0 %4239  ;;  %12760 = vpow2.f32 %v4284_v57 }
 0x4ee   :  { %v4274_v11 = vsub.f32 %v13990_v60, %v4240_v49  ;;  %v4243_v10 = vpop.xlane.xlu1 %4242 }
 0x4ef   :  { %12762 = vpow2.f32 %v4292_v29 }
 0x4f0   :  { %v4296_v23 = vmul.f32 1.442695, %v4274_v11  ;;  %12764 = vpow2.f32 %v4288_v31  ;;  %v15323_v31 = vmov 0.0|0.0  }
 0x4f1   :  { %v4249_v29 = vpop.xlane.xlu0 %4248  ;;  %12653 = vmatprep.subr.bf16.mxu0 %v15323_v31  ;;  %12665 = vmatprep.subr.bf16.mxu1 %v15323_v31 }
 0x4f2   :  { %v4246_v36 = vpop.xlane.xlu1 %4245  ;;  %12766 = vpow2.f32 %v4296_v23  ;;  %v4273_v23 = vsub.f32 %v13980_v41, %v4237_v51  ;;  %v4277_v41 = vsub.f32 %v13996_v19, %v4249_v29 }
 0x4f3   :  { %v4276_v47 = vsub.f32 %v13998_v42, %v4246_v36 }
 0x4f4   :  { %v4302_v28 = vmul.f32 1.442695, %v4277_v41 }
 0x4f5   :  { %v14097_v37 = vpop.eup %12756  ;;  %v4300_v53 = vmul.f32 1.442695, %v4276_v47  ;;  %v4255_v49 = vpop.xlane.xlu0 %4254  ;;  %v15383_v47 = vmov 0.0  }
 0x4f6   :  { %v4319_v43 = vsel %vm4219_vm2, %v14097_v37, 0.0  ;;  %v14101_v16 = vpop.eup %12758  ;;  %12467 = vmatprep.mubr.msk.f32.mxu0 %vm12947_vm3, %v15383_v47  ;;  %12488 = vmatprep.mubr.msk.f32.mxu1 %vm12947_vm3, %v15383_v47 }
 0x4f7   :  { %4320 = vadd.xlane.f32.xlu1 %v4319_v43  ;;  %v14103_v60 = vpop.eup %12760  ;;  %12768 = vpow2.f32 %v4300_v53  ;;  %v4325_v18 = vsel %vm4219_vm2, %v14101_v16, 0.0  ;;  %v4275_v53 = vsub.f32 %v13988_v58, %v4243_v10  ;;  %v14135_v43 = vpop.permute.xlu1 %216  ;;  %v4279_v58 = vsub.f32 %v14004_v62, %v4255_v49 }
 0x4f8   :  { %v4316_v42 = vsel %vm4219_vm2, %v14103_v60, 0.0 }
 0x4f9   :  { %v14107_v21 = vpop.eup %12762  ;;  %v4261_v11 = vpop.xlane.xlu0 %4260 }
 0x4fa   :  { %v14111_v40 = vpop.eup %12764  ;;  %v4328_v44 = vsel %vm4219_vm2, %v14107_v21, 0.0 }
 0x4fb   :  { %4326 = vadd.xlane.f32.xlu1 %v4325_v18  ;;  %v4322_v56 = vsel %vm4219_vm2, %v14111_v40, 0.0  ;;  %v4294_v18 = vmul.f32 1.442695, %v4273_v23  ;;  %v4281_v23 = vsub.f32 %v14012_v9, %v4261_v11 }
 0x4fc   :  { %v14115_v39 = vpop.eup %12766 }
 0x4fd   :  { %4317 = vadd.xlane.f32.xlu0 %v4316_v42  ;;  %v4334_v57 = vsel %vm4219_vm2, %v14115_v39, 0.0  ;;  %v4258_v36 = vpop.xlane.xlu0 %4257  ;;  %12770 = vpow2.f32 %v4294_v18  ;;  %v4310_v19 = vmul.f32 1.442695, %v4281_v23  ;;  %v15385_v23 = vcombine.high %v13879_v24, %v13891_v30 }
 0x4fe   :  { %v4280_v42 = vsub.f32 %v14014_v59, %v4258_v36  ;;  %v4306_v59 = vmul.f32 1.442695, %v4279_v58  ;;  %v5452_v24 = vcombine.low %v14050_v50, %v14042_v34  ;;  %v5436_v30 = vcombine.low %v14034_v3, %v14054_v27 }
 0x4ff   :  { %4329 = vadd.xlane.f32.xlu1 %v4328_v44  ;;  %v4298_v44 = vmul.f32 1.442695, %v4275_v53 }
 0x501   :  { %4323 = vadd.xlane.f32.xlu0 %v4322_v56  ;;  %v14121_v45 = vpop.eup %12768  ;;  %v4267_v56 = vpop.xlane.xlu0 %4266  ;;  %12772 = vpow2.f32 %v4298_v44 }
 0x502   :  { %v4340_v35 = vsel %vm4219_vm2, %v14121_v45, 0.0  ;;  %v4283_v31 = vsub.f32 %v14018_v2, %v4267_v56 }
 0x503   :  { %4335 = vadd.xlane.f32.xlu1 %v4334_v57 }
 0x504   :  { %v4314_v10 = vmul.f32 1.442695, %v4283_v31 }
 0x507   :  { %4341 = vadd.xlane.f32.xlu1 %v4340_v35  ;;  %v4308_v35 = vmul.f32 1.442695, %v4280_v42  ;;  %v14143_v53 = vpop.eup %12770 }
 0x508   :  { %v4331_v62 = vsel %vm4219_vm2, %v14143_v53, 0.0 }
 0x50b   :  { %v14146_v2 = vpop.eup %12772 }
 0x50c   :  { %v4337_v49 = vsel %vm4219_vm2, %v14146_v2, 0.0 }
 0x517   :  { %228 = vrot.lane.b32.xlu0 %v13958_v63, %s12940_s12 }
 0x521   :  { %v14180_v58 = vpop.trf.xlu0 }
 0x522   :  { %15384 = vst [vmem:[#allocation16_spill] sm:$0xff] %v14180_v58 }
 0x527   :  { %v4252_v57 = vpop.xlane.xlu1 %4251 }
 0x528   :  { %v4278_v51 = vsub.f32 %v14006_v26, %v4252_v57 }
 0x52a   :  { %v4304_v25 = vmul.f32 1.442695, %v4278_v51 }
 0x52b   :  { %v4264_v36 = vpop.xlane.xlu1 %4263 }
 0x52c   :  { %12774 = vpow2.f32 %v4304_v25  ;;  %v4282_v26 = vsub.f32 %v14020_v6, %v4264_v36 }
 0x52d   :  { %12776 = vpow2.f32 %v4308_v35 }
 0x52e   :  { %12778 = vpow2.f32 %v4302_v28  ;;  %v4312_v29 = vmul.f32 1.442695, %v4282_v26 }
 0x52f   :  { %12780 = vpow2.f32 %v4314_v10 }
 0x530   :  { %12782 = vpow2.f32 %v4306_v59 }
 0x531   :  { %12784 = vpow2.f32 %v4310_v19  ;;  %v15386_v19 = vcombine.high %v13927_v54, %v13934_v61  ;;  %v5468_v54 = vcombine.low %v14058_v1, %v14062_v52 }
 0x532   :  { %12786 = vpow2.f32 %v4312_v29 }
 0x536   :  { %v14150_v25 = vpop.eup %12774  ;;  %4332 = vadd.xlane.f32.xlu0 %v4331_v62  ;;  %v241_v62 = vpop.permute.xlu1 %240 }
 0x537   :  { %v4346_v28 = vsel %vm4219_vm2, %v14150_v25, 0.0  ;;  %v14154_v9 = vpop.eup %12776 }
 0x538   :  { %4347 = vadd.xlane.f32.xlu1 %v4346_v28  ;;  %v14158_v6 = vpop.eup %12778  ;;  %v4352_v11 = vsel %vm4219_vm2, %v14154_v9, 0.0 }
 0x539   :  { %v14162_v31 = vpop.eup %12780  ;;  %v4343_v18 = vsel %vm4219_vm2, %v14158_v6, 0.0 }
 0x53a   :  { %4338 = vadd.xlane.f32.xlu0 %v4337_v49  ;;  %v14166_v42 = vpop.eup %12782  ;;  %v4361_v44 = vsel %vm4219_vm2, %v14162_v31, 0.0 }
 0x53b   :  { %v4349_v56 = vsel %vm4219_vm2, %v14166_v42, 0.0  ;;  %v14172_v57 = vpop.eup %12784 }
 0x53c   :  { %4353 = vadd.xlane.f32.xlu1 %v4352_v11  ;;  %v4355_v41 = vsel %vm4219_vm2, %v14172_v57, 0.0  ;;  %v14176_v51 = vpop.eup %12786  ;;  %v702_v11 = vcombine.low %v14135_v43, %v241_v62 }
 0x53d   :  { %v4358_v35 = vsel %vm4219_vm2, %v14176_v51, 0.0 }
 0x53e   :  { %4344 = vadd.xlane.f32.xlu0 %v4343_v18  ;;  %v703_v18 = vcombine.high %v14135_v43, %v241_v62  ;;  %v710_v43 = vrot.slane %v702_v11, %v13196_v4 }
 0x540   :  { %4362 = vadd.xlane.f32.xlu1 %v4361_v44  ;;  %v14182_v10 = vpop.permute.xlu0 %166  ;;  %v717_v62 = vrot.slane %v703_v18, %v13196_v4 }
 0x542   :  { %4350 = vadd.xlane.f32.xlu0 %v4349_v56  ;;  %v14216_v56 = vrot.slane %v5452_v24, %v13196_v4 }
 0x544   :  { %v14187_v59 = vpop.permute.xlu0 %180 }
 0x546   :  { %4356 = vadd.xlane.f32.xlu0 %v4355_v41  ;;  %v14219_v41 = vrot.slane %v5436_v30, %v13196_v4 }
 0x548   :  { %v14195_v36 = vpop.permute.xlu0 %202  ;;  %v5500_v30 = vcombine.low %v14219_v41, %v14216_v56 }
 0x54a   :  { %4359 = vadd.xlane.f32.xlu0 %v4358_v35  ;;  %v14222_v35 = vrot.slane %v5468_v54, %v13196_v4 }
 0x54c   :  { %v14200_v26 = vpop.permute.xlu0 %226 }
 0x573   :  { %8327 = vxpose.xlu1.b32.start [1/2] (short) (narrow) %v7997_v0, 8  ;;  %v205_v0 = vpop.permute.xlu0 %204 }
 0x577   :  { %8328 = vxpose.xlu1.b32.end [2/2] (short) (narrow) %v8133_v20, 8  ;;  %8359 = vxpose.xlu0.b32.start [1/2] (short) (narrow) %v15385_v23, 8  ;;  %v5484_v20 = vcombine.low %v14044_v14, %v14048_v32 }
 0x579   :  { %v14213_v44 = vrot.slane %v5484_v20, %v13196_v4 }
 0x57b   :  { %8360 = vxpose.xlu0.b32.end [2/2] (short) (narrow) %v15386_v19, 8  ;;  %v5532_v54 = vcombine.low %v14222_v35, %v14213_v44 }
 0x584   :  { %v4321_v28 = vpop.xlane.xlu1 %4320 }
 0x585   :  { %12788 = vrcp.f32 %v4321_v28 }
 0x588   :  { %v4327_v61 = vpop.xlane.xlu1 %4326 }
 0x58a   :  { %v4318_v29 = vpop.xlane.xlu0 %4317 }
 0x58b   :  { %12790 = vrcp.f32 %v4318_v29 }
 0x58e   :  { %v4324_v49 = vpop.xlane.xlu0 %4323 }
 0x58f   :  { %12792 = vrcp.f32 %v4324_v49  ;;  %v12789_v19 = vpop.eup %12788 }
 0x590   :  { %12794 = vrcp.f32 %v4327_v61  ;;  %v15387_v61 = vld [vmem:[#allocation9_spill] sm:$0xff] }
 0x592   :  { %v229_v23 = vpop.permute.xlu0 %228 }
 0x593   :  { %v686_v28 = vcombine.low %v205_v0, %v229_v23  ;;  %v687_v29 = vcombine.high %v205_v0, %v229_v23  ;;  %v4381_v0 = vmul.f32 %v12789_v19, %v14097_v37  ;;  %v5508_v19 = vrot.slane %v5500_v30, %v13206_v13 }
 0x595   :  { %v12791_v49 = vpop.eup %12790  ;;  %v694_v20 = vrot.slane %v686_v28, %v13196_v4  ;;  %v701_v24 = vrot.slane %v687_v29, %v13196_v4  ;;  %1498 = vrot.lane.b32.xlu1 %v15387_v61, %s12937_s0 }
 0x596   :  { %v4380_v23 = vmul.f32 %v12791_v49, %v14103_v60  ;;  %v5540_v49 = vrot.slane %v5532_v54, %v13206_v13 }
 0x597   :  { %v750_v11 = vcombine.low %v694_v20, %v710_v43  ;;  %v751_v58 = vcombine.high %v694_v20, %v710_v43  ;;  %v766_v18 = vcombine.low %v701_v24, %v717_v62  ;;  %v767_v7 = vcombine.high %v701_v24, %v717_v62 }
 0x598   :  { %v12654_v29 = vpack.c.bf16 %v4381_v0, %v4380_v23 }
 0x599   :  { %v12793_v33 = vpop.eup %12792  ;;  %v758_v15 = vrot.slane %v750_v11, %v13206_v13  ;;  %v765_v5 = vrot.slane %v751_v58, %v13206_v13  ;;  %v774_v37 = vrot.slane %v766_v18, %v13206_v13  ;;  %v781_v60 = vrot.slane %v767_v7, %v13206_v13  ;;  %1522 = vrot.lane.b32.xlu1 %v15387_v61, %s12936_s1 }
 0x59a   :  { %12656 = vmatpush3.bf16.xpose.msk.msra.mxu0 %vm14238_vm4, %v12654_v29  ;;  %v12795_v43 = vpop.eup %12794  ;;  %v15390_v58 = vmov 0.0|0.0   ;;  %v4382_v23 = vmul.f32 %v12793_v33, %v14111_v40  ;;  %v5564_v18 = vcombine.low %v5508_v19, %v5540_v49 }
 0x59b   :  { %v12247_v62 = vcombine.low %v758_v15, %v765_v5  ;;  %v12249_v20 = vcombine.high %v758_v15, %v765_v5  ;;  %v12251_v24 = vcombine.low %v774_v37, %v781_v60  ;;  %v12253_v0 = vcombine.high %v774_v37, %v781_v60  ;;  %12657 = vmatprep.subr.bf16.mxu0 %v15390_v58 }
 0x59c   :  { %v4383_v5 = vmul.f32 %v12795_v43, %v14101_v16 }
 0x59d   :  { %v7230_v7 = vrot.slane %v12247_v62, %v13196_v4  ;;  %v7246_v11 = vrot.slane %v12249_v20, %v13196_v4  ;;  %v7262_v30 = vrot.slane %v12251_v24, %v13196_v4  ;;  %v7278_v54 = vrot.slane %v12253_v0, %v13196_v4  ;;  %1534 = vrot.lane.b32.xlu1 %v15387_v61, %s12938_s10  ;;  %v15391_v0 = vld [vmem:[#allocation11_spill] sm:$0xff] }
 0x59e   :  { %v12658_v46 = vpack.c.bf16 %v4383_v5, %v4382_v23  ;;  %v5565_v23 = vcombine.high %v5508_v19, %v5540_v49  ;;  %v4330_v19 = vpop.xlane.xlu1 %4329  ;;  %v535_v5 = vcombine.high %v14182_v10, %v14064_v12 }
 0x59f   :  { %v7295_v15 = vcombine.low %v7230_v7, %v7246_v11  ;;  %v7296_v29 = vcombine.high %v7230_v7, %v7246_v11  ;;  %v7327_v37 = vcombine.low %v7262_v30, %v7278_v54  ;;  %v7328_v60 = vcombine.high %v7262_v30, %v7278_v54 }
 0x5a0   :  { %12796 = vrcp.f32 %v4330_v19  ;;  %v5453_v19 = vcombine.high %v14050_v50, %v14042_v34  ;;  %v5469_v34 = vcombine.high %v14058_v1, %v14062_v52 }
 0x5a1   :  { %1558 = vrot.lane.b32.xlu1 %v15387_v61, %s12940_s12  ;;  %12468 = vmatmul.mubr.msk.f32.vlgmr.msra.gmra.mrb[8].mxu0 %vm4219_vm2, %v5564_v18  ;;  %v14265_v33 = vrot.slane %v7295_v15, %v13206_v13  ;;  %v14268_v40 = vrot.slane %v7327_v37, %v13206_v13  ;;  %v14271_v62 = vrot.slane %v7296_v29, %v13206_v13 }
 0x5a2   :  { %12660 = vmatpush3.bf16.xpose.msk.msra.mxu0 %vm14238_vm4, %v12658_v46  ;;  %12474 = vmatprep.mubr.msk.f32.mxu0 %vm12947_vm3, %v15383_v47  ;;  %v14278_v16 = vrot.slane %v7328_v60, %v13206_v13  ;;  %v4336_v49 = vpop.xlane.xlu1 %4335  ;;  %v534_v18 = vcombine.low %v14182_v10, %v14064_v12  ;;  %v518_v15 = vcombine.low %v13951_v55, %v14060_v22 }
 0x5a3   :  { %12661 = vmatprep.subr.bf16.mxu0 %v15390_v58  ;;  %v7347_v43 = vcombine.low %v14265_v33, %v14268_v40  ;;  %v7348_v20 = vcombine.high %v14265_v33, %v14268_v40  ;;  %v519_v29 = vcombine.high %v13951_v55, %v14060_v22  ;;  %v549_v12 = vrot.slane %v535_v5, %v13196_v4 }
 0x5a4   :  { %1510 = vrot.lane.b32.xlu0 %v15387_v61, %s12939_s11  ;;  %v7349_v46 = vcombine.low %v14271_v62, %v14278_v16  ;;  %v7350_v24 = vcombine.high %v14271_v62, %v14278_v16  ;;  %v526_v55 = vrot.slane %v518_v15, %v13196_v4  ;;  %v5501_v22 = vcombine.high %v14219_v41, %v14216_v56 }
 0x5a5   :  { %1512 = vrot.lane.b32.xlu1 %v15391_v0, %s12939_s11  ;;  %s12953_s11 = smov 56  }
 0x5a6   :  { %v4342_v7 = vpop.xlane.xlu1 %4341  ;;  %v5515_v52 = vrot.slane %v5501_v22, %v13206_v13 }
 0x5a8   :  { %1546 = vrot.lane.b32.xlu0 %v15387_v61, %s12941_s13 }
 0x5a9   :  { %12475 = vmatmul.mubr.msk.f32.vlgmr.msra.gmra.mrb[10].mxu0 %vm4219_vm2, %v5565_v23  ;;  %1524 = vrot.lane.b32.xlu1 %v15391_v0, %s12936_s1  ;;  %v542_v23 = vrot.slane %v534_v18, %v13196_v4 }
 0x5aa   :  { %12481 = vmatprep.mubr.msk.f32.mxu0 %vm12947_vm3, %v15383_v47  ;;  %v12797_v60 = vpop.eup %12796 }
 0x5ab   :  { %v583_v5 = vcombine.high %v526_v55, %v542_v23 }
 0x5ac   :  { %1570 = vrot.lane.b32.xlu0 %v15387_v61, %s12942_s14 }
 0x5ad   :  { %1548 = vrot.lane.b32.xlu1 %v15391_v0, %s12941_s13 }
 0x5b0   :  { %1500 = vrot.lane.b32.xlu0 %v15391_v0, %s12937_s0 }
 0x5b1   :  { %1572 = vrot.lane.b32.xlu1 %v15391_v0, %s12942_s14 }
 0x5b4   :  { %1536 = vrot.lane.b32.xlu0 %v15391_v0, %s12938_s10  ;;  %s12952_s10 = smov 48  }
 0x5b8   :  { %1560 = vrot.lane.b32.xlu0 %v15391_v0, %s12940_s12 }
 0x5c3   :  { %v4333_v11 = vpop.xlane.xlu0 %4332 }
 0x5c4   :  { %12798 = vrcp.f32 %v4333_v11 }
 0x5c5   :  { %12800 = vrcp.f32 %v4336_v49  ;;  %v4348_v30 = vpop.xlane.xlu1 %4347  ;;  %v5437_v49 = vcombine.high %v14034_v3, %v14054_v27  ;;  %v4384_v3 = vmul.f32 %v12797_v60, %v14107_v21 }
 0x5c7   :  { %v4339_v54 = vpop.xlane.xlu0 %4338  ;;  %v14342_v1 = vrot.slane %v5437_v49, %v13196_v4 }
 0x5c8   :  { %12802 = vrcp.f32 %v4339_v54  ;;  %v533_v54 = vrot.slane %v519_v29, %v13196_v4  ;;  %v14339_v29 = vrot.slane %v5453_v19, %v13196_v4 }
 0x5c9   :  { %12804 = vrcp.f32 %v4342_v7  ;;  %v4354_v10 = vpop.xlane.xlu1 %4353  ;;  %v5485_v7 = vcombine.high %v14044_v14, %v14048_v32  ;;  %v5533_v14 = vcombine.high %v14222_v35, %v14213_v44  ;;  %v582_v32 = vcombine.low %v526_v55, %v542_v23 }
 0x5ca   :  { %v598_v15 = vcombine.low %v533_v54, %v549_v12  ;;  %v599_v56 = vcombine.high %v533_v54, %v549_v12  ;;  %v597_v12 = vrot.slane %v583_v5, %v13206_v13 }
 0x5cb   :  { %v4345_v37 = vpop.xlane.xlu0 %4344  ;;  %v14346_v21 = vrot.slane %v5485_v7, %v13196_v4  ;;  %v5547_v19 = vrot.slane %v5533_v14, %v13206_v13  ;;  %v590_v49 = vrot.slane %v582_v32, %v13206_v13  ;;  %v5516_v7 = vcombine.low %v14342_v1, %v14339_v29 }
 0x5cc   :  { %12806 = vrcp.f32 %v4345_v37 }
 0x5cd   :  { %12808 = vrcp.f32 %v4348_v30  ;;  %v4363_v37 = vpop.xlane.xlu1 %4362 }
 0x5ce   :  { %v12799_v11 = vpop.eup %12798 }
 0x5cf   :  { %v4385_v50 = vmul.f32 %v12799_v11, %v14143_v53  ;;  %v4351_v27 = vpop.xlane.xlu0 %4350  ;;  %v12801_v18 = vpop.eup %12800  ;;  %v14349_v53 = vrot.slane %v5469_v34, %v13196_v4 }
 0x5d0   :  { %12810 = vrcp.f32 %v4351_v27  ;;  %v4386_v44 = vmul.f32 %v12801_v18, %v14115_v39  ;;  %v613_v39 = vrot.slane %v599_v56, %v13206_v13  ;;  %v12238_v27 = vcombine.low %v590_v49, %v597_v12 }
 0x5d1   :  { %v12662_v41 = vpack.c.bf16 %v4385_v50, %v4384_v3  ;;  %12812 = vrcp.f32 %v4354_v10  ;;  %v606_v10 = vrot.slane %v598_v15, %v13206_v13  ;;  %v5548_v55 = vcombine.low %v14349_v53, %v14346_v21 }
 0x5d2   :  { %v12803_v30 = vpop.eup %12802  ;;  %v5566_v50 = vcombine.low %v5515_v52, %v5547_v19  ;;  %v12240_v18 = vcombine.high %v590_v49, %v597_v12  ;;  %v670_v12 = vcombine.low %v14070_v38, %v14076_v8 }
 0x5d3   :  { %v4387_v35 = vmul.f32 %v12803_v30, %v14146_v2  ;;  %v4357_v60 = vpop.xlane.xlu0 %4356  ;;  %12664 = vmatpush3.bf16.xpose.msk.msra.mxu0 %vm14238_vm4, %v12662_v41  ;;  %v12805_v23 = vpop.eup %12804  ;;  %v12242_v14 = vcombine.low %v606_v10, %v613_v39  ;;  %v12244_v32 = vcombine.high %v606_v10, %v613_v39  ;;  %v5556_v30 = vrot.slane %v5548_v55, %v13206_v13 }
 0x5d4   :  { %12814 = vrcp.f32 %v4357_v60  ;;  %12669 = vmatprep.subr.bf16.mxu0 %v15390_v58  ;;  %v4388_v22 = vmul.f32 %v12805_v23, %v14121_v45  ;;  %v5524_v45 = vrot.slane %v5516_v7, %v13206_v13  ;;  %v678_v55 = vrot.slane %v670_v12, %v13196_v4 }
 0x5d5   :  { %v12666_v2 = vpack.c.bf16 %v4387_v35, %v4386_v44  ;;  %12816 = vrcp.f32 %v4363_v37  ;;  %v5567_v44 = vcombine.high %v5515_v52, %v5547_v19  ;;  %v7087_v35 = vrot.slane %v12238_v27, %v13196_v4 }
 0x5d6   :  { %v12807_v11 = vpop.eup %12806  ;;  %v7103_v37 = vrot.slane %v12240_v18, %v13196_v4  ;;  %v7135_v60 = vrot.slane %v12244_v32, %v13196_v4  ;;  %v5549_v52 = vcombine.high %v14349_v53, %v14346_v21  ;;  %v654_v19 = vcombine.low %v13958_v63, %v14187_v59 }
 0x5d7   :  { %v4389_v54 = vmul.f32 %v12807_v11, %v14158_v6  ;;  %v4360_v34 = vpop.xlane.xlu0 %4359  ;;  %12668 = vmatpush3.bf16.xpose.msk.msra.mxu1 %vm14238_vm4, %v12666_v2  ;;  %v12809_v3 = vpop.eup %12808  ;;  %v5568_v39 = vcombine.low %v5524_v45, %v5556_v30  ;;  %v655_v21 = vcombine.high %v13958_v63, %v14187_v59  ;;  %v566_v32 = vcombine.low %v14084_v48, %v14088_v17 }
 0x5d8   :  { %12818 = vrcp.f32 %v4360_v34  ;;  %12673 = vmatprep.subr.bf16.mxu1 %v15390_v58  ;;  %v4390_v6 = vmul.f32 %v12809_v3, %v14150_v25  ;;  %v5517_v25 = vcombine.high %v14342_v1, %v14339_v29  ;;  %v7143_v53 = vcombine.low %v7087_v35, %v7103_v37 }
 0x5d9   :  { %v12670_v5 = vpack.c.bf16 %v4389_v54, %v4388_v22  ;;  %v5563_v22 = vrot.slane %v5549_v52, %v13206_v13  ;;  %v5569_v54 = vcombine.high %v5524_v45, %v5556_v30  ;;  %v662_v63 = vrot.slane %v654_v19, %v13196_v4 }
 0x5da   :  { %v12811_v15 = vpop.eup %12810  ;;  %12482 = vmatmul.mubr.msk.f32.vlgmr.msra.gmra.mrb[12].mxu0 %vm4219_vm2, %v5566_v50  ;;  %v5531_v2 = vrot.slane %v5517_v25, %v13206_v13  ;;  %v551_v3 = vcombine.high %v14195_v36, %v14200_v26  ;;  %v14421_v50 = vrot.slane %v7143_v53, %v13206_v13  ;;  %v7144_v27 = vcombine.high %v7087_v35, %v7103_v37  ;;  %v15395_v53 = vld [vmem:[#allocation30_spill] sm:$0xff] }
 0x5db   :  { %v4391_v56 = vmul.f32 %v12811_v15, %v14166_v42  ;;  %12672 = vmatpush3.bf16.xpose.msk.msra.mxu0 %vm14238_vm4, %v12670_v5  ;;  %12495 = vmatprep.mubr.msk.f32.mxu0 %vm12947_vm3, %v15383_v47  ;;  %v12813_v41 = vpop.eup %12812  ;;  %v7119_v42 = vrot.slane %v12242_v14, %v13196_v4  ;;  %v567_v5 = vcombine.high %v14084_v48, %v14088_v17 }
 0x5dc   :  { %12677 = vmatprep.subr.bf16.mxu0 %v15390_v58  ;;  %v4392_v10 = vmul.f32 %v12813_v41, %v14154_v9  ;;  %v719_v15 = vcombine.high %v662_v63, %v678_v55  ;;  %v565_v41 = vrot.slane %v551_v3, %v13196_v4  ;;  %v14441_v48 = vrot.slane %v7144_v27, %v13206_v13 }
 0x5dd   :  { %v12674_v23 = vpack.c.bf16 %v4391_v56, %v4390_v6  ;;  %v7175_v9 = vcombine.low %v7119_v42, %v7135_v60  ;;  %v7176_v18 = vcombine.high %v7119_v42, %v7135_v60  ;;  %v581_v35 = vrot.slane %v567_v5, %v13196_v4 }
 0x5de   :  { %v12815_v49 = vpop.eup %12814  ;;  %12489 = vmatmul.mubr.msk.f32.vlgmr.msra.gmra.mrb[16].mxu1 %vm4219_vm2, %v5567_v44  ;;  %v574_v44 = vrot.slane %v566_v32, %v13196_v4  ;;  %v5571_v37 = vcombine.high %v5531_v2, %v5563_v22  ;;  %v733_v42 = vrot.slane %v719_v15, %v13206_v13  ;;  %v15396_v15 = vld [vmem:[#allocation15_spill] sm:$0xff] }
 0x5df   :  { %v4393_v29 = vmul.f32 %v12815_v49, %v14172_v57  ;;  %12676 = vmatpush3.bf16.xpose.msk.msra.mxu1 %vm14238_vm4, %v12674_v23  ;;  %12502 = vmatprep.mubr.msk.f32.mxu1 %vm12947_vm3, %v15383_v47  ;;  %v12817_v1 = vpop.eup %12816  ;;  %v671_v57 = vcombine.high %v14070_v38, %v14076_v8  ;;  %v669_v38 = vrot.slane %v655_v21, %v13196_v4  ;;  %v15394_v21 = vld [vmem:[#allocation12_spill] sm:$0xff] }
 0x5e0   :  { %12681 = vmatprep.subr.bf16.mxu1 %v15390_v58  ;;  %v4395_v59 = vmul.f32 %v12817_v1, %v14162_v31  ;;  %v550_v8 = vcombine.low %v14195_v36, %v14200_v26  ;;  %v5570_v36 = vcombine.low %v5531_v2, %v5563_v22  ;;  %v718_v26 = vcombine.low %v662_v63, %v678_v55  ;;  %v15393_v1 = vld [vmem:[#allocation13_spill] sm:$0xff] }
 0x5e1   :  { %v12678_v11 = vpack.c.bf16 %v4393_v29, %v4392_v10  ;;  %v685_v14 = vrot.slane %v671_v57, %v13196_v4  ;;  %v14444_v17 = vrot.slane %v7176_v18, %v13206_v13  ;;  %v630_v52 = vcombine.low %v565_v41, %v581_v35  ;;  %v15392_v29 = vld [vmem:[#allocation21_spill] sm:$0xff] }
 0x5e2   :  { %v12819_v7 = vpop.eup %12818  ;;  %12496 = vmatmul.mubr.msk.f32.vlgmr.msra.gmra.mrb[14].mxu0 %vm4219_vm2, %v5568_v39  ;;  %v558_v56 = vrot.slane %v550_v8, %v13196_v4  ;;  %v726_v25 = vrot.slane %v718_v26, %v13206_v13  ;;  %v631_v19 = vcombine.high %v565_v41, %v581_v35  ;;  %v8391_v39 = vcombine.low %v15393_v1, %v15392_v29 }
 0x5e3   :  { %v4394_v34 = vmul.f32 %v12819_v7, %v14176_v51  ;;  %12680 = vmatpush3.bf16.xpose.msk.msra.mxu0 %vm14238_vm4, %v12678_v11  ;;  %12509 = vmatprep.mubr.msk.f32.mxu0 %vm12947_vm3, %v15383_v47  ;;  %v14424_v51 = vrot.slane %v7175_v9, %v13206_v13  ;;  %v734_v45 = vcombine.low %v669_v38, %v685_v14 }
 0x5e4   :  { %v735_v6 = vcombine.high %v669_v38, %v685_v14  ;;  %v614_v49 = vcombine.low %v558_v56, %v574_v44  ;;  %v615_v12 = vcombine.high %v558_v56, %v574_v44  ;;  %v7209_v10 = vcombine.low %v14441_v48, %v14444_v17 }
 0x5e5   :  { %v12682_v31 = vpack.c.bf16 %v4395_v59, %v4394_v34  ;;  %v7207_v30 = vcombine.low %v14421_v50, %v14424_v51  ;;  %v742_v60 = vrot.slane %v734_v45, %v13206_v13  ;;  %v8407_v2 = vcombine.low %v15395_v53, %v15394_v21 }
 0x5e6   :  { %12503 = vmatmul.mubr.msk.f32.vlgmr.msra.gmra.mrb[18].mxu1 %vm4219_vm2, %v5569_v54  ;;  %v749_v23 = vrot.slane %v735_v6, %v13206_v13  ;;  %v12246_v11 = vcombine.low %v726_v25, %v733_v42  ;;  %v12248_v9 = vcombine.high %v726_v25, %v733_v42  ;;  %v622_v55 = vrot.slane %v614_v49, %v13206_v13  ;;  %v15397_v42 = vld [vmem:[#allocation16_spill] sm:$0xff] }
 0x5e7   :  { %12684 = vmatpush3.bf16.xpose.msk.msra.mxu1 %vm14238_vm4, %v12682_v31  ;;  %12516 = vmatprep.mubr.msk.f32.mxu1 %vm12947_vm3, %v15383_v47  ;;  %v629_v22 = vrot.slane %v615_v12, %v13206_v13  ;;  %v638_v54 = vrot.slane %v630_v52, %v13206_v13  ;;  %v645_v63 = vrot.slane %v631_v19, %v13206_v13 }
 0x5e8   :  { %v12250_v7 = vcombine.low %v742_v60, %v749_v23  ;;  %v12252_v57 = vcombine.high %v742_v60, %v749_v23  ;;  %v8392_v59 = vcombine.high %v15393_v1, %v15392_v29  ;;  %v8399_v34 = vrot.slane %v8391_v39, %v13196_v4 }
 0x5e9   :  { %v8408_v38 = vcombine.high %v15395_v53, %v15394_v21  ;;  %v8415_v8 = vrot.slane %v8407_v2, %v13196_v4  ;;  %v7223_v31 = vrot.slane %v12246_v11, %v13196_v4  ;;  %v7239_v27 = vrot.slane %v12248_v9, %v13196_v4 }
 0x5ea   :  { %12510 = vmatmul.mubr.msk.f32.vlgmr.msra.gmra.mrb[16].mxu0 %vm4219_vm2, %v5570_v36  ;;  %v7255_v18 = vrot.slane %v12250_v7, %v13196_v4  ;;  %v7271_v14 = vrot.slane %v12252_v57, %v13196_v4  ;;  %v12239_v32 = vcombine.low %v622_v55, %v629_v22  ;;  %v12241_v5 = vcombine.high %v622_v55, %v629_v22 }
 0x5eb   :  { %12521 = vmatprep.mubr.msk.f32.mxu0 %vm3570_vm1, %v7207_v30  ;;  %v12243_v36 = vcombine.low %v638_v54, %v645_v63  ;;  %v12245_v26 = vcombine.high %v638_v54, %v645_v63  ;;  %v8406_v56 = vrot.slane %v8392_v59, %v13196_v4  ;;  %v8422_v41 = vrot.slane %v8408_v38, %v13196_v4 }
 0x5ec   :  { %v8455_v30 = vcombine.low %v8399_v34, %v8415_v8  ;;  %v8456_v44 = vcombine.high %v8399_v34, %v8415_v8  ;;  %v7311_v25 = vcombine.low %v7255_v18, %v7271_v14  ;;  %v7094_v49 = vrot.slane %v12239_v32, %v13196_v4 }
 0x5ed   :  { %v7110_v12 = vrot.slane %v12241_v5, %v13196_v4  ;;  %v7126_v52 = vrot.slane %v12243_v36, %v13196_v4  ;;  %v7142_v19 = vrot.slane %v12245_v26, %v13196_v4  ;;  %v8471_v21 = vcombine.low %v8406_v56, %v8422_v41 }
 0x5ee   :  { %12517 = vmatmul.mubr.msk.f32.vlgmr.msra.gmra.mrb[20].mxu1 %vm4219_vm2, %v5571_v37  ;;  %v7279_v37 = vcombine.low %v7223_v31, %v7239_v27  ;;  %v7280_v53 = vcombine.high %v7223_v31, %v7239_v27  ;;  %v7312_v2 = vcombine.high %v7255_v18, %v7271_v14  ;;  %v8463_v57 = vrot.slane %v8455_v30, %v13206_v13 }
 0x5ef   :  { %12531 = vmatprep.mubr.msk.f32.mxu1 %vm3570_vm1, %v7209_v10  ;;  %v7319_v22 = vrot.slane %v7311_v25, %v13206_v13  ;;  %v7159_v54 = vcombine.low %v7094_v49, %v7110_v12  ;;  %v7191_v63 = vcombine.low %v7126_v52, %v7142_v19  ;;  %v8470_v38 = vrot.slane %v8456_v44, %v13206_v13 }
 0x5f0   :  { %v7287_v55 = vrot.slane %v7279_v37, %v13206_v13  ;;  %v7326_v31 = vrot.slane %v7312_v2, %v13206_v13  ;;  %v8472_v18 = vcombine.high %v8406_v56, %v8422_v41  ;;  %v8479_v5 = vrot.slane %v8471_v21, %v13206_v13 }
 0x5f1   :  { %v7167_v26 = vrot.slane %v7159_v54, %v13206_v13  ;;  %v7192_v44 = vcombine.high %v7126_v52, %v7142_v19  ;;  %v7208_v41 = vcombine.high %v14421_v50, %v14424_v51  ;;  %v7210_v51 = vcombine.high %v14441_v48, %v14444_v17 }
 0x5f2   :  { %v7343_v36 = vcombine.low %v7287_v55, %v7319_v22  ;;  %v8486_v37 = vrot.slane %v8472_v18, %v13206_v13  ;;  %v7344_v50 = vcombine.high %v7287_v55, %v7319_v22 }
 0x5f3   :  { %v8343_v3 = vpop.trf.xlu1 }
 0x5f4   :  { %v8423_v45 = vcombine.low %v15396_v15, %v8343_v3  ;;  %v8424_v6 = vcombine.high %v15396_v15, %v8343_v3  ;;  %v7294_v3 = vrot.slane %v7280_v53, %v13206_v13  ;;  %v7199_v15 = vrot.slane %v7191_v63, %v13206_v13 }
 0x5f6   :  { %v8431_v10 = vrot.slane %v8423_v45, %v13196_v4  ;;  %v8438_v29 = vrot.slane %v8424_v6, %v13196_v4  ;;  %v7160_v45 = vcombine.high %v7094_v49, %v7110_v12  ;;  %v7211_v25 = vcombine.low %v7167_v26, %v7199_v15 }
 0x5f7   :  { %v8375_v35 = vpop.trf.xlu0  ;;  %v7206_v49 = vrot.slane %v7192_v44, %v13206_v13 }
 0x5f8   :  { %v8439_v60 = vcombine.low %v15397_v42, %v8375_v35  ;;  %v8440_v23 = vcombine.high %v15397_v42, %v8375_v35  ;;  %v7345_v35 = vcombine.low %v7294_v3, %v7326_v31  ;;  %v7174_v42 = vrot.slane %v7160_v45, %v13206_v13 }
 0x5fa   :  { %v8447_v1 = vrot.slane %v8439_v60, %v13196_v4  ;;  %v8454_v39 = vrot.slane %v8440_v23, %v13196_v4  ;;  %v7213_v19 = vcombine.low %v7174_v42, %v7206_v49  ;;  %v7214_v17 = vcombine.high %v7174_v42, %v7206_v49 }
 0x5fc   :  { %v8487_v11 = vcombine.low %v8431_v10, %v8447_v1  ;;  %v8488_v9 = vcombine.high %v8431_v10, %v8447_v1  ;;  %v8503_v7 = vcombine.low %v8438_v29, %v8454_v39  ;;  %v8504_v59 = vcombine.high %v8438_v29, %v8454_v39 }
 0x5fd   :  { %v7346_v29 = vcombine.high %v7294_v3, %v7326_v31  ;;  %v7212_v1 = vcombine.high %v7167_v26, %v7199_v15 }
 0x5fe   :  { %v8495_v34 = vrot.slane %v8487_v11, %v13206_v13  ;;  %v8502_v8 = vrot.slane %v8488_v9, %v13206_v13  ;;  %v8511_v27 = vrot.slane %v8503_v7, %v13206_v13  ;;  %v8518_v30 = vrot.slane %v8504_v59, %v13206_v13 }
 0x600   :  { %v8519_v14 = vcombine.low %v8463_v57, %v8495_v34  ;;  %v8521_v32 = vcombine.low %v8470_v38, %v8502_v8  ;;  %v8520_v6 = vcombine.high %v8463_v57, %v8495_v34  ;;  %v8523_v56 = vcombine.low %v8479_v5, %v8511_v27 }
 0x601   :  { %v8522_v60 = vcombine.high %v8470_v38, %v8502_v8  ;;  %v8525_v23 = vcombine.low %v8486_v37, %v8518_v30  ;;  %v8524_v52 = vcombine.high %v8479_v5, %v8511_v27 }
 0x602   :  { %12519 = vmatprep.subr.mxu0 %v8519_v14  ;;  %12529 = vmatprep.subr.mxu1 %v8521_v32 }
 0x603   :  { %12520 = vmatpush3.msra.mxu0 %v8519_v14  ;;  %12530 = vmatpush3.msra.mxu1 %v8521_v32 }
 0x604   :  { %12522 = vmatmul.mubr.msk.f32.vlgmr.msra.gmra.mrb[18].mxu0 %vm3570_vm1, %v7343_v36  ;;  %12524 = vmatprep.subr.mxu0 %v8520_v6 }
 0x605   :  { %12532 = vmatmul.mubr.msk.f32.vlgmr.msra.gmra.mrb[22].mxu1 %vm3570_vm1, %v7345_v35  ;;  %12539 = vmatprep.subr.mxu1 %v8523_v56 }
 0x606   :  { %12525 = vmatpush3.msra.mxu0 %v8520_v6  ;;  %12526 = vmatprep.mubr.msk.f32.mxu0 %vm3570_vm1, %v7208_v41 }
 0x607   :  { %12540 = vmatpush3.msra.mxu1 %v8523_v56  ;;  %12541 = vmatprep.mubr.msk.f32.mxu1 %vm3570_vm1, %v7211_v25  ;;  %v14512_v12 = vpop.permute.xlu1 %1498 }
 0x608   :  { %12534 = vmatprep.subr.mxu0 %v8522_v60  ;;  %12549 = vmatprep.subr.mxu1 %v8525_v23 }
 0x609   :  { %12527 = vmatmul.mubr.msk.f32.vlgmr.msra.gmra.mrb[20].mxu0 %vm3570_vm1, %v7344_v50  ;;  %12542 = vmatmul.mubr.msk.f32.vlgmr.msra.gmra.mrb[24].mxu1 %vm3570_vm1, %v7347_v43  ;;  %v8526_v43 = vcombine.high %v8486_v37, %v8518_v30 }
 0x60a   :  { %12535 = vmatpush3.msra.mxu0 %v8522_v60  ;;  %12550 = vmatpush3.msra.mxu1 %v8525_v23 }
 0x60b   :  { %12536 = vmatprep.mubr.msk.f32.mxu0 %vm3570_vm1, %v7210_v51  ;;  %12544 = vmatprep.subr.mxu0 %v8524_v52  ;;  %v1523_v10 = vpop.permute.xlu1 %1522 }
 0x60c   :  { %12551 = vmatprep.mubr.msk.f32.mxu1 %vm3570_vm1, %v7213_v19  ;;  %12685 = vmatprep.subr.bf16.mxu1 %v15390_v58  ;;  %v1867_v59 = vcombine.high %v14512_v12, %v1523_v10 }
 0x60d   :  { %12537 = vmatmul.mubr.msk.f32.vlgmr.msra.gmra.mrb[22].mxu0 %vm3570_vm1, %v7346_v29  ;;  %12552 = vmatmul.mubr.msk.f32.vlgmr.msra.gmra.mrb[26].mxu1 %vm3570_vm1, %v7349_v46 }
 0x60e   :  { %12545 = vmatpush3.msra.mxu0 %v8524_v52  ;;  %12546 = vmatprep.mubr.msk.f32.mxu0 %vm3570_vm1, %v7212_v1  ;;  %v1881_v32 = vrot.slane %v1867_v59, %v13196_v4 }
 0x60f   :  { %12554 = vmatprep.subr.mxu0 %v8526_v43  ;;  %v1535_v48 = vpop.permute.xlu1 %1534  ;;  %12563 = vmatprep.mubr.msk.f32.mxu1 %vm12947_vm3, %v15383_v47 }
 0x611   :  { %12547 = vmatmul.mubr.msk.f32.vlgmr.msra.gmra.mrb[24].mxu0 %vm3570_vm1, %v7348_v20  ;;  %v1866_v20 = vcombine.low %v14512_v12, %v1523_v10 }
 0x612   :  { %12555 = vmatpush3.msra.mxu0 %v8526_v43  ;;  %12556 = vmatprep.mubr.msk.f32.mxu0 %vm3570_vm1, %v7214_v17 }
 0x613   :  { %v1559_v39 = vpop.permute.xlu1 %1558  ;;  %12689 = vmatprep.subr.bf16.mxu0 %v15390_v58  ;;  %v1874_v62 = vrot.slane %v1866_v20, %v13196_v4 }
 0x614   :  { %v1882_v2 = vcombine.low %v1535_v48, %v1559_v39  ;;  %v1883_v55 = vcombine.high %v1535_v48, %v1559_v39 }
 0x615   :  { %12557 = vmatmul.mubr.msk.f32.vlgmr.msra.gmra.mrb[26].mxu0 %vm3570_vm1, %v7350_v24 }
 0x616   :  { %v1511_v46 = vpop.permute.xlu0 %1510  ;;  %12570 = vmatprep.mubr.msk.f32.mxu0 %vm12947_vm3, %v15383_v47  ;;  %v1890_v22 = vrot.slane %v1882_v2, %v13196_v4  ;;  %v1897_v27 = vrot.slane %v1883_v55, %v13196_v4 }
 0x617   :  { %v14544_v21 = vpop.permute.xlu1 %1512  ;;  %v1850_v33 = vcombine.low %v15387_v61, %v1511_v46  ;;  %v1851_v7 = vcombine.high %v15387_v61, %v1511_v46 }
 0x618   :  { %v1986_v41 = vcombine.low %v15391_v0, %v14544_v21  ;;  %v1987_v20 = vcombine.high %v15391_v0, %v14544_v21 }
 0x619   :  { %v1858_v11 = vrot.slane %v1850_v33, %v13196_v4  ;;  %v1865_v31 = vrot.slane %v1851_v7, %v13196_v4 }
 0x61a   :  { %v1547_v40 = vpop.permute.xlu0 %1546  ;;  %v1994_v10 = vrot.slane %v1986_v41, %v13196_v4  ;;  %v2001_v55 = vrot.slane %v1987_v20, %v13196_v4 }
 0x61b   :  { %v14548_v53 = vpop.permute.xlu1 %1524  ;;  %v1914_v54 = vcombine.low %v1858_v11, %v1874_v62  ;;  %v1915_v61 = vcombine.high %v1858_v11, %v1874_v62  ;;  %v1930_v30 = vcombine.low %v1865_v31, %v1881_v32  ;;  %v1931_v12 = vcombine.high %v1865_v31, %v1881_v32 }
 0x61d   :  { %v1922_v18 = vrot.slane %v1914_v54, %v13206_v13  ;;  %v1929_v56 = vrot.slane %v1915_v61, %v13206_v13  ;;  %v1938_v50 = vrot.slane %v1930_v30, %v13206_v13  ;;  %v1945_v46 = vrot.slane %v1931_v12, %v13206_v13 }
 0x61e   :  { %v1571_v9 = vpop.permute.xlu0 %1570 }
 0x61f   :  { %v1898_v16 = vcombine.low %v1547_v40, %v1571_v9  ;;  %v1899_v24 = vcombine.high %v1547_v40, %v1571_v9  ;;  %v14553_v57 = vpop.permute.xlu1 %1548 }
 0x621   :  { %v1906_v63 = vrot.slane %v1898_v16, %v13196_v4  ;;  %v1913_v38 = vrot.slane %v1899_v24, %v13196_v4 }
 0x622   :  { %v1501_v34 = vpop.permute.xlu0 %1500 }
 0x623   :  { %v1946_v8 = vcombine.low %v1890_v22, %v1906_v63  ;;  %v1947_v3 = vcombine.high %v1890_v22, %v1906_v63  ;;  %v1573_v5 = vpop.permute.xlu1 %1572  ;;  %v1962_v26 = vcombine.low %v1897_v27, %v1913_v38  ;;  %v2002_v44 = vcombine.low %v1501_v34, %v14548_v53 }
 0x624   :  { %v2034_v35 = vcombine.low %v14553_v57, %v1573_v5  ;;  %v1963_v37 = vcombine.high %v1897_v27, %v1913_v38  ;;  %v2003_v39 = vcombine.high %v1501_v34, %v14548_v53  ;;  %v2035_v40 = vcombine.high %v14553_v57, %v1573_v5 }
 0x625   :  { %v1954_v14 = vrot.slane %v1946_v8, %v13206_v13  ;;  %v1961_v6 = vrot.slane %v1947_v3, %v13206_v13  ;;  %v1970_v49 = vrot.slane %v1962_v26, %v13206_v13  ;;  %v2010_v51 = vrot.slane %v2002_v44, %v13196_v4 }
 0x626   :  { %v1537_v36 = vpop.permute.xlu0 %1536  ;;  %v2042_v52 = vrot.slane %v2034_v35, %v13196_v4  ;;  %v1977_v29 = vrot.slane %v1963_v37, %v13206_v13  ;;  %v2017_v24 = vrot.slane %v2003_v39, %v13196_v4  ;;  %v2049_v7 = vrot.slane %v2035_v40, %v13196_v4 }
 0x627   :  { %v1978_v15 = vcombine.low %v1922_v18, %v1954_v14  ;;  %v1979_v45 = vcombine.high %v1922_v18, %v1954_v14  ;;  %v1981_v60 = vcombine.high %v1929_v56, %v1961_v6  ;;  %v1980_v23 = vcombine.low %v1929_v56, %v1961_v6 }
 0x628   :  { %v1983_v48 = vcombine.high %v1938_v50, %v1970_v49  ;;  %v1982_v17 = vcombine.low %v1938_v50, %v1970_v49  ;;  %v2050_v33 = vcombine.low %v1994_v10, %v2010_v51  ;;  %v1985_v2 = vcombine.high %v1945_v46, %v1977_v29 }
 0x629   :  { %9351 = vxpose.xlu1.b32.start.end [1/1] (short) (narrow) %v1978_v15, 8  ;;  %9383 = vxpose.xlu0.b32.start.end [1/1] (short) (narrow) %v1979_v45, 8  ;;  %v1984_v62 = vcombine.low %v1945_v46, %v1977_v29  ;;  %v2051_v53 = vcombine.high %v1994_v10, %v2010_v51  ;;  %v2066_v63 = vcombine.low %v2001_v55, %v2017_v24 }
 0x62a   :  { %v1561_v25 = vpop.permute.xlu0 %1560  ;;  %v2058_v57 = vrot.slane %v2050_v33, %v13206_v13  ;;  %v2067_v31 = vcombine.high %v2001_v55, %v2017_v24 }
 0x62b   :  { %v2018_v42 = vcombine.low %v1537_v36, %v1561_v25  ;;  %v2019_v1 = vcombine.high %v1537_v36, %v1561_v25  ;;  %v2065_v59 = vrot.slane %v2051_v53, %v13206_v13  ;;  %v2074_v27 = vrot.slane %v2066_v63, %v13206_v13 }
 0x62c   :  { %v2081_v32 = vrot.slane %v2067_v31, %v13206_v13 }
 0x62d   :  { %v2026_v19 = vrot.slane %v2018_v42, %v13196_v4  ;;  %9447 = vxpose.xlu1.b32.start.end [1/1] (short) (narrow) %v1981_v60, 8  ;;  %9415 = vxpose.xlu0.b32.start.end [1/1] (short) (narrow) %v1980_v23, 8  ;;  %v2033_v11 = vrot.slane %v2019_v1, %v13196_v4 }
 0x62f   :  { %v2082_v43 = vcombine.low %v2026_v19, %v2042_v52  ;;  %v2083_v9 = vcombine.high %v2026_v19, %v2042_v52  ;;  %v2098_v22 = vcombine.low %v2033_v11, %v2049_v7  ;;  %v2099_v34 = vcombine.high %v2033_v11, %v2049_v7 }
 0x631   :  { %9511 = vxpose.xlu1.b32.start.end [1/1] (short) (narrow) %v1983_v48, 8  ;;  %9479 = vxpose.xlu0.b32.start.end [1/1] (short) (narrow) %v1982_v17, 8  ;;  %v2090_v16 = vrot.slane %v2082_v43, %v13206_v13  ;;  %v2097_v54 = vrot.slane %v2083_v9, %v13206_v13  ;;  %v2106_v3 = vrot.slane %v2098_v22, %v13206_v13 }
 0x632   :  { %v2113_v14 = vrot.slane %v2099_v34, %v13206_v13 }
 0x633   :  { %v2115_v0 = vcombine.high %v2058_v57, %v2090_v16  ;;  %v2114_v21 = vcombine.low %v2058_v57, %v2090_v16  ;;  %v2117_v38 = vcombine.high %v2065_v59, %v2097_v54  ;;  %v2116_v8 = vcombine.low %v2065_v59, %v2097_v54 }
 0x634   :  { %v2119_v61 = vcombine.high %v2074_v27, %v2106_v3  ;;  %v2118_v18 = vcombine.low %v2074_v27, %v2106_v3  ;;  %v2121_v5 = vcombine.high %v2081_v32, %v2113_v14  ;;  %v2120_v36 = vcombine.low %v2081_v32, %v2113_v14 }
 0x635   :  { %9575 = vxpose.xlu1.b32.start.end [1/1] (short) (narrow) %v1985_v2, 8  ;;  %9543 = vxpose.xlu0.b32.start.end [1/1] (short) (narrow) %v1984_v62, 8 }
 0x639   :  { %9639 = vxpose.xlu1.b32.start.end [1/1] (short) (narrow) %v2115_v0, 8  ;;  %9607 = vxpose.xlu0.b32.start.end [1/1] (short) (narrow) %v2114_v21, 8 }
 0x63d   :  { %9703 = vxpose.xlu1.b32.start.end [1/1] (short) (narrow) %v2117_v38, 8  ;;  %9671 = vxpose.xlu0.b32.start.end [1/1] (short) (narrow) %v2116_v8, 8 }
 0x641   :  { %9767 = vxpose.xlu1.b32.start.end [1/1] (short) (narrow) %v2119_v61, 8  ;;  %9735 = vxpose.xlu0.b32.start.end [1/1] (short) (narrow) %v2118_v18, 8 }
 0x645   :  { %9831 = vxpose.xlu1.b32.start.end [1/1] (short) (narrow) %v2121_v5, 8  ;;  %9799 = vxpose.xlu0.b32.start.end [1/1] (short) (narrow) %v2120_v36, 8 }
 0x674   :  { %v14594_v26 = vpop.f32.mrb[8].mxu0 }
 0x675   :  { %v12469_v15 = vpop.f32.mrb[9].mxu0 }
 0x67c   :  { %v14596_v45 = vpop.f32.mrb[10].mxu0 }
 0x67d   :  { %v12476_v6 = vpop.f32.mrb[11].mxu0 }
 0x6a9   :  { %v9367_v30 = vpop.trf.xlu1  ;;  %v9399_v44 = vpop.trf.xlu0 }
 0x6ad   :  { %v9463_v35 = vpop.trf.xlu1  ;;  %v9431_v56 = vpop.trf.xlu0 }
 0x6ae   :  { %v9880_v41 = vcombine.high %v9399_v44, %v9463_v35  ;;  %v9864_v37 = vcombine.high %v9367_v30, %v9431_v56  ;;  %v14598_v25 = vpop.f32.mrb[12].mxu0  ;;  %v9879_v49 = vcombine.low %v9399_v44, %v9463_v35  ;;  %v9863_v12 = vcombine.low %v9367_v30, %v9431_v56 }
 0x6af   :  { %v12483_v42 = vpop.f32.mrb[13].mxu0 }
 0x6b0   :  { %v14601_v60 = vrot.slane %v9880_v41, %v13196_v4  ;;  %v14604_v23 = vrot.slane %v9864_v37, %v13196_v4  ;;  %v14613_v1 = vrot.slane %v9879_v49, %v13196_v4  ;;  %v14616_v43 = vrot.slane %v9863_v12, %v13196_v4 }
 0x6b1   :  { %v14606_v50 = vpop.f32.mrb[16].mxu1  ;;  %v9527_v51 = vpop.trf.xlu1 }
 0x6b2   :  { %v9943_v52 = vcombine.low %v14604_v23, %v14601_v60  ;;  %v9944_v19 = vcombine.high %v14604_v23, %v14601_v60  ;;  %v9495_v10 = vpop.trf.xlu0  ;;  %v12490_v29 = vpop.f32.mrb[17].mxu1  ;;  %v9927_v62 = vcombine.low %v14616_v43, %v14613_v1 }
 0x6b4   :  { %v9935_v63 = vrot.slane %v9927_v62, %v13206_v13  ;;  %v14645_v14 = vrot.slane %v9944_v19, %v13206_v13 }
 0x6b5   :  { %v9591_v48 = vpop.trf.xlu1  ;;  %v14618_v17 = vpop.f32.mrb[14].mxu0 }
 0x6b6   :  { %v9911_v39 = vcombine.low %v9527_v51, %v9591_v48  ;;  %v9912_v46 = vcombine.high %v9527_v51, %v9591_v48  ;;  %v9559_v33 = vpop.trf.xlu0  ;;  %v12497_v40 = vpop.f32.mrb[15].mxu0 }
 0x6b7   :  { %v9895_v20 = vcombine.low %v9495_v10, %v9559_v33  ;;  %v9896_v2 = vcombine.high %v9495_v10, %v9559_v33 }
 0x6b8   :  { %v9919_v11 = vrot.slane %v9911_v39, %v13196_v4  ;;  %v14622_v9 = vrot.slane %v9912_v46, %v13196_v4 }
 0x6b9   :  { %v9903_v16 = vrot.slane %v9895_v20, %v13196_v4  ;;  %v14628_v24 = vrot.slane %v9896_v2, %v13196_v4  ;;  %v14630_v53 = vpop.f32.mrb[18].mxu1  ;;  %v9655_v7 = vpop.trf.xlu1 }
 0x6ba   :  { %v9623_v57 = vpop.trf.xlu0  ;;  %v12504_v55 = vpop.f32.mrb[19].mxu1 }
 0x6bb   :  { %v9959_v22 = vcombine.low %v9903_v16, %v9919_v11  ;;  %v9976_v0 = vcombine.high %v14628_v24, %v14622_v9  ;;  %v9960_v20 = vcombine.high %v9903_v16, %v9919_v11 }
 0x6bd   :  { %v9719_v21 = vpop.trf.xlu1  ;;  %v14634_v54 = vpop.f32.mrb[16].mxu0  ;;  %v9967_v59 = vrot.slane %v9959_v22, %v13206_v13  ;;  %v14639_v3 = vrot.slane %v9976_v0, %v13206_v13  ;;  %v9974_v16 = vrot.slane %v9960_v20, %v13206_v13 }
 0x6be   :  { %v10016_v34 = vcombine.high %v9655_v7, %v9719_v21  ;;  %v9687_v38 = vpop.trf.xlu0  ;;  %v12511_v8 = vpop.f32.mrb[17].mxu0  ;;  %v10015_v32 = vcombine.low %v9655_v7, %v9719_v21  ;;  %v9928_v7 = vcombine.high %v14616_v43, %v14613_v1 }
 0x6bf   :  { %v10000_v31 = vcombine.high %v9623_v57, %v9687_v38  ;;  %v9992_v27 = vcombine.high %v9935_v63, %v9967_v59  ;;  %v9991_v61 = vcombine.low %v9935_v63, %v9967_v59  ;;  %v9999_v5 = vcombine.low %v9623_v57, %v9687_v38 }
 0x6c0   :  { %v14642_v18 = vrot.slane %v10016_v34, %v13196_v4  ;;  %v9998_v35 = vcombine.high %v14645_v14, %v14639_v3  ;;  %v9997_v56 = vcombine.low %v14645_v14, %v14639_v3  ;;  %v10023_v37 = vrot.slane %v10015_v32, %v13196_v4 }
 0x6c1   :  { %v14648_v36 = vrot.slane %v10000_v31, %v13196_v4  ;;  %10167 = vxpose.xlu0.b32.start [1/2] (short) (narrow) %v9992_v27, 8  ;;  %10135 = vxpose.xlu1.b32.start [1/2] (short) (narrow) %v9991_v61, 8  ;;  %v14650_v15 = vpop.f32.mrb[20].mxu1  ;;  %v9783_v6 = vpop.trf.xlu1  ;;  %v10007_v42 = vrot.slane %v9999_v5, %v13196_v4  ;;  %v9942_v34 = vrot.slane %v9928_v7, %v13206_v13 }
 0x6c2   :  { %v9751_v30 = vpop.trf.xlu0  ;;  %v12518_v44 = vpop.f32.mrb[21].mxu1 }
 0x6c3   :  { %v10080_v41 = vcombine.high %v14648_v36, %v14642_v18  ;;  %v10063_v46 = vcombine.low %v10007_v42, %v10023_v37  ;;  %v10064_v43 = vcombine.high %v10007_v42, %v10023_v37  ;;  %v9993_v38 = vcombine.low %v9942_v34, %v9974_v16 }
 0x6c4   :  { %v9994_v8 = vcombine.high %v9942_v34, %v9974_v16 }
 0x6c5   :  { %v9847_v49 = vpop.trf.xlu1  ;;  %v10071_v57 = vrot.slane %v10063_v46, %v13206_v13  ;;  %v14678_v0 = vrot.slane %v10080_v41, %v13206_v13  ;;  %v10078_v27 = vrot.slane %v10064_v43, %v13206_v13 }
 0x6c6   :  { %v10047_v12 = vcombine.low %v9783_v6, %v9847_v49  ;;  %v10048_v51 = vcombine.high %v9783_v6, %v9847_v49  ;;  %v9815_v19 = vpop.trf.xlu0 }
 0x6c7   :  { %v10031_v10 = vcombine.low %v9751_v30, %v9815_v19  ;;  %v10032_v29 = vcombine.high %v9751_v30, %v9815_v19 }
 0x6c8   :  { %v10055_v48 = vrot.slane %v10047_v12, %v13196_v4  ;;  %v14662_v39 = vrot.slane %v10048_v51, %v13196_v4 }
 0x6c9   :  { %v10039_v33 = vrot.slane %v10031_v10, %v13196_v4  ;;  %v14666_v40 = vrot.slane %v10032_v29, %v13196_v4 }
 0x6cb   :  { %v10095_v2 = vcombine.low %v10039_v33, %v10055_v48  ;;  %v10112_v62 = vcombine.high %v14666_v40, %v14662_v39  ;;  %v10096_v21 = vcombine.high %v10039_v33, %v10055_v48 }
 0x6cd   :  { %v10103_v55 = vrot.slane %v10095_v2, %v13206_v13  ;;  %v14675_v22 = vrot.slane %v10112_v62, %v13206_v13  ;;  %v10110_v31 = vrot.slane %v10096_v21, %v13206_v13 }
 0x6cf   :  { %v10128_v63 = vcombine.high %v10071_v57, %v10103_v55  ;;  %v10127_v11 = vcombine.low %v10071_v57, %v10103_v55  ;;  %v10134_v59 = vcombine.high %v14678_v0, %v14675_v22  ;;  %v10133_v1 = vcombine.low %v14678_v0, %v14675_v22 }
 0x6d0   :  { %v10129_v32 = vcombine.low %v10078_v27, %v10110_v31  ;;  %v10130_v5 = vcombine.high %v10078_v27, %v10110_v31 }
 0x6d1   :  { %10168 = vxpose.xlu0.b32.end [2/2] (short) (narrow) %v10128_v63, 8  ;;  %10136 = vxpose.xlu1.b32.end [2/2] (short) (narrow) %v10127_v11, 8 }
 0x6d5   :  { %10199 = vxpose.xlu0.b32.start [1/2] (short) (narrow) %v9993_v38, 8  ;;  %10231 = vxpose.xlu1.b32.start [1/2] (short) (narrow) %v9994_v8, 8 }
 0x6d7   :  { %v14688_v61 = vpop.f32.mrb[18].mxu0 }
 0x6d8   :  { %v14690_v6 = vpop.f32.mrb[22].mxu1  ;;  %v14692_v30 = vpop.f32.mrb[19].mxu0  ;;  %v9178_v57 = vsel %vm4219_vm2, %v14688_v61, -inf }
 0x6d9   :  { %v14694_v44 = vpop.f32.mrb[23].mxu1  ;;  %10200 = vxpose.xlu0.b32.end [2/2] (short) (narrow) %v10129_v32, 8  ;;  %10232 = vxpose.xlu1.b32.end [2/2] (short) (narrow) %v10130_v5, 8  ;;  %v9175_v2 = vsel %vm4219_vm2, %v14692_v30, -inf  ;;  %v9190_v62 = vsel %vm4219_vm2, %v14690_v6, -inf  ;;  %v9975_v32 = vcombine.low %v14628_v24, %v14622_v9  ;;  %v10111_v5 = vcombine.low %v14666_v40, %v14662_v39 }
 0x6da   :  { %v9187_v20 = vsel %vm4219_vm2, %v14694_v44, -inf }
 0x6dc   :  { %v14696_v41 = vpop.f32.mrb[20].mxu0  ;;  %v14698_v37 = vpop.f32.mrb[24].mxu1 }
 0x6dd   :  { %v14700_v42 = vpop.f32.mrb[21].mxu0  ;;  %v14702_v49 = vpop.f32.mrb[25].mxu1  ;;  %v9184_v55 = vsel %vm4219_vm2, %v14696_v41, -inf  ;;  %v9202_v21 = vsel %vm4219_vm2, %v14698_v37, -inf }
 0x6de   :  { %v9199_v7 = vsel %vm4219_vm2, %v14702_v49, -inf  ;;  %v9181_v63 = vsel %vm4219_vm2, %v14700_v42, -inf }
 0x6e0   :  { %v14704_v12 = vpop.f32.mrb[22].mxu0  ;;  %v14706_v51 = vpop.f32.mrb[26].mxu1 }
 0x6e1   :  { %v14708_v19 = vpop.f32.mrb[23].mxu0  ;;  %v14710_v10 = vpop.f32.mrb[27].mxu1  ;;  %v9214_v11 = vsel %vm4219_vm2, %v14706_v51, -inf  ;;  %v9196_v43 = vsel %vm4219_vm2, %v14704_v12, -inf }
 0x6e2   :  { %v9211_v16 = vsel %vm4219_vm2, %v14710_v10, -inf  ;;  %v9193_v34 = vsel %vm4219_vm2, %v14708_v19, -inf }
 0x6e4   :  { %v14712_v29 = vpop.f32.mrb[24].mxu0 }
 0x6e5   :  { %v14714_v48 = vpop.f32.mrb[25].mxu0  ;;  %v9208_v38 = vsel %vm4219_vm2, %v14712_v29, -inf }
 0x6e6   :  { %v9205_v8 = vsel %vm4219_vm2, %v14714_v48, -inf }
 0x6e8   :  { %v14716_v46 = vpop.f32.mrb[26].mxu0 }
 0x6e9   :  { %v14718_v33 = vpop.f32.mrb[27].mxu0  ;;  %v9220_v27 = vsel %vm4219_vm2, %v14716_v46, -inf }
 0x6ea   :  { %v9217_v31 = vsel %vm4219_vm2, %v14718_v33, -inf }
 0x700   :  { %9188 = vmax.xlane.f32.xlu1 %v9187_v20  ;;  %v9983_v20 = vrot.slane %v9975_v32, %v13206_v13 }
 0x704   :  { %9176 = vmax.xlane.f32.xlu1 %v9175_v2  ;;  %v10079_v2 = vcombine.low %v14648_v36, %v14642_v18 }
 0x706   :  { %9191 = vmax.xlane.f32.xlu0 %v9190_v62  ;;  %v9951_v62 = vrot.slane %v9943_v52, %v13206_v13 }
 0x708   :  { %9200 = vmax.xlane.f32.xlu1 %v9199_v7  ;;  %v9995_v7 = vcombine.low %v9951_v62, %v9983_v20  ;;  %v9996_v40 = vcombine.high %v9951_v62, %v9983_v20 }
 0x70a   :  { %9179 = vmax.xlane.f32.xlu0 %v9178_v57  ;;  %v10119_v57 = vrot.slane %v10111_v5, %v13206_v13 }
 0x70c   :  { %9185 = vmax.xlane.f32.xlu1 %v9184_v55  ;;  %v10087_v55 = vrot.slane %v10079_v2, %v13206_v13 }
 0x70e   :  { %9203 = vmax.xlane.f32.xlu0 %v9202_v21  ;;  %v10131_v9 = vcombine.low %v10087_v55, %v10119_v57  ;;  %v10132_v21 = vcombine.high %v10087_v55, %v10119_v57 }
 0x710   :  { %9182 = vmax.xlane.f32.xlu1 %v9181_v63 }
 0x712   :  { %9215 = vmax.xlane.f32.xlu0 %v9214_v11 }
 0x714   :  { %9212 = vmax.xlane.f32.xlu1 %v9211_v16 }
 0x716   :  { %9197 = vmax.xlane.f32.xlu0 %v9196_v43 }
 0x718   :  { %9194 = vmax.xlane.f32.xlu1 %v9193_v34 }
 0x71a   :  { %9209 = vmax.xlane.f32.xlu0 %v9208_v38 }
 0x71c   :  { %9206 = vmax.xlane.f32.xlu1 %v9205_v8 }
 0x71e   :  { %9218 = vmax.xlane.f32.xlu0 %v9217_v31 }
 0x720   :  { %9221 = vmax.xlane.f32.xlu1 %v9220_v27 }
 0x74b   :  { %10263 = vxpose.xlu0.b32.start [1/2] (short) (narrow) %v9995_v7, 8 }
 0x74d   :  { %v10183_v24 = vpop.trf.xlu0  ;;  %v10151_v39 = vpop.trf.xlu1 }
 0x74f   :  { %10264 = vxpose.xlu0.b32.end [2/2] (short) (narrow) %v10131_v9, 8 }
 0x753   :  { %10295 = vxpose.xlu1.b32.start [1/2] (short) (narrow) %v9996_v40, 8 }
 0x755   :  { %v10215_v63 = vpop.trf.xlu0  ;;  %v10247_v18 = vpop.trf.xlu1 }
 0x756   :  { %v10391_v36 = vcombine.low %v10151_v39, %v10215_v63  ;;  %v10392_v11 = vcombine.high %v10151_v39, %v10215_v63  ;;  %v10407_v16 = vcombine.low %v10183_v24, %v10247_v18  ;;  %v10408_v60 = vcombine.high %v10183_v24, %v10247_v18 }
 0x757   :  { %10296 = vxpose.xlu1.b32.end [2/2] (short) (narrow) %v10132_v21, 8 }
 0x758   :  { %v14766_v23 = vrot.slane %v10391_v36, %v13196_v4  ;;  %v14769_v52 = vrot.slane %v10392_v11, %v13196_v4  ;;  %v14772_v43 = vrot.slane %v10407_v16, %v13196_v4  ;;  %v14775_v34 = vrot.slane %v10408_v60, %v13196_v4 }
 0x75a   :  { %v10455_v38 = vcombine.low %v14766_v23, %v14772_v43  ;;  %v10456_v8 = vcombine.high %v14766_v23, %v14772_v43  ;;  %v10471_v31 = vcombine.low %v14769_v52, %v14775_v34  ;;  %v10472_v27 = vcombine.high %v14769_v52, %v14775_v34 }
 0x78d   :  { %v9189_v32 = vpop.xlane.xlu1 %9188 }
 0x78e   :  { %v9227_v5 = vsub.f32 %v14694_v44, %v9189_v32 }
 0x790   :  { %v9247_v20 = vmul.f32 1.442695, %v9227_v5 }
 0x791   :  { %v9177_v2 = vpop.xlane.xlu1 %9176 }
 0x792   :  { %12820 = vpow2.f32 %v9247_v20  ;;  %v9223_v21 = vsub.f32 %v14692_v30, %v9177_v2 }
 0x793   :  { %v9192_v62 = vpop.xlane.xlu0 %9191 }
 0x794   :  { %v9228_v7 = vsub.f32 %v14690_v6, %v9192_v62  ;;  %v9239_v60 = vmul.f32 1.442695, %v9223_v21 }
 0x795   :  { %v9201_v57 = vpop.xlane.xlu1 %9200 }
 0x796   :  { %v9249_v55 = vmul.f32 1.442695, %v9228_v7  ;;  %v9231_v9 = vsub.f32 %v14702_v49, %v9201_v57 }
 0x797   :  { %v9180_v24 = vpop.xlane.xlu0 %9179 }
 0x798   :  { %12822 = vpow2.f32 %v9249_v55  ;;  %v9224_v39 = vsub.f32 %v14688_v61, %v9180_v24  ;;  %v9255_v63 = vmul.f32 1.442695, %v9231_v9 }
 0x799   :  { %v9186_v40 = vpop.xlane.xlu1 %9185 }
 0x79a   :  { %v9241_v18 = vmul.f32 1.442695, %v9224_v39  ;;  %v9226_v6 = vsub.f32 %v14696_v41, %v9186_v40 }
 0x79b   :  { %v9204_v44 = vpop.xlane.xlu0 %9203 }
 0x79c   :  { %v14790_v36 = vpop.eup %12820  ;;  %12824 = vpow2.f32 %v9241_v18  ;;  %v9232_v11 = vsub.f32 %v14698_v37, %v9204_v44  ;;  %v9245_v30 = vmul.f32 1.442695, %v9226_v6 }
 0x79d   :  { %v9183_v16 = vpop.xlane.xlu1 %9182  ;;  %v9283_v49 = vsel %vm4219_vm2, %v14790_v36, 0.0  ;;  %12826 = vpow2.f32 %v9255_v63 }
 0x79e   :  { %v9257_v61 = vmul.f32 1.442695, %v9232_v11  ;;  %9284 = vadd.xlane.f32.xlu0 %v9283_v49  ;;  %v9225_v57 = vsub.f32 %v14700_v42, %v9183_v16 }
 0x79f   :  { %v9216_v32 = vpop.xlane.xlu0 %9215 }
 0x7a0   :  { %12828 = vpow2.f32 %v9257_v61  ;;  %v9236_v5 = vsub.f32 %v14706_v51, %v9216_v32  ;;  %v9243_v63 = vmul.f32 1.442695, %v9225_v57 }
 0x7a1   :  { %v9213_v20 = vpop.xlane.xlu1 %9212  ;;  %12830 = vpow2.f32 %v9239_v60 }
 0x7a2   :  { %v14797_v2 = vpop.eup %12822  ;;  %v9235_v37 = vsub.f32 %v14710_v10, %v9213_v20  ;;  %12832 = vpow2.f32 %v9245_v30  ;;  %v9265_v55 = vmul.f32 1.442695, %v9236_v5 }
 0x7a3   :  { %v9198_v41 = vpop.xlane.xlu0 %9197  ;;  %v9286_v62 = vsel %vm4219_vm2, %v14797_v2, 0.0 }
 0x7a4   :  { %v9263_v7 = vmul.f32 1.442695, %v9235_v37  ;;  %9287 = vadd.xlane.f32.xlu1 %v9286_v62  ;;  %v9230_v42 = vsub.f32 %v14704_v12, %v9198_v41 }
 0x7a5   :  { %v9195_v9 = vpop.xlane.xlu1 %9194 }
 0x7a6   :  { %v14803_v24 = vpop.eup %12824  ;;  %12834 = vpow2.f32 %v9263_v7  ;;  %v9229_v51 = vsub.f32 %v14708_v19, %v9195_v9  ;;  %v9253_v32 = vmul.f32 1.442695, %v9230_v42 }
 0x7a7   :  { %v9210_v39 = vpop.xlane.xlu0 %9209  ;;  %v9274_v10 = vsel %vm4219_vm2, %v14803_v24, 0.0  ;;  %v14808_v40 = vpop.eup %12826  ;;  %12836 = vpow2.f32 %v9265_v55 }
 0x7a8   :  { %v9251_v21 = vmul.f32 1.442695, %v9229_v51  ;;  %9275 = vadd.xlane.f32.xlu1 %v9274_v10  ;;  %v9295_v19 = vsel %vm4219_vm2, %v14808_v40, 0.0  ;;  %v9234_v12 = vsub.f32 %v14712_v29, %v9210_v39 }
 0x7a9   :  { %v9207_v18 = vpop.xlane.xlu1 %9206 }
 0x7aa   :  { %v14810_v44 = vpop.eup %12828  ;;  %12838 = vpow2.f32 %v9251_v21  ;;  %v9233_v11 = vsub.f32 %v14714_v48, %v9207_v18  ;;  %v9261_v41 = vmul.f32 1.442695, %v9234_v12 }
 0x7ab   :  { %v9219_v6 = vpop.xlane.xlu0 %9218  ;;  %v9298_v16 = vsel %vm4219_vm2, %v14810_v44, 0.0  ;;  %v14818_v49 = vpop.eup %12830  ;;  %12840 = vpow2.f32 %v9243_v63 }
 0x7ac   :  { %v9259_v60 = vmul.f32 1.442695, %v9233_v11  ;;  %v9237_v61 = vsub.f32 %v14718_v33, %v9219_v6  ;;  %9296 = vadd.xlane.f32.xlu1 %v9295_v19  ;;  %9299 = vadd.xlane.f32.xlu0 %v9298_v16  ;;  %v14822_v30 = vpop.eup %12832  ;;  %v9271_v20 = vsel %vm4219_vm2, %v14818_v49, 0.0 }
 0x7ad   :  { %v9222_v5 = vpop.xlane.xlu1 %9221  ;;  %v9280_v7 = vsel %vm4219_vm2, %v14822_v30, 0.0 }
 0x7ae   :  { %12842 = vpow2.f32 %v9259_v60  ;;  %v9267_v48 = vmul.f32 1.442695, %v9237_v61  ;;  %v9238_v62 = vsub.f32 %v14716_v46, %v9222_v5 }
 0x7b0   :  { %v14826_v37 = vpop.eup %12834  ;;  %12844 = vpow2.f32 %v9267_v48  ;;  %9272 = vadd.xlane.f32.xlu0 %v9271_v20  ;;  %v9269_v9 = vmul.f32 1.442695, %v9238_v62 }
 0x7b1   :  { %v9307_v33 = vsel %vm4219_vm2, %v14826_v37, 0.0  ;;  %12846 = vpow2.f32 %v9253_v32  ;;  %v14831_v29 = vpop.eup %12836 }
 0x7b2   :  { %9308 = vadd.xlane.f32.xlu1 %v9307_v33  ;;  %12848 = vpow2.f32 %v9261_v41  ;;  %v9310_v39 = vsel %vm4219_vm2, %v14831_v29, 0.0 }
 0x7b3   :  { %12850 = vpow2.f32 %v9269_v9 }
 0x7b4   :  { %v14835_v57 = vpop.eup %12838  ;;  %9281 = vadd.xlane.f32.xlu0 %v9280_v7 }
 0x7b5   :  { %v9289_v55 = vsel %vm4219_vm2, %v14835_v57, 0.0  ;;  %v12841_v51 = vpop.eup %12840 }
 0x7b6   :  { %9290 = vadd.xlane.f32.xlu1 %v9289_v55  ;;  %v9277_v63 = vsel %vm4219_vm2, %v12841_v51, 0.0 }
 0x7b8   :  { %v14841_v46 = vpop.eup %12842  ;;  %9311 = vadd.xlane.f32.xlu0 %v9310_v39 }
 0x7b9   :  { %v9301_v10 = vsel %vm4219_vm2, %v14841_v46, 0.0 }
 0x7ba   :  { %v14845_v21 = vpop.eup %12844  ;;  %9302 = vadd.xlane.f32.xlu1 %v9301_v10 }
 0x7bb   :  { %v14848_v18 = vpop.eup %12846  ;;  %v9313_v42 = vsel %vm4219_vm2, %v14845_v21, 0.0 }
 0x7bc   :  { %9278 = vadd.xlane.f32.xlu0 %v9277_v63  ;;  %v9292_v11 = vsel %vm4219_vm2, %v14848_v18, 0.0  ;;  %v14854_v6 = vpop.eup %12848 }
 0x7bd   :  { %v9304_v19 = vsel %vm4219_vm2, %v14854_v6, 0.0  ;;  %v14858_v16 = vpop.eup %12850 }
 0x7be   :  { %9314 = vadd.xlane.f32.xlu1 %v9313_v42  ;;  %v9316_v60 = vsel %vm4219_vm2, %v14858_v16, 0.0 }
 0x7c0   :  { %9293 = vadd.xlane.f32.xlu0 %v9292_v11 }
 0x7c4   :  { %9305 = vadd.xlane.f32.xlu0 %v9304_v19 }
 0x7c8   :  { %9317 = vadd.xlane.f32.xlu0 %v9316_v60 }
 0x7cb   :  { %v14884_v14 = vpop.trf.xlu0 }
 0x7d3   :  { %v14882_v3 = vpop.trf.xlu1 }
 0x7f1   :  { %10359 = vxpose.xlu1.b32.start [1/2] (short) (narrow) %v9998_v35, 8 }
 0x7f5   :  { %10327 = vxpose.xlu0.b32.start [1/2] (short) (narrow) %v9997_v56, 8  ;;  %10360 = vxpose.xlu1.b32.end [2/2] (short) (narrow) %v10134_v59, 8 }
 0x7f9   :  { %10328 = vxpose.xlu0.b32.end [2/2] (short) (narrow) %v10133_v1, 8  ;;  %6236 = vxpose.xlu1.b32.start.end [1/1] (short) (narrow) %v14596_v45, 16 }
 0x7fd   :  { %6204 = vxpose.xlu0.b32.start.end [1/1] (short) (narrow) %v14594_v26, 16 }
 0x7fe   :  { %6300 = vxpose.xlu1.b32.start.end [1/1] (short) (narrow) %v14606_v50, 16 }
 0x802   :  { %6268 = vxpose.xlu0.b32.start.end [1/1] (short) (narrow) %v14598_v25, 16 }
 0x803   :  { %6364 = vxpose.xlu1.b32.start.end [1/1] (short) (narrow) %v14630_v53, 16 }
 0x807   :  { %6332 = vxpose.xlu0.b32.start.end [1/1] (short) (narrow) %v14618_v17, 16 }
 0x808   :  { %6428 = vxpose.xlu1.b32.start.end [1/1] (short) (narrow) %v14650_v15, 16 }
 0x80c   :  { %6396 = vxpose.xlu0.b32.start.end [1/1] (short) (narrow) %v14634_v54, 16 }
 0x82b   :  { %v9285_v45 = vpop.xlane.xlu0 %9284 }
 0x831   :  { %v9288_v35 = vpop.xlane.xlu1 %9287 }
 0x835   :  { %v9276_v56 = vpop.xlane.xlu1 %9275 }
 0x836   :  { %12852 = vrcp.f32 %v9276_v56 }
 0x839   :  { %v9300_v26 = vpop.xlane.xlu0 %9299  ;;  %v9297_v48 = vpop.xlane.xlu1 %9296 }
 0x83d   :  { %v9273_v50 = vpop.xlane.xlu0 %9272 }
 0x83e   :  { %12854 = vrcp.f32 %v9273_v50 }
 0x840   :  { %v12853_v53 = vpop.eup %12852 }
 0x841   :  { %v9282_v25 = vpop.xlane.xlu0 %9281  ;;  %v9336_v17 = vmul.f32 %v12853_v53, %v14803_v24  ;;  %v9309_v24 = vpop.xlane.xlu1 %9308 }
 0x842   :  { %12856 = vrcp.f32 %v9282_v25 }
 0x845   :  { %v9312_v22 = vpop.xlane.xlu0 %9311 }
 0x848   :  { %v12855_v0 = vpop.eup %12854 }
 0x849   :  { %v9335_v54 = vmul.f32 %v12855_v0, %v14818_v49  ;;  %v9279_v15 = vpop.xlane.xlu0 %9278  ;;  %v9291_v49 = vpop.xlane.xlu1 %9290  ;;  %v10463_v0 = vrot.slane %v10455_v38, %v13206_v13 }
 0x84a   :  { %12858 = vrcp.f32 %v9279_v15 }
 0x84b   :  { %v12686_v59 = vpack.c.bf16 %v9336_v17, %v9335_v54  ;;  %12860 = vrcp.f32 %v9285_v45 }
 0x84c   :  { %v12857_v1 = vpop.eup %12856  ;;  %12862 = vrcp.f32 %v9288_v35 }
 0x84d   :  { %12688 = vmatpush3.bf16.xpose.msk.msra.mxu1 %vm14238_vm4, %v12686_v59  ;;  %v9338_v32 = vmul.f32 %v12857_v1, %v14822_v30  ;;  %v9294_v20 = vpop.xlane.xlu0 %9293  ;;  %v9303_v33 = vpop.xlane.xlu1 %9302 }
 0x84e   :  { %12693 = vmatprep.subr.bf16.mxu1 %v15390_v58  ;;  %12864 = vrcp.f32 %v9294_v20  ;;  %v14932_v20 = vrot.slane %v10472_v27, %v13206_v13 }
 0x84f   :  { %12866 = vrcp.f32 %v9297_v48 }
 0x850   :  { %12868 = vrcp.f32 %v9291_v49 }
 0x851   :  { %v9306_v41 = vpop.xlane.xlu0 %9305  ;;  %v9315_v62 = vpop.xlane.xlu1 %9314  ;;  %12870 = vrcp.f32 %v9300_v26 }
 0x852   :  { %12872 = vrcp.f32 %v9309_v24 }
 0x853   :  { %12874 = vrcp.f32 %v9312_v22 }
 0x854   :  { %v12859_v61 = vpop.eup %12858  ;;  %12876 = vrcp.f32 %v9303_v33 }
 0x855   :  { %v9337_v12 = vmul.f32 %v12859_v61, %v12841_v51  ;;  %v9318_v30 = vpop.xlane.xlu0 %9317  ;;  %12878 = vrcp.f32 %v9306_v41  ;;  %v12861_v51 = vpop.eup %12860 }
 0x856   :  { %12880 = vrcp.f32 %v9318_v30  ;;  %v12863_v10 = vpop.eup %12862 }
 0x857   :  { %v12690_v5 = vpack.c.bf16 %v9338_v32, %v9337_v12  ;;  %12882 = vrcp.f32 %v9315_v62  ;;  %v9340_v50 = vmul.f32 %v12863_v10, %v14797_v2 }
 0x858   :  { %v12865_v63 = vpop.eup %12864 }
 0x859   :  { %12692 = vmatpush3.bf16.xpose.msk.msra.mxu0 %vm14238_vm4, %v12690_v5  ;;  %v12867_v19 = vpop.eup %12866  ;;  %v9342_v25 = vmul.f32 %v12865_v63, %v14848_v18 }
 0x85a   :  { %12697 = vmatprep.subr.bf16.mxu0 %v15390_v58  ;;  %v12869_v45 = vpop.eup %12868  ;;  %v9343_v61 = vmul.f32 %v12867_v19, %v14808_v40  ;;  %v14924_v40 = vrot.slane %v10471_v31, %v13206_v13 }
 0x85b   :  { %v12871_v26 = vpop.eup %12870  ;;  %v9341_v15 = vmul.f32 %v12869_v45, %v14835_v57  ;;  %v10470_v57 = vrot.slane %v10456_v8, %v13206_v13 }
 0x85c   :  { %v12873_v53 = vpop.eup %12872  ;;  %v9344_v32 = vmul.f32 %v12871_v26, %v14810_v44 }
 0x85d   :  { %v12875_v54 = vpop.eup %12874  ;;  %v14953_v30 = vmul.f32 %v12873_v53, %v14826_v37 }
 0x85e   :  { %v12702_v52 = vpack.c.bf16 %v9344_v32, %v9343_v61  ;;  %v14944_v34 = vmul.f32 %v12875_v54, %v14831_v29 }
 0x871   :  { %v10375_v7 = vpop.trf.xlu1 }
 0x872   :  { %v10439_v55 = vcombine.low %v14882_v3, %v10375_v7  ;;  %v10440_v22 = vcombine.high %v14882_v3, %v10375_v7  ;;  %v12877_v3 = vpop.eup %12876 }
 0x873   :  { %v12879_v48 = vpop.eup %12878  ;;  %v9345_v7 = vmul.f32 %v12877_v3, %v14841_v46 }
 0x874   :  { %v10447_v42 = vrot.slane %v10439_v55, %v13196_v4  ;;  %v10454_v5 = vrot.slane %v10440_v22, %v13196_v4  ;;  %v12881_v49 = vpop.eup %12880  ;;  %v9346_v27 = vmul.f32 %v12879_v48, %v14854_v6 }
 0x875   :  { %v10343_v9 = vpop.trf.xlu0  ;;  %v12883_v44 = vpop.eup %12882  ;;  %v14948_v62 = vmul.f32 %v12881_v49, %v14858_v16 }
 0x876   :  { %v10423_v39 = vcombine.low %v14884_v14, %v10343_v9  ;;  %v10424_v60 = vcombine.high %v14884_v14, %v10343_v9  ;;  %v9339_v14 = vmul.f32 %v12861_v51, %v14790_v36  ;;  %v12698_v36 = vpack.c.bf16 %v9342_v25, %v9341_v15 }
 0x877   :  { %v14957_v55 = vmul.f32 %v12883_v44, %v14845_v21  ;;  %v12706_v19 = vpack.c.bf16 %v9346_v27, %v9345_v7  ;;  %v12710_v21 = vpack.c.bf16 %v14944_v34, %v14953_v30 }
 0x878   :  { %v10431_v11 = vrot.slane %v10423_v39, %v13196_v4  ;;  %v10438_v59 = vrot.slane %v10424_v60, %v13196_v4  ;;  %v12694_v24 = vpack.c.bf16 %v9340_v50, %v9339_v14 }
 0x879   :  { %v6252_v35 = vpop.trf.xlu1  ;;  %v12714_v60 = vpack.c.bf16 %v14948_v62, %v14957_v55 }
 0x87a   :  { %v10487_v56 = vcombine.low %v10431_v11, %v10447_v42  ;;  %v10488_v2 = vcombine.high %v10431_v11, %v10447_v42  ;;  %v10503_v43 = vcombine.low %v10438_v59, %v10454_v5  ;;  %v10504_v9 = vcombine.high %v10438_v59, %v10454_v5 }
 0x87c   :  { %v10495_v17 = vrot.slane %v10487_v56, %v13206_v13  ;;  %v10502_v23 = vrot.slane %v10488_v2, %v13206_v13  ;;  %v10511_v29 = vrot.slane %v10503_v43, %v13206_v13 }
 0x87d   :  { %v6220_v1 = vpop.trf.xlu0  ;;  %v14911_v18 = vpop.trf.xlu1 }
 0x87e   :  { %v10519_v12 = vcombine.low %v10463_v0, %v10495_v17  ;;  %v10520_v38 = vcombine.high %v10463_v0, %v10495_v17  ;;  %v10521_v51 = vcombine.low %v10470_v57, %v10502_v23  ;;  %v10522_v6 = vcombine.high %v10470_v57, %v10502_v23 }
 0x87f   :  { %v10523_v26 = vcombine.low %v14924_v40, %v10511_v29  ;;  %v10524_v50 = vcombine.high %v14924_v40, %v10511_v29 }
 0x880   :  { %12564 = vmatmul.mubr.msk.f32.vlgmr.msra.gmra.mrb[28].mxu1 %vm4219_vm2, %v10519_v12  ;;  %12571 = vmatmul.mubr.msk.f32.vlgmr.msra.gmra.mrb[28].mxu0 %vm4219_vm2, %v10520_v38 }
 0x881   :  { %12696 = vmatpush3.bf16.xpose.msk.msra.mxu1 %vm14238_vm4, %v12694_v24  ;;  %12700 = vmatpush3.bf16.xpose.msk.msra.mxu0 %vm14238_vm4, %v12698_v36  ;;  %v6221_v8 = vpop.trf.xlu0  ;;  %v6316_v31 = vpop.trf.xlu1 }
 0x882   :  { %v6476_v33 = vcombine.low %v6252_v35, %v6316_v31  ;;  %v6477_v41 = vcombine.high %v6252_v35, %v6316_v31  ;;  %12577 = vmatprep.mubr.msk.f32.mxu1 %vm12947_vm3, %v15383_v47  ;;  %12584 = vmatprep.mubr.msk.f32.mxu0 %vm12947_vm3, %v15383_v47  ;;  %v14969_v35 = vrot.slane %v10504_v9, %v13206_v13 }
 0x883   :  { %12701 = vmatprep.subr.bf16.mxu1 %v15390_v58  ;;  %12705 = vmatprep.subr.bf16.mxu0 %v15390_v58 }
 0x884   :  { %v6484_v16 = vrot.slane %v6476_v33, %v13196_v4  ;;  %v6491_v63 = vrot.slane %v6477_v41, %v13196_v4  ;;  %v10525_v32 = vcombine.low %v14932_v20, %v14969_v35  ;;  %v10526_v12 = vcombine.high %v14932_v20, %v14969_v35 }
 0x885   :  { %v6284_v39 = vpop.trf.xlu0  ;;  %v6317_v10 = vpop.trf.xlu1 }
 0x886   :  { %v6460_v42 = vcombine.low %v6220_v1, %v6284_v39  ;;  %v6461_v11 = vcombine.high %v6220_v1, %v6284_v39  ;;  %v6612_v37 = vcombine.low %v14911_v18, %v6317_v10  ;;  %v6613_v46 = vcombine.high %v14911_v18, %v6317_v10 }
 0x888   :  { %v6468_v45 = vrot.slane %v6460_v42, %v13196_v4  ;;  %v6475_v56 = vrot.slane %v6461_v11, %v13196_v4  ;;  %12578 = vmatmul.mubr.msk.f32.vlgmr.msra.gmra.mrb[30].mxu1 %vm4219_vm2, %v10521_v51  ;;  %12585 = vmatmul.mubr.msk.f32.vlgmr.msra.gmra.mrb[30].mxu0 %vm4219_vm2, %v10522_v6  ;;  %v6620_v25 = vrot.slane %v6612_v37, %v13196_v4 }
 0x889   :  { %12704 = vmatpush3.bf16.xpose.msk.msra.mxu1 %vm14238_vm4, %v12702_v52  ;;  %12708 = vmatpush3.bf16.xpose.msk.msra.mxu0 %vm14238_vm4, %v12706_v19  ;;  %v6285_v22 = vpop.trf.xlu0  ;;  %v6380_v53 = vpop.trf.xlu1  ;;  %v6627_v15 = vrot.slane %v6613_v46, %v13196_v4 }
 0x88a   :  { %v6524_v0 = vcombine.low %v6468_v45, %v6484_v16  ;;  %v6525_v17 = vcombine.high %v6468_v45, %v6484_v16  ;;  %v6540_v54 = vcombine.low %v6475_v56, %v6491_v63  ;;  %v6541_v14 = vcombine.high %v6475_v56, %v6491_v63  ;;  %12591 = vmatprep.mubr.msk.f32.mxu1 %vm12947_vm3, %v15383_v47 }
 0x88b   :  { %v6596_v59 = vcombine.low %v6221_v8, %v6285_v22  ;;  %v6597_v2 = vcombine.high %v6221_v8, %v6285_v22  ;;  %12598 = vmatprep.mubr.msk.f32.mxu0 %vm12947_vm3, %v15383_v47  ;;  %12709 = vmatprep.subr.bf16.mxu1 %v15390_v58 }
 0x88c   :  { %v6532_v1 = vrot.slane %v6524_v0, %v13206_v13  ;;  %v6539_v18 = vrot.slane %v6525_v17, %v13206_v13  ;;  %v6548_v3 = vrot.slane %v6540_v54, %v13206_v13  ;;  %v6555_v61 = vrot.slane %v6541_v14, %v13206_v13  ;;  %12713 = vmatprep.subr.bf16.mxu0 %v15390_v58 }
 0x88d   :  { %v6604_v38 = vrot.slane %v6596_v59, %v13196_v4  ;;  %v6611_v48 = vrot.slane %v6597_v2, %v13196_v4  ;;  %v6348_v5 = vpop.trf.xlu0  ;;  %v6381_v24 = vpop.trf.xlu1 }
 0x88e   :  { %v12222_v36 = vcombine.low %v6532_v1, %v6539_v18  ;;  %v12224_v49 = vcombine.high %v6532_v1, %v6539_v18  ;;  %v12226_v57 = vcombine.low %v6548_v3, %v6555_v61  ;;  %v12228_v40 = vcombine.high %v6548_v3, %v6555_v61 }
 0x88f   :  { %v6660_v44 = vcombine.low %v6604_v38, %v6620_v25  ;;  %v6661_v23 = vcombine.high %v6604_v38, %v6620_v25  ;;  %v6676_v43 = vcombine.low %v6611_v48, %v6627_v15  ;;  %v6677_v58 = vcombine.high %v6611_v48, %v6627_v15 }
 0x890   :  { %12592 = vmatmul.mubr.msk.f32.vlgmr.msra.gmra.mrb[32].mxu1 %vm4219_vm2, %v10523_v26  ;;  %12599 = vmatmul.mubr.msk.f32.vlgmr.msra.gmra.mrb[32].mxu0 %vm4219_vm2, %v10524_v50  ;;  %v6740_v20 = vrot.slane %v12222_v36, %v13196_v4  ;;  %v6756_v8 = vrot.slane %v12224_v49, %v13196_v4  ;;  %v15004_v31 = vrot.slane %v12226_v57, %v13196_v4 }
 0x891   :  { %v6668_v33 = vrot.slane %v6660_v44, %v13206_v13  ;;  %v6675_v41 = vrot.slane %v6661_v23, %v13206_v13  ;;  %v6684_v52 = vrot.slane %v6676_v43, %v13206_v13  ;;  %v6691_v34 = vrot.slane %v6677_v58, %v13206_v13  ;;  %12712 = vmatpush3.bf16.xpose.msk.msra.mxu1 %vm14238_vm4, %v12710_v21  ;;  %v6349_v27 = vpop.trf.xlu0  ;;  %v6444_v62 = vpop.trf.xlu1 }
 0x892   :  { %12716 = vmatpush3.bf16.xpose.msk.msra.mxu0 %vm14238_vm4, %v12714_v60  ;;  %v6508_v30 = vcombine.low %v6380_v53, %v6444_v62  ;;  %v6509_v7 = vcombine.high %v6380_v53, %v6444_v62  ;;  %12605 = vmatprep.mubr.msk.f32.mxu1 %vm12947_vm3, %v15383_v47  ;;  %v15017_v55 = vrot.slane %v12228_v40, %v13196_v4 }
 0x893   :  { %v12230_v9 = vcombine.low %v6668_v33, %v6675_v41  ;;  %v12232_v29 = vcombine.high %v6668_v33, %v6675_v41  ;;  %v12234_v51 = vcombine.low %v6684_v52, %v6691_v34  ;;  %v12236_v6 = vcombine.high %v6684_v52, %v6691_v34  ;;  %12612 = vmatprep.mubr.msk.f32.mxu0 %vm12947_vm3, %v15383_v47 }
 0x894   :  { %v6516_v16 = vrot.slane %v6508_v30, %v13196_v4  ;;  %v6523_v28 = vrot.slane %v6509_v7, %v13196_v4  ;;  %v6796_v39 = vcombine.low %v6740_v20, %v6756_v8  ;;  %v6828_v10 = vcombine.low %v15004_v31, %v15017_v55 }
 0x895   :  { %v6412_v63 = vpop.trf.xlu0  ;;  %v6445_v42 = vpop.trf.xlu1  ;;  %v6876_v11 = vrot.slane %v12230_v9, %v13196_v4  ;;  %v6892_v37 = vrot.slane %v12232_v29, %v13196_v4  ;;  %v15028_v19 = vrot.slane %v12234_v51, %v13196_v4  ;;  %v15031_v46 = vrot.slane %v12236_v6, %v13196_v4 }
 0x896   :  { %v6492_v47 = vcombine.low %v6348_v5, %v6412_v63  ;;  %v6493_v21 = vcombine.high %v6348_v5, %v6412_v63  ;;  %v15034_v60 = vrot.slane %v6796_v39, %v13206_v13  ;;  %v15037_v35 = vrot.slane %v6828_v10, %v13206_v13 }
 0x897   :  { %v6644_v45 = vcombine.low %v6381_v24, %v6445_v42  ;;  %v6645_v56 = vcombine.high %v6381_v24, %v6445_v42  ;;  %v6932_v26 = vcombine.low %v6876_v11, %v6892_v37  ;;  %v6964_v50 = vcombine.low %v15028_v19, %v15031_v46 }
 0x898   :  { %v6500_v25 = vrot.slane %v6492_v47, %v13196_v4  ;;  %v6507_v22 = vrot.slane %v6493_v21, %v13196_v4  ;;  %12606 = vmatmul.mubr.msk.f32.vlgmr.msra.gmra.mrb[34].mxu1 %vm4219_vm2, %v10525_v32  ;;  %v6861_v53 = vcombine.high %v15034_v60, %v15037_v35  ;;  %v6797_v0 = vcombine.high %v6740_v20, %v6756_v8 }
 0x899   :  { %12613 = vmatmul.mubr.msk.f32.vlgmr.msra.gmra.mrb[34].mxu0 %vm4219_vm2, %v10526_v12  ;;  %v6652_v17 = vrot.slane %v6644_v45, %v13196_v4  ;;  %v6659_v54 = vrot.slane %v6645_v56, %v13196_v4  ;;  %v6413_v14 = vpop.trf.xlu0  ;;  %v15050_v15 = vrot.slane %v6932_v26, %v13206_v13  ;;  %v15053_v59 = vrot.slane %v6964_v50, %v13206_v13 }
 0x89a   :  { %v6556_v2 = vcombine.low %v6500_v25, %v6516_v16  ;;  %v6557_v1 = vcombine.high %v6500_v25, %v6516_v16  ;;  %v6572_v18 = vcombine.low %v6507_v22, %v6523_v28  ;;  %v6573_v3 = vcombine.high %v6507_v22, %v6523_v28  ;;  %7006 = vrot.lane.b32.xlu0 %v6861_v53, %s12934_s26 }
 0x89b   :  { %v6628_v61 = vcombine.low %v6349_v27, %v6413_v14  ;;  %v6629_v32 = vcombine.high %v6349_v27, %v6413_v14  ;;  %v6997_v12 = vcombine.high %v15050_v15, %v15053_v59  ;;  %v6811_v38 = vrot.slane %v6797_v0, %v13206_v13 }
 0x89c   :  { %v6564_v48 = vrot.slane %v6556_v2, %v13206_v13  ;;  %v6571_v5 = vrot.slane %v6557_v1, %v13206_v13  ;;  %v6580_v24 = vrot.slane %v6572_v18, %v13206_v13  ;;  %v6587_v36 = vrot.slane %v6573_v3, %v13206_v13  ;;  %v12030_v3 = vld [vmem:[%s15292_s2 + $0x8] sm:$0xff] }
 0x89d   :  { %v6636_v49 = vrot.slane %v6628_v61, %v13196_v4  ;;  %v6643_v57 = vrot.slane %v6629_v32, %v13196_v4  ;;  %7008 = vrot.lane.b32.xlu1 %v6997_v12, %s12934_s26  ;;  %v6829_v40 = vcombine.high %v15004_v31, %v15017_v55  ;;  %v6933_v44 = vcombine.high %v6876_v11, %v6892_v37  ;;  %v12031_v61 = vld [vmem:[%s15292_s2 + $0x10] sm:$0xff]  ;;  %v12032_v32 = vld [vmem:[%s15292_s2 + $0x18] sm:$0xff] }
 0x89e   :  { %v12223_v23 = vcombine.low %v6564_v48, %v6571_v5  ;;  %v12225_v43 = vcombine.high %v6564_v48, %v6571_v5  ;;  %v12227_v58 = vcombine.low %v6580_v24, %v6587_v36  ;;  %v12229_v20 = vcombine.high %v6580_v24, %v6587_v36 }
 0x89f   :  { %v6692_v8 = vcombine.low %v6636_v49, %v6652_v17  ;;  %v6693_v33 = vcombine.high %v6636_v49, %v6652_v17  ;;  %v6708_v41 = vcombine.low %v6643_v57, %v6659_v54  ;;  %v6709_v52 = vcombine.high %v6643_v57, %v6659_v54  ;;  %v12029_v54 = vld [vmem:[%s15292_s2] sm:$0xff] }
 0x8a0   :  { %v6747_v34 = vrot.slane %v12223_v23, %v13196_v4  ;;  %v6763_v27 = vrot.slane %v12225_v43, %v13196_v4  ;;  %v6779_v62 = vrot.slane %v12227_v58, %v13196_v4  ;;  %v6795_v30 = vrot.slane %v12229_v20, %v13196_v4  ;;  %v12034_v23 = vld [vmem:[%s15292_s2 + $0x28] sm:$0xff] }
 0x8a1   :  { %v6700_v7 = vrot.slane %v6692_v8, %v13206_v13  ;;  %v6707_v31 = vrot.slane %v6693_v33, %v13206_v13  ;;  %v6716_v55 = vrot.slane %v6708_v41, %v13206_v13  ;;  %v6723_v9 = vrot.slane %v6709_v52, %v13206_v13  ;;  %v12035_v8 = vld [vmem:[%s15292_s2 + $0x30] sm:$0xff]  ;;  %v12036_v33 = vld [vmem:[%s15292_s2 + $0x38] sm:$0xff] }
 0x8a2   :  { %v6843_v29 = vrot.slane %v6829_v40, %v13206_v13  ;;  %v6947_v51 = vrot.slane %v6933_v44, %v13206_v13  ;;  %v6965_v6 = vcombine.high %v15028_v19, %v15031_v46  ;;  %v6812_v16 = vcombine.low %v6747_v34, %v6763_v27  ;;  %v12033_v44 = vld [vmem:[%s15292_s2 + $0x20] sm:$0xff] }
 0x8a3   :  { %v12231_v28 = vcombine.low %v6700_v7, %v6707_v31  ;;  %v12233_v39 = vcombine.high %v6700_v7, %v6707_v31  ;;  %v12235_v10 = vcombine.low %v6716_v55, %v6723_v9  ;;  %v12237_v63 = vcombine.high %v6716_v55, %v6723_v9 }
 0x8a4   :  { %v6862_v42 = vcombine.low %v6811_v38, %v6843_v29  ;;  %v6863_v11 = vcombine.high %v6811_v38, %v6843_v29  ;;  %v6979_v37 = vrot.slane %v6965_v6, %v13206_v13  ;;  %v6820_v46 = vrot.slane %v6812_v16, %v13206_v13 }
 0x8a5   :  { %v6883_v47 = vrot.slane %v12231_v28, %v13196_v4  ;;  %v6899_v21 = vrot.slane %v12233_v39, %v13196_v4  ;;  %v6915_v45 = vrot.slane %v12235_v10, %v13196_v4  ;;  %v6931_v56 = vrot.slane %v12237_v63, %v13196_v4 }
 0x8a6   :  { %7014 = vrot.lane.b32.xlu1 %v6862_v42, %s12948_s16  ;;  %7022 = vrot.lane.b32.xlu0 %v6863_v11, %s12949_s17  ;;  %v6998_v19 = vcombine.low %v6947_v51, %v6979_v37  ;;  %v6844_v26 = vcombine.low %v6779_v62, %v6795_v30  ;;  %v6860_v53 = vcombine.low %v15034_v60, %v15037_v35 }
 0x8a7   :  { %v6948_v50 = vcombine.low %v6883_v47, %v6899_v21  ;;  %v6980_v25 = vcombine.low %v6915_v45, %v6931_v56  ;;  %v6999_v0 = vcombine.high %v6947_v51, %v6979_v37  ;;  %v6813_v17 = vcombine.high %v6747_v34, %v6763_v27 }
 0x8a8   :  { %v6852_v22 = vrot.slane %v6844_v26, %v13206_v13  ;;  %v6845_v18 = vcombine.high %v6779_v62, %v6795_v30  ;;  %v6949_v38 = vcombine.high %v6883_v47, %v6899_v21  ;;  %v6981_v48 = vcombine.high %v6915_v45, %v6931_v56 }
 0x8a9   :  { %v6956_v2 = vrot.slane %v6948_v50, %v13206_v13  ;;  %v6988_v1 = vrot.slane %v6980_v25, %v13206_v13  ;;  %v6996_v5 = vcombine.low %v15050_v15, %v15053_v59  ;;  %v12717_v24 = vpack.c.bf16 %v12030_v3, %v12029_v54 }
 0x8aa   :  { %7016 = vrot.lane.b32.xlu1 %v6998_v19, %s12948_s16  ;;  %v6864_v14 = vcombine.low %v6820_v46, %v6852_v22  ;;  %v6865_v12 = vcombine.high %v6820_v46, %v6852_v22  ;;  %v12721_v36 = vpack.c.bf16 %v12032_v32, %v12031_v61  ;;  %v6827_v57 = vrot.slane %v6813_v17, %v13206_v13 }
 0x8ab   :  { %v7000_v49 = vcombine.low %v6956_v2, %v6988_v1  ;;  %v6859_v40 = vrot.slane %v6845_v18, %v13206_v13  ;;  %12718 = vmatprep.subr.bf16.mxu1 %v12717_v24  ;;  %v7001_v15 = vcombine.high %v6956_v2, %v6988_v1  ;;  %v6963_v59 = vrot.slane %v6949_v38, %v13206_v13 }
 0x8ac   :  { %7030 = vrot.lane.b32.xlu0 %v6864_v14, %s12950_s28  ;;  %v6995_v43 = vrot.slane %v6981_v48, %v13206_v13  ;;  %12720 = vmatpush3.bf16.msra.mxu1 %v12717_v24  ;;  %v12725_v58 = vpack.c.bf16 %v12034_v23, %v12033_v44  ;;  %v12729_v52 = vpack.c.bf16 %v12036_v33, %v12035_v8 }
 0x8ad   :  { %12722 = vmatprep.subr.bf16.mxu1 %v12721_v36  ;;  %v6866_v20 = vcombine.low %v6827_v57, %v6859_v40  ;;  %v6867_v34 = vcombine.high %v6827_v57, %v6859_v40 }
 0x8ae   :  { %7024 = vrot.lane.b32.xlu1 %v6999_v0, %s12949_s17  ;;  %v7002_v41 = vcombine.low %v6963_v59, %v6995_v43  ;;  %v7003_v27 = vcombine.high %v6963_v59, %v6995_v43 }
 0x8b0   :  { %7038 = vrot.lane.b32.xlu0 %v6865_v12, %s12951_s7  ;;  %12724 = vmatpush3.bf16.msra.mxu1 %v12721_v36 }
 0x8b1   :  { %12726 = vmatprep.subr.bf16.mxu1 %v12725_v58 }
 0x8b2   :  { %7032 = vrot.lane.b32.xlu1 %v7000_v49, %s12950_s28 }
 0x8b4   :  { %7040 = vrot.lane.b32.xlu0 %v7001_v15, %s12951_s7  ;;  %12728 = vmatpush3.bf16.msra.mxu1 %v12725_v58 }
 0x8b5   :  { %12730 = vmatprep.subr.bf16.mxu1 %v12729_v52 }
 0x8b6   :  { %7046 = vrot.lane.b32.xlu1 %v6866_v20, %s12952_s10 }
 0x8b8   :  { %7048 = vrot.lane.b32.xlu0 %v7002_v41, %s12952_s10  ;;  %12732 = vmatpush3.bf16.msra.mxu1 %v12729_v52 }
 0x8ba   :  { %7054 = vrot.lane.b32.xlu1 %v6867_v34, %s12953_s11 }
 0x8bc   :  { %7056 = vrot.lane.b32.xlu0 %v7003_v27, %s12953_s11 }
 0x90c   :  { %v7007_v30 = vpop.permute.xlu0 %7006 }
 0x90d   :  { %v7060_v16 = vsel %vm3570_vm1, %v6860_v53, %v7007_v30 }
 0x90f   :  { %v7009_v62 = vpop.permute.xlu1 %7008 }
 0x910   :  { %v7061_v63 = vsel %vm3570_vm1, %v6996_v5, %v7009_v62 }
 0x918   :  { %v7015_v7 = vpop.permute.xlu1 %7014  ;;  %v7023_v31 = vpop.permute.xlu0 %7022 }
 0x919   :  { %v7062_v28 = vsel %vm4219_vm2, %v7060_v16, %v7015_v7 }
 0x91a   :  { %v7065_v42 = vsel %vm7064_vm5, %v7062_v28, %v7023_v31 }
 0x91c   :  { %v7017_v55 = vpop.permute.xlu1 %7016 }
 0x91d   :  { %v7063_v11 = vsel %vm4219_vm2, %v7061_v63, %v7017_v55 }
 0x91e   :  { %v7031_v9 = vpop.permute.xlu0 %7030 }
 0x91f   :  { %v7068_v37 = vsel %vm7067_vm6, %v7065_v42, %v7031_v9 }
 0x920   :  { %v7025_v29 = vpop.permute.xlu1 %7024 }
 0x921   :  { %v7066_v35 = vsel %vm7064_vm5, %v7063_v11, %v7025_v29 }
 0x922   :  { %v7039_v51 = vpop.permute.xlu0 %7038 }
 0x923   :  { %v7071_v47 = vsel %vm7070_vm7, %v7068_v37, %v7039_v51 }
 0x924   :  { %v7033_v6 = vpop.permute.xlu1 %7032 }
 0x925   :  { %v7069_v21 = vsel %vm7067_vm6, %v7066_v35, %v7033_v6 }
 0x926   :  { %v7041_v39 = vpop.permute.xlu0 %7040 }
 0x927   :  { %v7072_v19 = vsel %vm7070_vm7, %v7069_v21, %v7041_v39 }
 0x928   :  { %v7047_v10 = vpop.permute.xlu1 %7046 }
 0x929   :  { %v7074_v45 = vsel %vm7073_vm8, %v7071_v47, %v7047_v10 }
 0x92a   :  { %v7049_v60 = vpop.permute.xlu0 %7048 }
 0x92b   :  { %v7075_v26 = vsel %vm7073_vm8, %v7072_v19, %v7049_v60 }
 0x92c   :  { %v7055_v56 = vpop.permute.xlu1 %7054 }
 0x92d   :  { %v7077_v46 = vsel %vm7076_vm9, %v7074_v45, %v7055_v56 }
 0x92e   :  { %12631 = vmatprep.mubr.msk.f32.mxu1 %vm52_vm0, %v7077_v46  ;;  %v7057_v50 = vpop.permute.xlu0 %7056 }
 0x92f   :  { %v7078_v25 = vsel %vm7076_vm9, %v7075_v26, %v7057_v50 }
 0x930   :  { %12632 = vmatmul.mubr.msk.f32.vlgmr.msra.gmra.mrb[36].mxu1 %vm52_vm0, %v7078_v25 }
 0x953   :  { %v10602_v22 = vpop.f32.mrb[28].mxu1  ;;  %v10681_v53 = vpop.f32.mrb[28].mxu0 }
 0x954   :  { %v12565_v0 = vpop.f32.mrb[29].mxu1  ;;  %v12572_v17 = vpop.f32.mrb[29].mxu0  ;;  %11159 = vxpose.xlu0.b32.start.end [1/1] (short) (narrow) %v10602_v22, 16  ;;  %11191 = vxpose.xlu1.b32.start.end [1/1] (short) (narrow) %v10681_v53, 16 }
 0x95b   :  { %v10760_v54 = vpop.f32.mrb[30].mxu1  ;;  %v10839_v14 = vpop.f32.mrb[30].mxu0 }
 0x95c   :  { %v12579_v2 = vpop.f32.mrb[31].mxu1  ;;  %v12586_v1 = vpop.f32.mrb[31].mxu0  ;;  %11223 = vxpose.xlu0.b32.start.end [1/1] (short) (narrow) %v10760_v54, 16  ;;  %11255 = vxpose.xlu1.b32.start.end [1/1] (short) (narrow) %v10839_v14, 16 }
 0x963   :  { %v10918_v18 = vpop.f32.mrb[32].mxu1  ;;  %v10997_v3 = vpop.f32.mrb[32].mxu0 }
 0x964   :  { %v12593_v61 = vpop.f32.mrb[33].mxu1  ;;  %v12600_v32 = vpop.f32.mrb[33].mxu0  ;;  %11287 = vxpose.xlu0.b32.start.end [1/1] (short) (narrow) %v10918_v18, 16  ;;  %11319 = vxpose.xlu1.b32.start.end [1/1] (short) (narrow) %v10997_v3, 16 }
 0x96b   :  { %v11076_v12 = vpop.f32.mrb[34].mxu1 }
 0x96c   :  { %v11155_v38 = vpop.f32.mrb[34].mxu0  ;;  %v12607_v48 = vpop.f32.mrb[35].mxu1  ;;  %11351 = vxpose.xlu0.b32.start.end [1/1] (short) (narrow) %v11076_v12, 16 }
 0x96d   :  { %v12614_v5 = vpop.f32.mrb[35].mxu0  ;;  %11383 = vxpose.xlu1.b32.start.end [1/1] (short) (narrow) %v11155_v38, 16 }
 0x9d4   :  { %v11207_v24 = vpop.trf.xlu1  ;;  %v11175_v36 = vpop.trf.xlu0 }
 0x9d8   :  { %v11208_v49 = vpop.trf.xlu1  ;;  %v11176_v57 = vpop.trf.xlu0 }
 0x9dc   :  { %v11271_v40 = vpop.trf.xlu1  ;;  %v11239_v44 = vpop.trf.xlu0 }
 0x9dd   :  { %v11431_v23 = vcombine.low %v11207_v24, %v11271_v40  ;;  %v11432_v15 = vcombine.high %v11207_v24, %v11271_v40  ;;  %v11415_v59 = vcombine.low %v11175_v36, %v11239_v44  ;;  %v11416_v43 = vcombine.high %v11175_v36, %v11239_v44 }
 0x9df   :  { %v11439_v58 = vrot.slane %v11431_v23, %v13196_v4  ;;  %v11446_v20 = vrot.slane %v11432_v15, %v13196_v4  ;;  %v11423_v8 = vrot.slane %v11415_v59, %v13196_v4  ;;  %v11430_v33 = vrot.slane %v11416_v43, %v13196_v4 }
 0x9e0   :  { %v11272_v41 = vpop.trf.xlu1  ;;  %v11240_v52 = vpop.trf.xlu0 }
 0x9e1   :  { %v11479_v34 = vcombine.low %v11423_v8, %v11439_v58  ;;  %v11480_v27 = vcombine.high %v11423_v8, %v11439_v58  ;;  %v11495_v62 = vcombine.low %v11430_v33, %v11446_v20  ;;  %v11496_v30 = vcombine.high %v11430_v33, %v11446_v20 }
 0x9e2   :  { %v11567_v7 = vcombine.low %v11208_v49, %v11272_v41  ;;  %v11568_v31 = vcombine.high %v11208_v49, %v11272_v41  ;;  %v11551_v55 = vcombine.low %v11176_v57, %v11240_v52  ;;  %v11552_v9 = vcombine.high %v11176_v57, %v11240_v52 }
 0x9e3   :  { %v11487_v29 = vrot.slane %v11479_v34, %v13206_v13  ;;  %v11494_v51 = vrot.slane %v11480_v27, %v13206_v13  ;;  %v11503_v6 = vrot.slane %v11495_v62, %v13206_v13  ;;  %v11510_v16 = vrot.slane %v11496_v30, %v13206_v13 }
 0x9e4   :  { %v11575_v28 = vrot.slane %v11567_v7, %v13196_v4  ;;  %v11582_v39 = vrot.slane %v11568_v31, %v13196_v4  ;;  %v11559_v10 = vrot.slane %v11551_v55, %v13196_v4  ;;  %v11566_v63 = vrot.slane %v11552_v9, %v13196_v4  ;;  %v11335_v42 = vpop.trf.xlu1  ;;  %v11303_v11 = vpop.trf.xlu0 }
 0x9e5   :  { %v12294_v37 = vcombine.low %v11487_v29, %v11494_v51  ;;  %v12296_v60 = vcombine.high %v11487_v29, %v11494_v51  ;;  %v12298_v35 = vcombine.low %v11503_v6, %v11510_v16  ;;  %v12300_v47 = vcombine.high %v11503_v6, %v11510_v16 }
 0x9e6   :  { %v11615_v21 = vcombine.low %v11559_v10, %v11575_v28  ;;  %v11616_v45 = vcombine.high %v11559_v10, %v11575_v28  ;;  %v11631_v56 = vcombine.low %v11566_v63, %v11582_v39  ;;  %v11632_v19 = vcombine.high %v11566_v63, %v11582_v39 }
 0x9e7   :  { %v11695_v46 = vrot.slane %v12294_v37, %v13196_v4  ;;  %v11711_v26 = vrot.slane %v12296_v60, %v13196_v4  ;;  %v11727_v50 = vrot.slane %v12298_v35, %v13196_v4  ;;  %v11743_v25 = vrot.slane %v12300_v47, %v13196_v4 }
 0x9e8   :  { %v11623_v22 = vrot.slane %v11615_v21, %v13206_v13  ;;  %v11630_v53 = vrot.slane %v11616_v45, %v13206_v13  ;;  %v11639_v0 = vrot.slane %v11631_v56, %v13206_v13  ;;  %v11646_v17 = vrot.slane %v11632_v19, %v13206_v13  ;;  %v11336_v54 = vpop.trf.xlu1  ;;  %v11304_v14 = vpop.trf.xlu0 }
 0x9e9   :  { %v11751_v2 = vcombine.low %v11695_v46, %v11711_v26  ;;  %v11783_v1 = vcombine.low %v11727_v50, %v11743_v25  ;;  %v11752_v18 = vcombine.high %v11695_v46, %v11711_v26  ;;  %v11784_v3 = vcombine.high %v11727_v50, %v11743_v25 }
 0x9ea   :  { %v12302_v61 = vcombine.low %v11623_v22, %v11630_v53  ;;  %v12304_v32 = vcombine.high %v11623_v22, %v11630_v53  ;;  %v12306_v12 = vcombine.low %v11639_v0, %v11646_v17  ;;  %v12308_v38 = vcombine.high %v11639_v0, %v11646_v17 }
 0x9eb   :  { %v15173_v48 = vrot.slane %v11751_v2, %v13206_v13  ;;  %v15176_v5 = vrot.slane %v11783_v1, %v13206_v13  ;;  %v11766_v24 = vrot.slane %v11752_v18, %v13206_v13  ;;  %v11798_v36 = vrot.slane %v11784_v3, %v13206_v13 }
 0x9ec   :  { %v11367_v49 = vpop.trf.xlu0  ;;  %v11831_v57 = vrot.slane %v12302_v61, %v13196_v4  ;;  %v11847_v40 = vrot.slane %v12304_v32, %v13196_v4  ;;  %v11863_v44 = vrot.slane %v12306_v12, %v13196_v4  ;;  %v11879_v23 = vrot.slane %v12308_v38, %v13196_v4 }
 0x9ed   :  { %v11399_v15 = vpop.trf.xlu1  ;;  %v11447_v59 = vcombine.low %v11303_v11, %v11367_v49  ;;  %v11448_v43 = vcombine.high %v11303_v11, %v11367_v49  ;;  %v11816_v58 = vcombine.high %v15173_v48, %v15176_v5  ;;  %v11817_v20 = vcombine.low %v11766_v24, %v11798_v36 }
 0x9ee   :  { %v11463_v8 = vcombine.low %v11335_v42, %v11399_v15  ;;  %v11464_v33 = vcombine.high %v11335_v42, %v11399_v15  ;;  %v11887_v41 = vcombine.low %v11831_v57, %v11847_v40  ;;  %v11919_v52 = vcombine.low %v11863_v44, %v11879_v23 }
 0x9ef   :  { %v11455_v34 = vrot.slane %v11447_v59, %v13196_v4  ;;  %v11462_v27 = vrot.slane %v11448_v43, %v13196_v4  ;;  %11961 = vrot.lane.b32.xlu1 %v11816_v58, %s12934_s26  ;;  %v11818_v62 = vcombine.high %v11766_v24, %v11798_v36  ;;  %v11888_v30 = vcombine.high %v11831_v57, %v11847_v40 }
 0x9f0   :  { %v11471_v7 = vrot.slane %v11463_v8, %v13196_v4  ;;  %v11478_v31 = vrot.slane %v11464_v33, %v13196_v4  ;;  %v11368_v55 = vpop.trf.xlu0  ;;  %v15192_v9 = vrot.slane %v11887_v41, %v13206_v13  ;;  %v15195_v29 = vrot.slane %v11919_v52, %v13206_v13 }
 0x9f1   :  { %v11400_v51 = vpop.trf.xlu1  ;;  %v11583_v6 = vcombine.low %v11304_v14, %v11368_v55  ;;  %v11584_v16 = vcombine.high %v11304_v14, %v11368_v55  ;;  %v11902_v28 = vrot.slane %v11888_v30, %v13206_v13  ;;  %v11920_v39 = vcombine.high %v11863_v44, %v11879_v23 }
 0x9f2   :  { %v11511_v10 = vcombine.low %v11455_v34, %v11471_v7  ;;  %v11512_v63 = vcombine.high %v11455_v34, %v11471_v7  ;;  %v11527_v42 = vcombine.low %v11462_v27, %v11478_v31  ;;  %v11528_v11 = vcombine.high %v11462_v27, %v11478_v31 }
 0x9f3   :  { %v11599_v37 = vcombine.low %v11336_v54, %v11400_v51  ;;  %v11600_v60 = vcombine.high %v11336_v54, %v11400_v51  ;;  %v11591_v35 = vrot.slane %v11583_v6, %v13196_v4  ;;  %v11598_v47 = vrot.slane %v11584_v16, %v13196_v4  ;;  %11969 = vrot.lane.b32.xlu1 %v11817_v20, %s12948_s16  ;;  %v15236_v51 = vld [vmem:[%s15293_s3] ss:$0 sm:$0xff]  ;;  %s12954_s3 = smov [#allocation5]  }
 0x9f4   :  { %v11519_v21 = vrot.slane %v11511_v10, %v13206_v13  ;;  %v11526_v45 = vrot.slane %v11512_v63, %v13206_v13  ;;  %v11535_v56 = vrot.slane %v11527_v42, %v13206_v13  ;;  %v11542_v19 = vrot.slane %v11528_v11, %v13206_v13  ;;  %s12150_s13 = sshll.u32 %s12954_s3, 4  ;;  %s12151_s13 = int_to_ptr.vmem [resolvable:$true] %s12150_s13 }
 0x9f5   :  { %v11607_v46 = vrot.slane %v11599_v37, %v13196_v4  ;;  %v11614_v26 = vrot.slane %v11600_v60, %v13196_v4  ;;  %v11952_v50 = vcombine.high %v15192_v9, %v15195_v29  ;;  %v11934_v25 = vrot.slane %v11920_v39, %v13206_v13  ;;  %s12906_s14 = scalar_lea.vmem %s12151_s13, 512  ;;  %p12911_p9 = scmp.lt.s32.totalorder %s12151_s13, %s12151_s13 }
 0x9f6   :  { %v12295_v22 = vcombine.low %v11519_v21, %v11526_v45  ;;  %v12297_v53 = vcombine.high %v11519_v21, %v11526_v45  ;;  %v12299_v0 = vcombine.low %v11535_v56, %v11542_v19  ;;  %v12301_v17 = vcombine.high %v11535_v56, %v11542_v19  ;;  %p12907_p8 = scmp.ne.s32.totalorder %s12151_s13, %s12906_s14  ;;  %p12912_p10 = scmp.lt.s32.totalorder %s12906_s14, %s12906_s14 }
 0x9f7   :  { %v11647_v54 = vcombine.low %v11591_v35, %v11607_v46  ;;  %v11648_v14 = vcombine.high %v11591_v35, %v11607_v46  ;;  %v11663_v2 = vcombine.low %v11598_v47, %v11614_v26  ;;  %v11664_v1 = vcombine.high %v11598_v47, %v11614_v26  ;;  %11963 = vrot.lane.b32.xlu0 %v11952_v50, %s12934_s26 }
 0x9f8   :  { %v11702_v18 = vrot.slane %v12295_v22, %v13196_v4  ;;  %v11718_v3 = vrot.slane %v12297_v53, %v13196_v4  ;;  %v11734_v61 = vrot.slane %v12299_v0, %v13196_v4  ;;  %v11750_v32 = vrot.slane %v12301_v17, %v13196_v4  ;;  %11977 = vrot.lane.b32.xlu1 %v11818_v62, %s12949_s17  ;;  %p12913_p11 = por %p12912_p10, %p12911_p9 }
 0x9f9   :  { %v11655_v12 = vrot.slane %v11647_v54, %v13206_v13  ;;  %v11662_v38 = vrot.slane %v11648_v14, %v13206_v13  ;;  %v11671_v24 = vrot.slane %v11663_v2, %v13206_v13  ;;  %v11678_v36 = vrot.slane %v11664_v1, %v13206_v13 }
 0x9fa   :  { %v11953_v49 = vcombine.low %v11902_v28, %v11934_v25  ;;  %v11954_v57 = vcombine.high %v11902_v28, %v11934_v25  ;;  %v11767_v40 = vcombine.low %v11702_v18, %v11718_v3  ;;  %v11799_v44 = vcombine.low %v11734_v61, %v11750_v32  ;;  %p12914_p12 = pnand %p12913_p11, %p12907_p8 }
 0x9fb   :  { %v12303_v23 = vcombine.low %v11655_v12, %v11662_v38  ;;  %v12305_v15 = vcombine.high %v11655_v12, %v11662_v38  ;;  %v12307_v59 = vcombine.low %v11671_v24, %v11678_v36  ;;  %v12309_v43 = vcombine.high %v11671_v24, %v11678_v36 }
 0x9fc   :  { %11971 = vrot.lane.b32.xlu0 %v11953_v49, %s12948_s16  ;;  %11979 = vrot.lane.b32.xlu1 %v11954_v57, %s12949_s17  ;;  %v11775_v58 = vrot.slane %v11767_v40, %v13206_v13  ;;  %v11807_v20 = vrot.slane %v11799_v44, %v13206_v13  ;;  %v11768_v27 = vcombine.high %v11702_v18, %v11718_v3 }
 0x9fd   :  { %v11838_v8 = vrot.slane %v12303_v23, %v13196_v4  ;;  %v11854_v33 = vrot.slane %v12305_v15, %v13196_v4  ;;  %v11870_v41 = vrot.slane %v12307_v59, %v13196_v4  ;;  %v11886_v52 = vrot.slane %v12309_v43, %v13196_v4 }
 0x9fe   :  { %v11819_v34 = vcombine.low %v11775_v58, %v11807_v20  ;;  %v11800_v62 = vcombine.high %v11734_v61, %v11750_v32  ;;  %v11815_v31 = vcombine.low %v15173_v48, %v15176_v5  ;;  %v11951_v55 = vcombine.low %v15192_v9, %v15195_v29 }
 0x9ff   :  { %v11903_v30 = vcombine.low %v11838_v8, %v11854_v33  ;;  %v11935_v7 = vcombine.low %v11870_v41, %v11886_v52  ;;  %v11820_v16 = vcombine.high %v11775_v58, %v11807_v20  ;;  %v11782_v28 = vrot.slane %v11768_v27, %v13206_v13 }
 0xa00   :  { %11985 = vrot.lane.b32.xlu0 %v11819_v34, %s12950_s28  ;;  %v11814_v39 = vrot.slane %v11800_v62, %v13206_v13  ;;  %v11904_v48 = vcombine.high %v11838_v8, %v11854_v33  ;;  %v11936_v5 = vcombine.high %v11870_v41, %v11886_v52 }
 0xa01   :  { %v11911_v4 = vrot.slane %v11903_v30, %v13206_v13  ;;  %v11943_v6 = vrot.slane %v11935_v7, %v13206_v13 }
 0xa02   :  { %v11821_v11 = vcombine.low %v11782_v28, %v11814_v39  ;;  %v11918_v60 = vrot.slane %v11904_v48, %v13206_v13  ;;  %v11950_v35 = vrot.slane %v11936_v5, %v13206_v13  ;;  %v11822_v47 = vcombine.high %v11782_v28, %v11814_v39 }
 0xa03   :  { %v12633_v10 = vpop.f32.mrb[36].mxu1  ;;  %v11955_v63 = vcombine.low %v11911_v4, %v11943_v6  ;;  %v11956_v37 = vcombine.high %v11911_v4, %v11943_v6 }
 0xa04   :  { %v12128_v9 = vadd.f32 %v12633_v10, %v15236_v51  ;;  %v12122_v29 = vpop.f32.mrb[37].mxu1  ;;  %11993 = vrot.lane.b32.xlu0 %v11820_v16, %s12951_s7  ;;  %v11957_v21 = vcombine.low %v11918_v60, %v11950_v35  ;;  %v11958_v45 = vcombine.high %v11918_v60, %v11950_v35 }
 0xa05   :  { %v12123_v42 = vadd.f32 %v15236_v51, %v12122_v29  ;;  %11987 = vrot.lane.b32.xlu1 %v11955_v63, %s12950_s28 }
 0xa06   :  { %12142 = vst.msk [vmem:[#allocation5 + $0x8] sm:$0xff] %vm52_vm0, %v12128_v9 }
 0xa07   :  { %12141 = vst.msk [vmem:[#allocation5] sm:$0xff] %vm52_vm0, %v12123_v42 }
 0xa08   :  { %12001 = vrot.lane.b32.xlu0 %v11821_v11, %s12952_s10 }
 0xa09   :  { %11995 = vrot.lane.b32.xlu1 %v11956_v37, %s12951_s7 }
 0xa0c   :  { %12009 = vrot.lane.b32.xlu0 %v11822_v47, %s12953_s11 }
 0xa0d   :  { %12003 = vrot.lane.b32.xlu1 %v11957_v21, %s12952_s10 }
 0xa11   :  { %12011 = vrot.lane.b32.xlu1 %v11958_v45, %s12953_s11 }
 0xa61   :  { %v11962_v56 = vpop.permute.xlu1 %11961 }
 0xa62   :  { %v12015_v0 = vsel %vm3570_vm1, %v11815_v31, %v11962_v56 }
 0xa65   :  { %v11970_v19 = vpop.permute.xlu1 %11969 }
 0xa66   :  { %v12017_v17 = vsel %vm4219_vm2, %v12015_v0, %v11970_v19 }
 0xa69   :  { %v11964_v46 = vpop.permute.xlu0 %11963 }
 0xa6a   :  { %v11978_v26 = vpop.permute.xlu1 %11977  ;;  %v12016_v3 = vsel %vm3570_vm1, %v11951_v55, %v11964_v46 }
 0xa6b   :  { %v12019_v14 = vsel %vm7064_vm5, %v12017_v17, %v11978_v26 }
 0xa6e   :  { %v11972_v50 = vpop.permute.xlu0 %11971  ;;  %v11980_v13 = vpop.permute.xlu1 %11979 }
 0xa6f   :  { %v12018_v12 = vsel %vm4219_vm2, %v12016_v3, %v11972_v50 }
 0xa70   :  { %v12020_v36 = vsel %vm7064_vm5, %v12018_v12, %v11980_v13 }
 0xa72   :  { %v11986_v25 = vpop.permute.xlu0 %11985 }
 0xa73   :  { %v12021_v1 = vsel %vm7067_vm6, %v12019_v14, %v11986_v25 }
 0xa76   :  { %v11994_v22 = vpop.permute.xlu0 %11993 }
 0xa77   :  { %v11988_v53 = vpop.permute.xlu1 %11987  ;;  %v12023_v18 = vsel %vm7070_vm7, %v12021_v1, %v11994_v22 }
 0xa78   :  { %v12022_v49 = vsel %vm7067_vm6, %v12020_v36, %v11988_v53 }
 0xa7a   :  { %v12002_v54 = vpop.permute.xlu0 %12001 }
 0xa7b   :  { %v11996_v2 = vpop.permute.xlu1 %11995  ;;  %v12025_v61 = vsel %vm7073_vm8, %v12023_v18, %v12002_v54 }
 0xa7c   :  { %v12024_v57 = vsel %vm7070_vm7, %v12022_v49, %v11996_v2 }
 0xa7e   :  { %v12010_v32 = vpop.permute.xlu0 %12009 }
 0xa7f   :  { %v12004_v38 = vpop.permute.xlu1 %12003  ;;  %v12027_v24 = vsel %vm7076_vm9, %v12025_v61, %v12010_v32 }
 0xa80   :  { %12634 = vmatprep.mubr.msk.f32.mxu1 %vm52_vm0, %v12027_v24  ;;  %v12026_v40 = vsel %vm7073_vm8, %v12024_v57, %v12004_v38 }
 0xa83   :  { %v12012_v44 = vpop.permute.xlu1 %12011 }
 0xa84   :  { %v12028_v23 = vsel %vm7076_vm9, %v12026_v40, %v12012_v44 }
 0xa85   :  { %12635 = vmatmul.mubr.msk.f32.gmra.mrb[38].mxu1 %vm52_vm0, %v12028_v23 }
 0xb58   :  { %v12636_v15 = vpop.f32.mrb[38].mxu1 }
 0xb59   :  { %v12138_v59 = vadd.f32 %v12636_v15, %v15236_v51  ;;  %v12132_v43 = vpop.f32.mrb[39].mxu1 }
 0xb5a   :  { %v12133_v58 = vadd.f32 %v15236_v51, %v12132_v43 }
 0xb5b   :  { %12144 = vst.msk [vmem:[#allocation5 + $0x18] sm:$0xff] %vm52_vm0, %v12138_v59 }
 0xb5c   :  { %12143 = vst.msk [vmem:[#allocation5 + $0x10] sm:$0xff] %vm52_vm0, %v12133_v58 }
 0xb5d   :  { %12917 = shalt.err (!%p12914_p12)
}
 0xb5e   :  { %s12918_s17 = scalar_lea.hbm %s15294_s4, 512 }
 0xb5f   :  { %p12919_p13 = scmp.ne.s32.totalorder %s15294_s4, %s12918_s17  ;;  %p12922_p0 = scmp.lt.u32.totalorder %s12918_s17, %s15294_s4 }
 0xb61   :  { %p12924_p1 = pnand %p12922_p0, %p12919_p13 }
 0xb63   :  { %12927 = shalt.err (!%p12924_p1)
}
 0xb64   :  { %12156 = dma.vmem_to_hbm [thread:$0]  %s12151_s13, 512, %s15294_s4, [#allocation4], %s12933_s25, %s12933_s25, %s12934_s26  }
 0xb65   :  { %12930 = dma.done.wait [#allocation4], 512  }
 0xb66   :  { %12931 = vsyncadd [#allocation4], 4294966784 }
 0xb67   :  { %12160 = vsyncpa [#allocation3], 1 }
 0xb68   :  { %12161 = vsyncpa [#allocation4], 1 }

</bundles_post_ra>
